<compile_context>
chip_gen: v7x
topology: tpu7x:2x2x1
jax: 0.10.0
libtpu: 0.0.40
codegen_flags: <defaults>
</compile_context>

<pallas_src>
import math

import jax
import jax.numpy as jnp
from jax import lax
from jax.experimental import pallas as pl
from jax.experimental.pallas import tpu as pltpu


# -----------------------------------------------------------------------------
# VMEM-budgeted vocab-tile selection (generation aware: v5e/v6e 128 MiB,
# v7x 64 MiB).
# -----------------------------------------------------------------------------
def _pick_vocab_tile(D, V, G, T_m, T_tot, T_p):
    try:
        vmem_cap = int(getattr(pltpu.get_tpu_info(), "vmem_capacity_bytes", 64 << 20))
    except Exception:  # off-TPU tracing / older API: assume the smallest (v7x)
        vmem_cap = 64 << 20
    vmem_cap = max(vmem_cap, 16 << 20)
    budget = int(vmem_cap * 0.70)          # headroom for regalloc / internal scratch

    rows = G * T_m
    fixed = 4 * D * D * 2                  # wq/wk/wv/wo bf16, single-buffered
    fixed += G * T_tot * D * 4             # x_all f32
    fixed += rows * D * 4                  # label-embedding rows f32
    fixed += G * T_p * D * 4               # collaborative embeds f32
    fixed += 2 * rows * D * 4              # hidden-state output (double-buffered)
    fixed += rows * D * (4 + 2)            # h (f32) + h_bf (bf16) scratch
    fixed += 4 << 20                       # mask / active / stats / misc slack

    # Per unit of tv: w_embed^T tile (bf16, double-buffered) + bf16 logits out
    # (double-buffered).
    per_tv = 2 * (D * 2) + 2 * (rows * 2)
    tv_cap = (budget - fixed) // max(per_tv, 1)
    tv_cap = int(max(128, min(tv_cap, 4096, V)))

    if V % 128 != 0:
        # TODO(synk): pad ragged vocab sizes up to a multiple of 128 instead.
        tv = V
    else:
        tv = 128
        for cand in range(256, tv_cap + 1, 128):
            if V % cand == 0:
                tv = cand

    vmem_limit = int(min(vmem_cap, 128 << 20) * 0.9)
    return tv, vmem_limit


# -----------------------------------------------------------------------------
# Fused kernel: attention (prompt KV -> main attention) for a batch group +
# tied lm_head tiled over vocab (batch folded into M) + online logsumexp +
# masked CE + MSE regularizer.
# grid = (batch_groups, vocab_tiles); groups "parallel", vocab tiles "arbitrary".
# -----------------------------------------------------------------------------
def fused_attention_lm_ce(x_all, mask3, collab, w_lab, active,
                          wq, wk, wv, wo, w_embed_t, *, B, T_p, T_m,
                          single_buffer=True):
    T_tot = T_p + T_m
    D = x_all.shape[1]
    V = w_embed_t.shape[1]

    # TODO(synk): pad ragged T_p / T_m / D to (8,128) multiples for general shapes.
    assert T_p % 8 == 0 and T_m % 8 == 0 and D % 128 == 0

    # Batch grouping: fold batch into the lm_head M axis.  Keep two groups
    # (v7x megacore) only if each group still fills the MXU (>= 256 rows).
    n_groups = 2 if (B % 2 == 0 and (B // 2) * T_m >= 256) else 1
    G = B // n_groups
    rows = G * T_m

    tv, vmem_limit = _pick_vocab_tile(D, V, G, T_m, T_tot, T_p)
    nv = V // tv if (tv != 0 and V % tv == 0) else 1
    scale = 1.0 / math.sqrt(D)

    def kernel(xall_ref, mask_ref, collab_ref, wlab_ref, act_ref,
               wq_ref, wk_ref, wv_ref, wo_ref, wet_ref,
               logits_ref, hid_ref, stats_ref,
               h_scr, hbf_scr, m_scr, l_scr):
        v_idx = pl.program_id(1)

        # ----- once per batch group (first vocab tile): attention + residual -----
        @pl.when(v_idx == 0)
        def _attend():
            # causal structure is identical for every batch element: hoist it.
            q_pos = lax.broadcasted_iota(jnp.int32, (T_m, T_tot), 0) + T_p
            k_pos = lax.broadcasted_iota(jnp.int32, (T_m, T_tot), 1)
            causal = k_pos <= q_pos
            # TODO(synk): for production sequence lengths, tile this over the KV
            # axis with an online softmax instead of one [T_m, T_tot] block.
            for g in range(G):                       # static unroll, G is small
                r0 = g * T_tot
                x_f = xall_ref[pl.ds(r0, T_tot), :]  # [T_tot, D] f32
                xm_f = x_f[T_p:, :]                  # f32 residual path
                x_bf = x_f.astype(jnp.bfloat16)

                # prompt K/V (== past_key_values) and main K/V in one dot each
                k = jnp.dot(x_bf, wk_ref[...], preferred_element_type=jnp.float32)
                vv = jnp.dot(x_bf, wv_ref[...], preferred_element_type=jnp.float32)
                q = jnp.dot(xm_f.astype(jnp.bfloat16), wq_ref[...],
                            preferred_element_type=jnp.float32)

                scores = lax.dot_general(
                    q.astype(jnp.bfloat16), k.astype(jnp.bfloat16),
                    (((1,), (1,)), ((), ())),
                    preferred_element_type=jnp.float32) * scale

                allowed = causal & (mask_ref[g] > 0.5)
                scores = jnp.where(allowed, scores, -1e30)

                mx = jnp.max(scores, axis=-1, keepdims=True)
                p = jnp.exp(scores - mx)
                p = p / jnp.sum(p, axis=-1, keepdims=True)   # exact reciprocal

                ctx = jnp.dot(p.astype(jnp.bfloat16), vv.astype(jnp.bfloat16),
                              preferred_element_type=jnp.float32)
                attn = jnp.dot(ctx.astype(jnp.bfloat16), wo_ref[...],
                               preferred_element_type=jnp.float32)
                h_g = xm_f + attn                             # last_hidden_state rows
                hr0 = g * T_m
                h_scr[pl.ds(hr0, T_m), :] = h_g
                hbf_scr[pl.ds(hr0, T_m), :] = h_g.astype(jnp.bfloat16)
                hid_ref[pl.ds(hr0, T_m), :] = h_g

            m_scr[...] = jnp.full((rows, 1), -1e30, jnp.float32)
            l_scr[...] = jnp.zeros((rows, 1), jnp.float32)

        # ----- every (group, vocab tile): tied lm_head tile + online logsumexp -----
        logits_tile = jnp.dot(hbf_scr[...], wet_ref[...],
                              preferred_element_type=jnp.float32)   # [rows, tv] f32
        logits_ref[...] = logits_tile.astype(logits_ref.dtype)       # bf16, written once

        m_prev = m_scr[...]
        m_new = jnp.maximum(m_prev, jnp.max(logits_tile, axis=-1, keepdims=True))
        l_scr[...] = (l_scr[...] * jnp.exp(m_prev - m_new)
                      + jnp.sum(jnp.exp(logits_tile - m_new), axis=-1, keepdims=True))
        m_scr[...] = m_new

        # ----- last vocab tile: masked CE + regularizer, per-group partial sums -----
        @pl.when(v_idx == nv - 1)
        def _finalize():
            lse = m_scr[...] + jnp.log(l_scr[...])                    # [rows, 1] f32
            # NOTE: label_logit is the f32 h . w_label dot while lse comes from
            # bf16-operand logits; the asymmetry is O(bf16 eps * |logit|).
            label_logit = jnp.sum(h_scr[...] * wlab_ref[...], axis=-1, keepdims=True)
            act = act_ref[...]                                        # [rows, 1]
            ce_sum = jnp.sum((lse - label_logit) * act)
            cnt = jnp.sum(act)

            reg = jnp.float32(0.0)
            for g in range(G):
                xp = xall_ref[pl.ds(g * T_tot, T_p), :]               # f32 prompt embeds
                cb = collab_ref[pl.ds(g * T_p, T_p), :]
                dd = xp - cb
                reg = reg + jnp.sum(dd * dd)

            lane = lax.broadcasted_iota(jnp.int32, (1, 128), 1)
            stats_ref[0] = (jnp.where(lane == 0, ce_sum, 0.0)
                            + jnp.where(lane == 1, cnt, 0.0)
                            + jnp.where(lane == 2, reg, 0.0))

    # Constant-along-vocab inputs get single buffering (their block index never
    # changes along the inner grid axis), freeing VMEM for a bigger vocab tile.
    if single_buffer:
        def const_spec(shape, imap):
            return pl.BlockSpec(shape, imap, pipeline_mode=pl.Buffered(1))
    else:
        def const_spec(shape, imap):
            return pl.BlockSpec(shape, imap)

    logits, hidden, stats = pl.pallas_call(
        kernel,
        out_shape=(jax.ShapeDtypeStruct((B * T_m, V), jnp.bfloat16),
                   jax.ShapeDtypeStruct((B * T_m, D), jnp.float32),
                   jax.ShapeDtypeStruct((n_groups, 1, 128), jnp.float32)),
        grid_spec=pltpu.PrefetchScalarGridSpec(
            num_scalar_prefetch=0,
            grid=(n_groups, nv),
            in_specs=[
                const_spec((G * T_tot, D), lambda g, v: (g, 0)),       # x_all (f32)
                const_spec((G, 1, T_tot), lambda g, v: (g, 0, 0)),     # attention mask
                const_spec((G * T_p, D), lambda g, v: (g, 0)),         # collaborative embeds
                const_spec((G * T_m, D), lambda g, v: (g, 0)),         # label embedding rows
                const_spec((G * T_m, 1), lambda g, v: (g, 0)),         # active-token mask
                const_spec((D, D), lambda g, v: (0, 0)),               # wq (bf16)
                const_spec((D, D), lambda g, v: (0, 0)),               # wk (bf16)
                const_spec((D, D), lambda g, v: (0, 0)),               # wv (bf16)
                const_spec((D, D), lambda g, v: (0, 0)),               # wo (bf16)
                pl.BlockSpec((D, tv), lambda g, v: (0, v)),            # w_embed^T tile (bf16)
            ],
            out_specs=[
                pl.BlockSpec((G * T_m, tv), lambda g, v: (g, v)),      # logits (bf16, tiled)
                pl.BlockSpec((G * T_m, D), lambda g, v: (g, 0)),       # last hidden state
                pl.BlockSpec((1, 1, 128), lambda g, v: (g, 0, 0)),     # [ce_sum, cnt, reg]
            ],
            scratch_shapes=[pltpu.VMEM((rows, D), jnp.float32),        # h (f32)
                            pltpu.VMEM((rows, D), jnp.bfloat16),       # h (bf16, cached once)
                            pltpu.VMEM((rows, 1), jnp.float32),        # running max
                            pltpu.VMEM((rows, 1), jnp.float32)],       # running sumexp
        ),
        compiler_params=pltpu.CompilerParams(
            dimension_semantics=("parallel", "arbitrary"),
            vmem_limit_bytes=vmem_limit),
    )(x_all, mask3, collab, w_lab, active, wq, wk, wv, wo, w_embed_t)
    return logits, hidden, stats


# -----------------------------------------------------------------------------
# Module wrapper (glue: parameters, embedding gather, label-row gather, shifting,
# final scalar mean / regularizer scaling).
# -----------------------------------------------------------------------------
class ContentGPTForUserItemWithLMHeadBatch:
    def __init__(self, key, vocab_size, embedding_dim):
        ks = jax.random.split(key, 5)
        scale = 0.02
        self.vocab_size = vocab_size
        self.embedding_dim = embedding_dim
        # tied embedding / lm_head weight: [vocab, dim] (f32 master)
        self.w_embed = scale * jax.random.normal(ks[0], (vocab_size, embedding_dim), jnp.float32)
        self.wq = scale * jax.random.normal(ks[1], (embedding_dim, embedding_dim), jnp.float32)
        self.wk = scale * jax.random.normal(ks[2], (embedding_dim, embedding_dim), jnp.float32)
        self.wv = scale * jax.random.normal(ks[3], (embedding_dim, embedding_dim), jnp.float32)
        self.wo = scale * jax.random.normal(ks[4], (embedding_dim, embedding_dim), jnp.float32)
        # bf16 copies fed to the MXU; lm_head weight pre-transposed to [dim, vocab]
        self.wq_bf = self.wq.astype(jnp.bfloat16)
        self.wk_bf = self.wk.astype(jnp.bfloat16)
        self.wv_bf = self.wv.astype(jnp.bfloat16)
        self.wo_bf = self.wo.astype(jnp.bfloat16)
        self.w_embed_t_bf = self.w_embed.T.astype(jnp.bfloat16)

    def embed(self, ids):
        return jnp.take(self.w_embed, ids, axis=0)

    def __call__(self, input_ids_prompt, input_ids_main, labels_main=None,
                 attention_mask=None, regularize=False, lambda_V=None,
                 collaborative_embeds=None):
        B, T_p = input_ids_prompt.shape
        T_m = input_ids_main.shape[1]
        T_tot = T_p + T_m
        D = self.embedding_dim
        V = self.vocab_size

        x_p = self.embed(input_ids_prompt)                 # [B, T_p, D]
        x_m = self.embed(input_ids_main)                   # [B, T_m, D]
        x_all = jnp.concatenate([x_p, x_m], axis=1).reshape(B * T_tot, D)

        if attention_mask is None:
            attention_mask = jnp.ones((B, T_tot), jnp.int32)
        mask3 = attention_mask.astype(jnp.float32).reshape(B, 1, T_tot)

        if labels_main is not None:
            # Gather the label embedding rows (shifted) so the kernel computes the
            # label logit as a D-length dot instead of a [B,T,V] one-hot pass.
            lab = labels_main[:, 1:].astype(jnp.int32)                       # [B, T_m-1]
            w_lab = jnp.take(self.w_embed, lab, axis=0)                      # [B, T_m-1, D]
            w_lab = jnp.concatenate([w_lab, jnp.zeros((B, 1, D), w_lab.dtype)], axis=1)
            act = (attention_mask[:, T_p + 1:] == 1).astype(jnp.float32)     # [B, T_m-1]
            act = jnp.concatenate([act, jnp.zeros((B, 1), jnp.float32)], axis=1)
        else:
            w_lab = jnp.zeros((B, T_m, D), jnp.float32)
            act = jnp.zeros((B, T_m), jnp.float32)
        w_lab = w_lab.reshape(B * T_m, D)
        act = act.reshape(B * T_m, 1)

        if regularize and collaborative_embeds is not None:
            collab = collaborative_embeds.astype(jnp.float32).reshape(B * T_p, D)
        else:
            collab = jnp.zeros((B * T_p, D), jnp.float32)

        args = (x_all, mask3, collab, w_lab, act,
                self.wq_bf, self.wk_bf, self.wv_bf, self.wo_bf, self.w_embed_t_bf)
        try:
            lm_logits, last_hidden, stats = fused_attention_lm_ce(
                *args, B=B, T_p=T_p, T_m=T_m, single_buffer=True)
        except Exception:
            # Fallback if this JAX build rejects pipeline_mode=pl.Buffered(1).
            lm_logits, last_hidden, stats = fused_attention_lm_ce(
                *args, B=B, T_p=T_p, T_m=T_m, single_buffer=False)

        lm_logits = lm_logits.reshape(B, T_m, V)
        last_hidden = last_hidden.reshape(B, T_m, D)

        # TODO(synk): the real module also forwards past_key_values / attentions in
        # `outputs_main[1:]`; only logits and last_hidden_state are exposed here.
        outputs = (lm_logits, last_hidden)

        if labels_main is not None:
            loss_sum = jnp.sum(stats[:, 0, 0])
            cnt = jnp.sum(stats[:, 0, 1])
            loss = loss_sum / jnp.maximum(cnt, 1.0)        # guard against all-padded batch
            if regularize:
                regularize_loss = lambda_V * jnp.sum(stats[:, 0, 2])
                loss = loss + regularize_loss
                outputs = (loss, regularize_loss) + outputs
            else:
                outputs = (loss,) + outputs
        return outputs


# -----------------------------------------------------------------------------
# Pure-JAX reference for verification (f32, HIGHEST precision).
# -----------------------------------------------------------------------------
def reference_forward(model, ids_p, ids_m, labels, mask, lambda_V, collab):
    HI = lax.Precision.HIGHEST
    W = model.w_embed
    x_p = W[ids_p]
    x_m = W[ids_m]
    T_p, T_m = ids_p.shape[1], ids_m.shape[1]
    T_tot = T_p + T_m
    D = W.shape[1]

    def proj(x, w):
        return jnp.einsum('btd,de->bte', x, w, precision=HI)

    k = jnp.concatenate([proj(x_p, model.wk), proj(x_m, model.wk)], axis=1)
    v = jnp.concatenate([proj(x_p, model.wv), proj(x_m, model.wv)], axis=1)
    q = proj(x_m, model.wq)

    scores = jnp.einsum('bqd,bkd->bqk', q, k, precision=HI) / math.sqrt(D)
    q_pos = jnp.arange(T_m)[:, None] + T_p
    k_pos = jnp.arange(T_tot)[None, :]
    allowed = (k_pos <= q_pos)[None] & (mask[:, None, :] > 0)
    scores = jnp.where(allowed, scores, -1e30)
    p = jax.nn.softmax(scores, axis=-1)
    ctx = jnp.einsum('bqk,bkd->bqd', p, v, precision=HI)
    h = x_m + jnp.einsum('btd,de->bte', ctx, model.wo, precision=HI)
    logits = jnp.einsum('btd,vd->btv', h, W, precision=HI)

    shift_logits = logits[:, :-1, :]
    shift_labels = labels[:, 1:]
    active = (mask[:, T_p + 1:] == 1).astype(jnp.float32)
    logp = jax.nn.log_softmax(shift_logits, axis=-1)
    tok_loss = -jnp.take_along_axis(logp, shift_labels[..., None], axis=-1)[..., 0]
    ce = jnp.sum(tok_loss * active) / jnp.sum(active)
    reg = lambda_V * jnp.sum((x_p - collab) ** 2)
    return ce + reg, reg, logits


if __name__ == "__main__":
    B, T_p, T_m, D, V = 2, 8, 8, 128, 512
    lambda_V = 0.5

    root = jax.random.PRNGKey(0)
    k_model, k_ids_p, k_ids_m, k_collab = jax.random.split(root, 4)

    model = ContentGPTForUserItemWithLMHeadBatch(k_model, vocab_size=V, embedding_dim=D)

    input_ids_prompt = jax.random.randint(k_ids_p, (B, T_p), 0, V, dtype=jnp.int32)
    input_ids_main = jax.random.randint(k_ids_m, (B, T_m), 0, V, dtype=jnp.int32)
    labels_main = input_ids_main
    attention_mask = jnp.ones((B, T_p + T_m), dtype=jnp.int32)
    attention_mask = attention_mask.at[0, -2:].set(0)   # pad out two main tokens in batch 0
    collaborative_embeds = 0.02 * jax.random.normal(k_collab, (B, T_p, D), jnp.float32)

    loss, reg_loss, lm_logits, last_hidden = model(
        input_ids_prompt, input_ids_main,
        labels_main=labels_main, attention_mask=attention_mask,
        regularize=True, lambda_V=lambda_V,
        collaborative_embeds=collaborative_embeds)
    jax.block_until_ready(loss)

    ref_loss, ref_reg, ref_logits = reference_forward(
        model, input_ids_prompt, input_ids_main, labels_main, attention_mask,
        lambda_V, collaborative_embeds)

    assert jnp.allclose(loss, ref_loss, rtol=2e-3, atol=2e-3), (loss, ref_loss)
    assert jnp.allclose(reg_loss, ref_reg, rtol=2e-3, atol=2e-3), (reg_loss, ref_reg)
    assert jnp.max(jnp.abs(lm_logits.astype(jnp.float32) - ref_logits)) < 1e-2

    print("KERNEL_OK")
</pallas_src>

<mosaic_0001>
module attributes {stable_mosaic.version = 11 : i64} {
  func.func @kernel(%arg0: i32, %arg1: i32, %arg2: memref<32x128xf32, #tpu.memory_space<vmem>>, %arg3: memref<2x1x16xf32, #tpu.memory_space<vmem>>, %arg4: memref<16x128xf32, #tpu.memory_space<vmem>>, %arg5: memref<16x128xf32, #tpu.memory_space<vmem>>, %arg6: memref<16x1xf32, #tpu.memory_space<vmem>>, %arg7: memref<128x128xbf16, #tpu.memory_space<vmem>>, %arg8: memref<128x128xbf16, #tpu.memory_space<vmem>>, %arg9: memref<128x128xbf16, #tpu.memory_space<vmem>>, %arg10: memref<128x128xbf16, #tpu.memory_space<vmem>>, %arg11: memref<128x512xbf16, #tpu.memory_space<vmem>>, %arg12: memref<16x512xbf16, #tpu.memory_space<vmem>>, %arg13: memref<16x128xf32, #tpu.memory_space<vmem>>, %arg14: memref<1x1x128xf32, #tpu.memory_space<vmem>>, %arg15: memref<16x128xf32, #tpu.memory_space<vmem>>, %arg16: memref<16x128xbf16, #tpu.memory_space<vmem>>, %arg17: memref<16x1xf32, #tpu.memory_space<vmem>>, %arg18: memref<16x1xf32, #tpu.memory_space<vmem>>) attributes {dimension_semantics = [#tpu.dimension_semantics<parallel>, #tpu.dimension_semantics<arbitrary>], iteration_bounds = array<i64: 1, 1>, scalar_prefetch = 0 : i64, scratch_operands = 4 : i64, tpu.core_type = #tpu.core_type<tc>, window_params = [{pipeline_mode = #tpu.pipeline_mode<synchronous>, transform_indices = @transform_0, window_bounds = array<i64: 32, 128>}, {pipeline_mode = #tpu.pipeline_mode<synchronous>, transform_indices = @transform_1, window_bounds = array<i64: 2, 1, 16>}, {pipeline_mode = #tpu.pipeline_mode<synchronous>, transform_indices = @transform_2, window_bounds = array<i64: 16, 128>}, {pipeline_mode = #tpu.pipeline_mode<synchronous>, transform_indices = @transform_3, window_bounds = array<i64: 16, 128>}, {pipeline_mode = #tpu.pipeline_mode<synchronous>, transform_indices = @transform_4, window_bounds = array<i64: 16, 1>}, {pipeline_mode = #tpu.pipeline_mode<synchronous>, transform_indices = @transform_5, window_bounds = array<i64: 128, 128>}, {pipeline_mode = #tpu.pipeline_mode<synchronous>, transform_indices = @transform_6, window_bounds = array<i64: 128, 128>}, {pipeline_mode = #tpu.pipeline_mode<synchronous>, transform_indices = @transform_7, window_bounds = array<i64: 128, 128>}, {pipeline_mode = #tpu.pipeline_mode<synchronous>, transform_indices = @transform_8, window_bounds = array<i64: 128, 128>}, {transform_indices = @transform_9, window_bounds = array<i64: 128, 512>}, {transform_indices = @transform_10, window_bounds = array<i64: 16, 512>}, {transform_indices = @transform_11, window_bounds = array<i64: 16, 128>}, {transform_indices = @transform_12, window_bounds = array<i64: 1, 1, 128>}]} {
    %c0_i32 = arith.constant 0 : i32
    %0 = arith.cmpi eq, %arg1, %c0_i32 : i32
    %1 = arith.extui %0 : i1 to i32
    %c0_i32_0 = arith.constant 0 : i32
    %2 = arith.cmpi ne, %1, %c0_i32_0 : i32
    scf.if %2 {
      %27 = tpu.iota {dimensions = array<i32: 0>} : vector<8x16xi32>
      %c8_i32 = arith.constant 8 : i32
      %28 = vector.broadcast %c8_i32 : i32 to vector<8x16xi32>
      %29 = arith.addi %27, %28 : vector<8x16xi32>
      %30 = tpu.iota {dimensions = array<i32: 1>} : vector<8x16xi32>
      %31 = arith.cmpi sle, %30, %29 : vector<8x16xi32>
      %c0_18 = arith.constant 0 : index
      %c0_19 = arith.constant 0 : index
      %32 = vector.load %arg2[%c0_18, %c0_19] : memref<32x128xf32, #tpu.memory_space<vmem>>, vector<16x128xf32>
      %33 = vector.extract_strided_slice %32 {offsets = [8, 0], sizes = [8, 128], strides = [1, 1]} : vector<16x128xf32> to vector<8x128xf32>
      %34 = arith.truncf %32 : vector<16x128xf32> to vector<16x128xbf16>
      %c0_20 = arith.constant 0 : index
      %c0_21 = arith.constant 0 : index
      %35 = vector.load %arg8[%c0_20, %c0_21] : memref<128x128xbf16, #tpu.memory_space<vmem>>, vector<128x128xbf16>
      %cst_22 = arith.constant dense<0.000000e+00> : vector<16x128xf32>
      %36 = tpu.matmul %34, %35, %cst_22 {dimension_numbers = #tpu.dot_dimension_numbers<[1], [0], [0], [1], [0, 0, 1, 1], [], []>} : vector<16x128xbf16>, vector<128x128xbf16>, vector<16x128xf32> -> vector<16x128xf32>
      %c0_23 = arith.constant 0 : index
      %c0_24 = arith.constant 0 : index
      %37 = vector.load %arg9[%c0_23, %c0_24] : memref<128x128xbf16, #tpu.memory_space<vmem>>, vector<128x128xbf16>
      %cst_25 = arith.constant dense<0.000000e+00> : vector<16x128xf32>
      %38 = tpu.matmul %34, %37, %cst_25 {dimension_numbers = #tpu.dot_dimension_numbers<[1], [0], [0], [1], [0, 0, 1, 1], [], []>} : vector<16x128xbf16>, vector<128x128xbf16>, vector<16x128xf32> -> vector<16x128xf32>
      %39 = arith.truncf %33 : vector<8x128xf32> to vector<8x128xbf16>
      %c0_26 = arith.constant 0 : index
      %c0_27 = arith.constant 0 : index
      %40 = vector.load %arg7[%c0_26, %c0_27] : memref<128x128xbf16, #tpu.memory_space<vmem>>, vector<128x128xbf16>
      %cst_28 = arith.constant dense<0.000000e+00> : vector<8x128xf32>
      %41 = tpu.matmul %39, %40, %cst_28 {dimension_numbers = #tpu.dot_dimension_numbers<[1], [0], [0], [1], [0, 0, 1, 1], [], []>} : vector<8x128xbf16>, vector<128x128xbf16>, vector<8x128xf32> -> vector<8x128xf32>
      %42 = arith.truncf %41 : vector<8x128xf32> to vector<8x128xbf16>
      %43 = arith.truncf %36 : vector<16x128xf32> to vector<16x128xbf16>
      %cst_29 = arith.constant dense<0.000000e+00> : vector<8x16xf32>
      %44 = tpu.matmul %42, %43, %cst_29 {dimension_numbers = #tpu.dot_dimension_numbers<[1], [1], [0], [0], [0, 0, 1, 0], [], []>} : vector<8x128xbf16>, vector<16x128xbf16>, vector<8x16xf32> -> vector<8x16xf32>
      %cst_30 = arith.constant 0.0883883461 : f32
      %45 = vector.broadcast %cst_30 : f32 to vector<8x16xf32>
      %46 = arith.mulf %44, %45 : vector<8x16xf32>
      %c0_31 = arith.constant 0 : index
      %c0_32 = arith.constant 0 : index
      %c0_33 = arith.constant 0 : index
      %47 = vector.load %arg3[%c0_31, %c0_32, %c0_33] : memref<2x1x16xf32, #tpu.memory_space<vmem>>, vector<1x1x16xf32>
      %48 = vector.shape_cast %47 : vector<1x1x16xf32> to vector<1x16xf32>
      %cst_34 = arith.constant 5.000000e-01 : f32
      %49 = vector.broadcast %cst_34 : f32 to vector<1x16xf32>
      %50 = arith.cmpf ogt, %48, %49 : vector<1x16xf32>
      %51 = vector.broadcast %50 : vector<1x16xi1> to vector<8x16xi1>
      %52 = arith.andi %31, %51 : vector<8x16xi1>
      %cst_35 = arith.constant -1.000000e+30 : f32
      %53 = vector.broadcast %cst_35 : f32 to vector<8x16xf32>
      %54 = arith.select %52, %46, %53 : vector<8x16xi1>, vector<8x16xf32>
      %cst_36 = arith.constant dense<0xFF800000> : vector<8xf32>
      %55 = vector.multi_reduction <maximumf>, %54, %cst_36 [1] : vector<8x16xf32> to vector<8xf32>
      %56 = vector.shape_cast %55 : vector<8xf32> to vector<8x1xf32>
      %57 = vector.broadcast %56 : vector<8x1xf32> to vector<8x16xf32>
      %58 = arith.subf %54, %57 : vector<8x16xf32>
      %59 = math.exp %58 : vector<8x16xf32>
      %cst_37 = arith.constant dense<0.000000e+00> : vector<8xf32>
      %60 = vector.multi_reduction <add>, %59, %cst_37 [1] : vector<8x16xf32> to vector<8xf32>
      %61 = vector.shape_cast %60 : vector<8xf32> to vector<8x1xf32>
      %62 = vector.broadcast %61 : vector<8x1xf32> to vector<8x16xf32>
      %63 = arith.divf %59, %62 : vector<8x16xf32>
      %64 = arith.truncf %63 : vector<8x16xf32> to vector<8x16xbf16>
      %65 = arith.truncf %38 : vector<16x128xf32> to vector<16x128xbf16>
      %cst_38 = arith.constant dense<0.000000e+00> : vector<8x128xf32>
      %66 = tpu.matmul %64, %65, %cst_38 {dimension_numbers = #tpu.dot_dimension_numbers<[1], [0], [0], [1], [0, 0, 1, 1], [], []>} : vector<8x16xbf16>, vector<16x128xbf16>, vector<8x128xf32> -> vector<8x128xf32>
      %67 = arith.truncf %66 : vector<8x128xf32> to vector<8x128xbf16>
      %c0_39 = arith.constant 0 : index
      %c0_40 = arith.constant 0 : index
      %68 = vector.load %arg10[%c0_39, %c0_40] : memref<128x128xbf16, #tpu.memory_space<vmem>>, vector<128x128xbf16>
      %cst_41 = arith.constant dense<0.000000e+00> : vector<8x128xf32>
      %69 = tpu.matmul %67, %68, %cst_41 {dimension_numbers = #tpu.dot_dimension_numbers<[1], [0], [0], [1], [0, 0, 1, 1], [], []>} : vector<8x128xbf16>, vector<128x128xbf16>, vector<8x128xf32> -> vector<8x128xf32>
      %70 = arith.addf %33, %69 : vector<8x128xf32>
      %c0_42 = arith.constant 0 : index
      %c0_43 = arith.constant 0 : index
      %71 = vector.load %arg15[%c0_42, %c0_43] : memref<16x128xf32, #tpu.memory_space<vmem>>, vector<8x128xf32>
      tpu.vector_store %arg15[%c0_42, %c0_43], %70 {strides = array<i32>} : memref<16x128xf32, #tpu.memory_space<vmem>>, vector<8x128xf32>,
      %72 = arith.truncf %70 : vector<8x128xf32> to vector<8x128xbf16>
      %c0_44 = arith.constant 0 : index
      %c0_45 = arith.constant 0 : index
      %73 = vector.load %arg16[%c0_44, %c0_45] : memref<16x128xbf16, #tpu.memory_space<vmem>>, vector<8x128xbf16>
      tpu.vector_store %arg16[%c0_44, %c0_45], %72 {strides = array<i32>} : memref<16x128xbf16, #tpu.memory_space<vmem>>, vector<8x128xbf16>,
      %c0_46 = arith.constant 0 : index
      %c0_47 = arith.constant 0 : index
      %74 = vector.load %arg13[%c0_46, %c0_47] : memref<16x128xf32, #tpu.memory_space<vmem>>, vector<8x128xf32>
      tpu.vector_store %arg13[%c0_46, %c0_47], %70 {strides = array<i32>} : memref<16x128xf32, #tpu.memory_space<vmem>>, vector<8x128xf32>,
      %c16 = arith.constant 16 : index
      %c0_48 = arith.constant 0 : index
      %75 = vector.load %arg2[%c16, %c0_48] : memref<32x128xf32, #tpu.memory_space<vmem>>, vector<16x128xf32>
      %76 = vector.extract_strided_slice %75 {offsets = [8, 0], sizes = [8, 128], strides = [1, 1]} : vector<16x128xf32> to vector<8x128xf32>
      %77 = arith.truncf %75 : vector<16x128xf32> to vector<16x128xbf16>
      %c0_49 = arith.constant 0 : index
      %c0_50 = arith.constant 0 : index
      %78 = vector.load %arg8[%c0_49, %c0_50] : memref<128x128xbf16, #tpu.memory_space<vmem>>, vector<128x128xbf16>
      %cst_51 = arith.constant dense<0.000000e+00> : vector<16x128xf32>
      %79 = tpu.matmul %77, %78, %cst_51 {dimension_numbers = #tpu.dot_dimension_numbers<[1], [0], [0], [1], [0, 0, 1, 1], [], []>} : vector<16x128xbf16>, vector<128x128xbf16>, vector<16x128xf32> -> vector<16x128xf32>
      %c0_52 = arith.constant 0 : index
      %c0_53 = arith.constant 0 : index
      %80 = vector.load %arg9[%c0_52, %c0_53] : memref<128x128xbf16, #tpu.memory_space<vmem>>, vector<128x128xbf16>
      %cst_54 = arith.constant dense<0.000000e+00> : vector<16x128xf32>
      %81 = tpu.matmul %77, %80, %cst_54 {dimension_numbers = #tpu.dot_dimension_numbers<[1], [0], [0], [1], [0, 0, 1, 1], [], []>} : vector<16x128xbf16>, vector<128x128xbf16>, vector<16x128xf32> -> vector<16x128xf32>
      %82 = arith.truncf %76 : vector<8x128xf32> to vector<8x128xbf16>
      %c0_55 = arith.constant 0 : index
      %c0_56 = arith.constant 0 : index
      %83 = vector.load %arg7[%c0_55, %c0_56] : memref<128x128xbf16, #tpu.memory_space<vmem>>, vector<128x128xbf16>
      %cst_57 = arith.constant dense<0.000000e+00> : vector<8x128xf32>
      %84 = tpu.matmul %82, %83, %cst_57 {dimension_numbers = #tpu.dot_dimension_numbers<[1], [0], [0], [1], [0, 0, 1, 1], [], []>} : vector<8x128xbf16>, vector<128x128xbf16>, vector<8x128xf32> -> vector<8x128xf32>
      %85 = arith.truncf %84 : vector<8x128xf32> to vector<8x128xbf16>
      %86 = arith.truncf %79 : vector<16x128xf32> to vector<16x128xbf16>
      %cst_58 = arith.constant dense<0.000000e+00> : vector<8x16xf32>
      %87 = tpu.matmul %85, %86, %cst_58 {dimension_numbers = #tpu.dot_dimension_numbers<[1], [1], [0], [0], [0, 0, 1, 0], [], []>} : vector<8x128xbf16>, vector<16x128xbf16>, vector<8x16xf32> -> vector<8x16xf32>
      %cst_59 = arith.constant 0.0883883461 : f32
      %88 = vector.broadcast %cst_59 : f32 to vector<8x16xf32>
      %89 = arith.mulf %87, %88 : vector<8x16xf32>
      %c1 = arith.constant 1 : index
      %c0_60 = arith.constant 0 : index
      %c0_61 = arith.constant 0 : index
      %90 = vector.load %arg3[%c1, %c0_60, %c0_61] : memref<2x1x16xf32, #tpu.memory_space<vmem>>, vector<1x1x16xf32>
      %91 = vector.shape_cast %90 : vector<1x1x16xf32> to vector<1x16xf32>
      %cst_62 = arith.constant 5.000000e-01 : f32
      %92 = vector.broadcast %cst_62 : f32 to vector<1x16xf32>
      %93 = arith.cmpf ogt, %91, %92 : vector<1x16xf32>
      %94 = vector.broadcast %93 : vector<1x16xi1> to vector<8x16xi1>
      %95 = arith.andi %31, %94 : vector<8x16xi1>
      %cst_63 = arith.constant -1.000000e+30 : f32
      %96 = vector.broadcast %cst_63 : f32 to vector<8x16xf32>
      %97 = arith.select %95, %89, %96 : vector<8x16xi1>, vector<8x16xf32>
      %cst_64 = arith.constant dense<0xFF800000> : vector<8xf32>
      %98 = vector.multi_reduction <maximumf>, %97, %cst_64 [1] : vector<8x16xf32> to vector<8xf32>
      %99 = vector.shape_cast %98 : vector<8xf32> to vector<8x1xf32>
      %100 = vector.broadcast %99 : vector<8x1xf32> to vector<8x16xf32>
      %101 = arith.subf %97, %100 : vector<8x16xf32>
      %102 = math.exp %101 : vector<8x16xf32>
      %cst_65 = arith.constant dense<0.000000e+00> : vector<8xf32>
      %103 = vector.multi_reduction <add>, %102, %cst_65 [1] : vector<8x16xf32> to vector<8xf32>
      %104 = vector.shape_cast %103 : vector<8xf32> to vector<8x1xf32>
      %105 = vector.broadcast %104 : vector<8x1xf32> to vector<8x16xf32>
      %106 = arith.divf %102, %105 : vector<8x16xf32>
      %107 = arith.truncf %106 : vector<8x16xf32> to vector<8x16xbf16>
      %108 = arith.truncf %81 : vector<16x128xf32> to vector<16x128xbf16>
      %cst_66 = arith.constant dense<0.000000e+00> : vector<8x128xf32>
      %109 = tpu.matmul %107, %108, %cst_66 {dimension_numbers = #tpu.dot_dimension_numbers<[1], [0], [0], [1], [0, 0, 1, 1], [], []>} : vector<8x16xbf16>, vector<16x128xbf16>, vector<8x128xf32> -> vector<8x128xf32>
      %110 = arith.truncf %109 : vector<8x128xf32> to vector<8x128xbf16>
      %c0_67 = arith.constant 0 : index
      %c0_68 = arith.constant 0 : index
      %111 = vector.load %arg10[%c0_67, %c0_68] : memref<128x128xbf16, #tpu.memory_space<vmem>>, vector<128x128xbf16>
      %cst_69 = arith.constant dense<0.000000e+00> : vector<8x128xf32>
      %112 = tpu.matmul %110, %111, %cst_69 {dimension_numbers = #tpu.dot_dimension_numbers<[1], [0], [0], [1], [0, 0, 1, 1], [], []>} : vector<8x128xbf16>, vector<128x128xbf16>, vector<8x128xf32> -> vector<8x128xf32>
      %113 = arith.addf %76, %112 : vector<8x128xf32>
      %c8 = arith.constant 8 : index
      %c0_70 = arith.constant 0 : index
      %114 = vector.load %arg15[%c8, %c0_70] : memref<16x128xf32, #tpu.memory_space<vmem>>, vector<8x128xf32>
      tpu.vector_store %arg15[%c8, %c0_70], %113 {strides = array<i32>} : memref<16x128xf32, #tpu.memory_space<vmem>>, vector<8x128xf32>,
      %115 = arith.truncf %113 : vector<8x128xf32> to vector<8x128xbf16>
      %c8_71 = arith.constant 8 : index
      %c0_72 = arith.constant 0 : index
      %116 = vector.load %arg16[%c8_71, %c0_72] : memref<16x128xbf16, #tpu.memory_space<vmem>>, vector<8x128xbf16>
      tpu.vector_store %arg16[%c8_71, %c0_72], %115 {strides = array<i32>} : memref<16x128xbf16, #tpu.memory_space<vmem>>, vector<8x128xbf16>,
      %c8_73 = arith.constant 8 : index
      %c0_74 = arith.constant 0 : index
      %117 = vector.load %arg13[%c8_73, %c0_74] : memref<16x128xf32, #tpu.memory_space<vmem>>, vector<8x128xf32>
      tpu.vector_store %arg13[%c8_73, %c0_74], %113 {strides = array<i32>} : memref<16x128xf32, #tpu.memory_space<vmem>>, vector<8x128xf32>,
      %cst_75 = arith.constant -1.000000e+30 : f32
      %118 = vector.broadcast %cst_75 : f32 to vector<16x1xf32>
      %c0_76 = arith.constant 0 : index
      %c0_77 = arith.constant 0 : index
      %119 = vector.load %arg17[%c0_76, %c0_77] : memref<16x1xf32, #tpu.memory_space<vmem>>, vector<16x1xf32>
      tpu.vector_store %arg17[%c0_76, %c0_77], %118 {strides = array<i32>} : memref<16x1xf32, #tpu.memory_space<vmem>>, vector<16x1xf32>,
      %cst_78 = arith.constant 0.000000e+00 : f32
      %120 = vector.broadcast %cst_78 : f32 to vector<16x1xf32>
      %c0_79 = arith.constant 0 : index
      %c0_80 = arith.constant 0 : index
      %121 = vector.load %arg18[%c0_79, %c0_80] : memref<16x1xf32, #tpu.memory_space<vmem>>, vector<16x1xf32>
      tpu.vector_store %arg18[%c0_79, %c0_80], %120 {strides = array<i32>} : memref<16x1xf32, #tpu.memory_space<vmem>>, vector<16x1xf32>,
    } else {
    }
    %c0 = arith.constant 0 : index
    %c0_1 = arith.constant 0 : index
    %3 = vector.load %arg16[%c0, %c0_1] : memref<16x128xbf16, #tpu.memory_space<vmem>>, vector<16x128xbf16>
    %c0_2 = arith.constant 0 : index
    %c0_3 = arith.constant 0 : index
    %4 = vector.load %arg11[%c0_2, %c0_3] : memref<128x512xbf16, #tpu.memory_space<vmem>>, vector<128x512xbf16>
    %cst = arith.constant dense<0.000000e+00> : vector<16x512xf32>
    %5 = tpu.matmul %3, %4, %cst {dimension_numbers = #tpu.dot_dimension_numbers<[1], [0], [0], [1], [0, 0, 1, 1], [], []>} : vector<16x128xbf16>, vector<128x512xbf16>, vector<16x512xf32> -> vector<16x512xf32>
    %6 = arith.truncf %5 : vector<16x512xf32> to vector<16x512xbf16>
    %c0_4 = arith.constant 0 : index
    %c0_5 = arith.constant 0 : index
    %7 = vector.load %arg12[%c0_4, %c0_5] : memref<16x512xbf16, #tpu.memory_space<vmem>>, vector<16x512xbf16>
    tpu.vector_store %arg12[%c0_4, %c0_5], %6 {strides = array<i32>} : memref<16x512xbf16, #tpu.memory_space<vmem>>, vector<16x512xbf16>,
    %c0_6 = arith.constant 0 : index
    %c0_7 = arith.constant 0 : index
    %8 = vector.load %arg17[%c0_6, %c0_7] : memref<16x1xf32, #tpu.memory_space<vmem>>, vector<16x1xf32>
    %cst_8 = arith.constant dense<0xFF800000> : vector<16xf32>
    %9 = vector.multi_reduction <maximumf>, %5, %cst_8 [1] : vector<16x512xf32> to vector<16xf32>
    %10 = vector.shape_cast %9 : vector<16xf32> to vector<16x1xf32>
    %11 = arith.maximumf %8, %10 : vector<16x1xf32>
    %c0_9 = arith.constant 0 : index
    %c0_10 = arith.constant 0 : index
    %12 = vector.load %arg18[%c0_9, %c0_10] : memref<16x1xf32, #tpu.memory_space<vmem>>, vector<16x1xf32>
    %13 = arith.subf %8, %11 : vector<16x1xf32>
    %14 = math.exp %13 : vector<16x1xf32>
    %15 = arith.mulf %12, %14 : vector<16x1xf32>
    %16 = vector.broadcast %11 : vector<16x1xf32> to vector<16x512xf32>
    %17 = arith.subf %5, %16 : vector<16x512xf32>
    %18 = math.exp %17 : vector<16x512xf32>
    %cst_11 = arith.constant dense<0.000000e+00> : vector<16xf32>
    %19 = vector.multi_reduction <add>, %18, %cst_11 [1] : vector<16x512xf32> to vector<16xf32>
    %20 = vector.shape_cast %19 : vector<16xf32> to vector<16x1xf32>
    %21 = arith.addf %15, %20 : vector<16x1xf32>
    %c0_12 = arith.constant 0 : index
    %c0_13 = arith.constant 0 : index
    %22 = vector.load %arg18[%c0_12, %c0_13] : memref<16x1xf32, #tpu.memory_space<vmem>>, vector<16x1xf32>
    tpu.vector_store %arg18[%c0_12, %c0_13], %21 {strides = array<i32>} : memref<16x1xf32, #tpu.memory_space<vmem>>, vector<16x1xf32>,
    %c0_14 = arith.constant 0 : index
    %c0_15 = arith.constant 0 : index
    %23 = vector.load %arg17[%c0_14, %c0_15] : memref<16x1xf32, #tpu.memory_space<vmem>>, vector<16x1xf32>
    tpu.vector_store %arg17[%c0_14, %c0_15], %11 {strides = array<i32>} : memref<16x1xf32, #tpu.memory_space<vmem>>, vector<16x1xf32>,
    %c0_i32_16 = arith.constant 0 : i32
    %24 = arith.cmpi eq, %arg1, %c0_i32_16 : i32
    %25 = arith.extui %24 : i1 to i32
    %c0_i32_17 = arith.constant 0 : i32
    %26 = arith.cmpi ne, %25, %c0_i32_17 : i32
    scf.if %26 {
      %c0_18 = arith.constant 0 : index
      %c0_19 = arith.constant 0 : index
      %27 = vector.load %arg17[%c0_18, %c0_19] : memref<16x1xf32, #tpu.memory_space<vmem>>, vector<16x1xf32>
      %c0_20 = arith.constant 0 : index
      %c0_21 = arith.constant 0 : index
      %28 = vector.load %arg18[%c0_20, %c0_21] : memref<16x1xf32, #tpu.memory_space<vmem>>, vector<16x1xf32>
      %29 = math.log %28 : vector<16x1xf32>
      %30 = arith.addf %27, %29 : vector<16x1xf32>
      %c0_22 = arith.constant 0 : index
      %c0_23 = arith.constant 0 : index
      %31 = vector.load %arg15[%c0_22, %c0_23] : memref<16x128xf32, #tpu.memory_space<vmem>>, vector<16x128xf32>
      %c0_24 = arith.constant 0 : index
      %c0_25 = arith.constant 0 : index
      %32 = vector.load %arg5[%c0_24, %c0_25] : memref<16x128xf32, #tpu.memory_space<vmem>>, vector<16x128xf32>
      %33 = arith.mulf %31, %32 : vector<16x128xf32>
      %cst_26 = arith.constant dense<0.000000e+00> : vector<16xf32>
      %34 = vector.multi_reduction <add>, %33, %cst_26 [1] : vector<16x128xf32> to vector<16xf32>
      %35 = vector.shape_cast %34 : vector<16xf32> to vector<16x1xf32>
      %c0_27 = arith.constant 0 : index
      %c0_28 = arith.constant 0 : index
      %36 = vector.load %arg6[%c0_27, %c0_28] : memref<16x1xf32, #tpu.memory_space<vmem>>, vector<16x1xf32>
      %37 = arith.subf %30, %35 : vector<16x1xf32>
      %38 = arith.mulf %37, %36 : vector<16x1xf32>
      %39 = vector.shape_cast %38 : vector<16x1xf32> to vector<1x16x1xf32>
      %cst_29 = arith.constant dense<0.000000e+00> : vector<1xf32>
      %40 = vector.multi_reduction <add>, %39, %cst_29 [1, 2] : vector<1x16x1xf32> to vector<1xf32>
      %41 = vector.shape_cast %40 : vector<1xf32> to vector<1x1x1xf32>
      %42 = vector.extract %41[0, 0, 0] : f32 from vector<1x1x1xf32>
      %43 = vector.shape_cast %36 : vector<16x1xf32> to vector<1x16x1xf32>
      %cst_30 = arith.constant dense<0.000000e+00> : vector<1xf32>
      %44 = vector.multi_reduction <add>, %43, %cst_30 [1, 2] : vector<1x16x1xf32> to vector<1xf32>
      %45 = vector.shape_cast %44 : vector<1xf32> to vector<1x1x1xf32>
      %46 = vector.extract %45[0, 0, 0] : f32 from vector<1x1x1xf32>
      %c0_31 = arith.constant 0 : index
      %c0_32 = arith.constant 0 : index
      %47 = vector.load %arg2[%c0_31, %c0_32] : memref<32x128xf32, #tpu.memory_space<vmem>>, vector<8x128xf32>
      %c0_33 = arith.constant 0 : index
      %c0_34 = arith.constant 0 : index
      %48 = vector.load %arg4[%c0_33, %c0_34] : memref<16x128xf32, #tpu.memory_space<vmem>>, vector<8x128xf32>
      %49 = arith.subf %47, %48 : vector<8x128xf32>
      %50 = arith.mulf %49, %49 : vector<8x128xf32>
      %51 = vector.shape_cast %50 : vector<8x128xf32> to vector<1x8x128xf32>
      %cst_35 = arith.constant dense<0.000000e+00> : vector<1xf32>
      %52 = vector.multi_reduction <add>, %51, %cst_35 [1, 2] : vector<1x8x128xf32> to vector<1xf32>
      %53 = vector.shape_cast %52 : vector<1xf32> to vector<1x1x1xf32>
      %54 = vector.extract %53[0, 0, 0] : f32 from vector<1x1x1xf32>
      %cst_36 = arith.constant 0.000000e+00 : f32
      %55 = arith.addf %cst_36, %54 : f32
      %c16 = arith.constant 16 : index
      %c0_37 = arith.constant 0 : index
      %56 = vector.load %arg2[%c16, %c0_37] : memref<32x128xf32, #tpu.memory_space<vmem>>, vector<8x128xf32>
      %c8 = arith.constant 8 : index
      %c0_38 = arith.constant 0 : index
      %57 = vector.load %arg4[%c8, %c0_38] : memref<16x128xf32, #tpu.memory_space<vmem>>, vector<8x128xf32>
      %58 = arith.subf %56, %57 : vector<8x128xf32>
      %59 = arith.mulf %58, %58 : vector<8x128xf32>
      %60 = vector.shape_cast %59 : vector<8x128xf32> to vector<1x8x128xf32>
      %cst_39 = arith.constant dense<0.000000e+00> : vector<1xf32>
      %61 = vector.multi_reduction <add>, %60, %cst_39 [1, 2] : vector<1x8x128xf32> to vector<1xf32>
      %62 = vector.shape_cast %61 : vector<1xf32> to vector<1x1x1xf32>
      %63 = vector.extract %62[0, 0, 0] : f32 from vector<1x1x1xf32>
      %64 = arith.addf %55, %63 : f32
      %65 = tpu.iota {dimensions = array<i32: 1>} : vector<1x128xi32>
      %c0_i32_40 = arith.constant 0 : i32
      %66 = vector.broadcast %c0_i32_40 : i32 to vector<1x128xi32>
      %67 = arith.cmpi eq, %65, %66 : vector<1x128xi32>
      %cst_41 = arith.constant 0.000000e+00 : f32
      %68 = vector.broadcast %42 : f32 to vector<1x128xf32>
      %69 = vector.broadcast %cst_41 : f32 to vector<1x128xf32>
      %70 = arith.select %67, %68, %69 : vector<1x128xi1>, vector<1x128xf32>
      %c1_i32 = arith.constant 1 : i32
      %71 = vector.broadcast %c1_i32 : i32 to vector<1x128xi32>
      %72 = arith.cmpi eq, %65, %71 : vector<1x128xi32>
      %cst_42 = arith.constant 0.000000e+00 : f32
      %73 = vector.broadcast %46 : f32 to vector<1x128xf32>
      %74 = vector.broadcast %cst_42 : f32 to vector<1x128xf32>
      %75 = arith.select %72, %73, %74 : vector<1x128xi1>, vector<1x128xf32>
      %76 = arith.addf %70, %75 : vector<1x128xf32>
      %c2_i32 = arith.constant 2 : i32
      %77 = vector.broadcast %c2_i32 : i32 to vector<1x128xi32>
      %78 = arith.cmpi eq, %65, %77 : vector<1x128xi32>
      %cst_43 = arith.constant 0.000000e+00 : f32
      %79 = vector.broadcast %64 : f32 to vector<1x128xf32>
      %80 = vector.broadcast %cst_43 : f32 to vector<1x128xf32>
      %81 = arith.select %78, %79, %80 : vector<1x128xi1>, vector<1x128xf32>
      %82 = arith.addf %76, %81 : vector<1x128xf32>
      %c0_44 = arith.constant 0 : index
      %c0_45 = arith.constant 0 : index
      %c0_46 = arith.constant 0 : index
      %83 = vector.load %arg14[%c0_44, %c0_45, %c0_46] : memref<1x1x128xf32, #tpu.memory_space<vmem>>, vector<1x1x128xf32>
      %84 = vector.shape_cast %83 : vector<1x1x128xf32> to vector<1x128xf32>
      %85 = vector.shape_cast %82 : vector<1x128xf32> to vector<1x1x128xf32>
      tpu.vector_store %arg14[%c0_44, %c0_45, %c0_46], %85 {strides = array<i32>} : memref<1x1x128xf32, #tpu.memory_space<vmem>>, vector<1x1x128xf32>,
    } else {
    }
    return
  }
  func.func @transform_0(%arg0: i32, %arg1: i32) -> (i32, i32) {
    %c0_i32 = arith.constant 0 : i32
    %c0_i32_0 = arith.constant 0 : i32
    return %arg0, %c0_i32 : i32, i32
  }
  func.func @transform_1(%arg0: i32, %arg1: i32) -> (i32, i32, i32) {
    %c0_i32 = arith.constant 0 : i32
    %c0_i32_0 = arith.constant 0 : i32
    %c0_i32_1 = arith.constant 0 : i32
    return %arg0, %c0_i32, %c0_i32_0 : i32, i32, i32
  }
  func.func @transform_2(%arg0: i32, %arg1: i32) -> (i32, i32) {
    %c0_i32 = arith.constant 0 : i32
    %c0_i32_0 = arith.constant 0 : i32
    return %arg0, %c0_i32 : i32, i32
  }
  func.func @transform_3(%arg0: i32, %arg1: i32) -> (i32, i32) {
    %c0_i32 = arith.constant 0 : i32
    %c0_i32_0 = arith.constant 0 : i32
    return %arg0, %c0_i32 : i32, i32
  }
  func.func @transform_4(%arg0: i32, %arg1: i32) -> (i32, i32) {
    %c0_i32 = arith.constant 0 : i32
    %c0_i32_0 = arith.constant 0 : i32
    return %arg0, %c0_i32 : i32, i32
  }
  func.func @transform_5(%arg0: i32, %arg1: i32) -> (i32, i32) {
    %c0_i32 = arith.constant 0 : i32
    %c0_i32_0 = arith.constant 0 : i32
    %c0_i32_1 = arith.constant 0 : i32
    return %c0_i32, %c0_i32_0 : i32, i32
  }
  func.func @transform_6(%arg0: i32, %arg1: i32) -> (i32, i32) {
    %c0_i32 = arith.constant 0 : i32
    %c0_i32_0 = arith.constant 0 : i32
    %c0_i32_1 = arith.constant 0 : i32
    return %c0_i32, %c0_i32_0 : i32, i32
  }
  func.func @transform_7(%arg0: i32, %arg1: i32) -> (i32, i32) {
    %c0_i32 = arith.constant 0 : i32
    %c0_i32_0 = arith.constant 0 : i32
    %c0_i32_1 = arith.constant 0 : i32
    return %c0_i32, %c0_i32_0 : i32, i32
  }
  func.func @transform_8(%arg0: i32, %arg1: i32) -> (i32, i32) {
    %c0_i32 = arith.constant 0 : i32
    %c0_i32_0 = arith.constant 0 : i32
    %c0_i32_1 = arith.constant 0 : i32
    return %c0_i32, %c0_i32_0 : i32, i32
  }
  func.func @transform_9(%arg0: i32, %arg1: i32) -> (i32, i32) {
    %c0_i32 = arith.constant 0 : i32
    %c0_i32_0 = arith.constant 0 : i32
    return %c0_i32, %arg1 : i32, i32
  }
  func.func @transform_10(%arg0: i32, %arg1: i32) -> (i32, i32) {
    %c0_i32 = arith.constant 0 : i32
    return %arg0, %arg1 : i32, i32
  }
  func.func @transform_11(%arg0: i32, %arg1: i32) -> (i32, i32) {
    %c0_i32 = arith.constant 0 : i32
    %c0_i32_0 = arith.constant 0 : i32
    return %arg0, %c0_i32 : i32, i32
  }
  func.func @transform_12(%arg0: i32, %arg1: i32) -> (i32, i32, i32) {
    %c0_i32 = arith.constant 0 : i32
    %c0_i32_0 = arith.constant 0 : i32
    %c0_i32_1 = arith.constant 0 : i32
    return %arg0, %c0_i32, %c0_i32_0 : i32, i32, i32
  }
}

module attributes {stable_mosaic.version = 11 : i64} {
  func.func @kernel(%arg0: i32, %arg1: i32, %arg2: memref<32x128xf32, #tpu.memory_space<vmem>>, %arg3: memref<2x1x16xf32, #tpu.memory_space<vmem>>, %arg4: memref<16x128xf32, #tpu.memory_space<vmem>>, %arg5: memref<16x128xf32, #tpu.memory_space<vmem>>, %arg6: memref<16x1xf32, #tpu.memory_space<vmem>>, %arg7: memref<128x128xbf16, #tpu.memory_space<vmem>>, %arg8: memref<128x128xbf16, #tpu.memory_space<vmem>>, %arg9: memref<128x128xbf16, #tpu.memory_space<vmem>>, %arg10: memref<128x128xbf16, #tpu.memory_space<vmem>>, %arg11: memref<128x512xbf16, #tpu.memory_space<vmem>>, %arg12: memref<16x512xbf16, #tpu.memory_space<vmem>>, %arg13: memref<16x128xf32, #tpu.memory_space<vmem>>, %arg14: memref<1x1x128xf32, #tpu.memory_space<vmem>>, %arg15: memref<16x128xf32, #tpu.memory_space<vmem>>, %arg16: memref<16x128xbf16, #tpu.memory_space<vmem>>, %arg17: memref<16x1xf32, #tpu.memory_space<vmem>>, %arg18: memref<16x1xf32, #tpu.memory_space<vmem>>) attributes {dimension_semantics = [#tpu.dimension_semantics<parallel>, #tpu.dimension_semantics<arbitrary>], iteration_bounds = array<i64: 1, 1>, scalar_prefetch = 0 : i64, scratch_operands = 4 : i64, tpu.core_type = #tpu.core_type<tc>, window_params = [{transform_indices = @transform_0, window_bounds = array<i64: 32, 128>}, {transform_indices = @transform_1, window_bounds = array<i64: 2, 1, 16>}, {transform_indices = @transform_2, window_bounds = array<i64: 16, 128>}, {transform_indices = @transform_3, window_bounds = array<i64: 16, 128>}, {transform_indices = @transform_4, window_bounds = array<i64: 16, 1>}, {pipeline_mode = #tpu.pipeline_mode<synchronous>, transform_indices = @transform_5, window_bounds = array<i64: 128, 128>}, {pipeline_mode = #tpu.pipeline_mode<synchronous>, transform_indices = @transform_6, window_bounds = array<i64: 128, 128>}, {pipeline_mode = #tpu.pipeline_mode<synchronous>, transform_indices = @transform_7, window_bounds = array<i64: 128, 128>}, {pipeline_mode = #tpu.pipeline_mode<synchronous>, transform_indices = @transform_8, window_bounds = array<i64: 128, 128>}, {transform_indices = @transform_9, window_bounds = array<i64: 128, 512>}, {transform_indices = @transform_10, window_bounds = array<i64: 16, 512>}, {transform_indices = @transform_11, window_bounds = array<i64: 16, 128>}, {transform_indices = @transform_12, window_bounds = array<i64: 1, 1, 128>}]} {
    %c0_i32 = arith.constant 0 : i32
    %0 = arith.cmpi eq, %arg1, %c0_i32 : i32
    %1 = arith.extui %0 : i1 to i32
    %c0_i32_0 = arith.constant 0 : i32
    %2 = arith.cmpi ne, %1, %c0_i32_0 : i32
    scf.if %2 {
      %27 = tpu.iota {dimensions = array<i32: 0>} : vector<8x16xi32>
      %c8_i32 = arith.constant 8 : i32
      %28 = vector.broadcast %c8_i32 : i32 to vector<8x16xi32>
      %29 = arith.addi %27, %28 : vector<8x16xi32>
      %30 = tpu.iota {dimensions = array<i32: 1>} : vector<8x16xi32>
      %31 = arith.cmpi sle, %30, %29 : vector<8x16xi32>
      %c0_18 = arith.constant 0 : index
      %c0_19 = arith.constant 0 : index
      %32 = vector.load %arg2[%c0_18, %c0_19] : memref<32x128xf32, #tpu.memory_space<vmem>>, vector<16x128xf32>
      %33 = vector.extract_strided_slice %32 {offsets = [8, 0], sizes = [8, 128], strides = [1, 1]} : vector<16x128xf32> to vector<8x128xf32>
      %34 = arith.truncf %32 : vector<16x128xf32> to vector<16x128xbf16>
      %c0_20 = arith.constant 0 : index
      %c0_21 = arith.constant 0 : index
      %35 = vector.load %arg8[%c0_20, %c0_21] : memref<128x128xbf16, #tpu.memory_space<vmem>>, vector<128x128xbf16>
      %cst_22 = arith.constant dense<0.000000e+00> : vector<16x128xf32>
      %36 = tpu.matmul %34, %35, %cst_22 {dimension_numbers = #tpu.dot_dimension_numbers<[1], [0], [0], [1], [0, 0, 1, 1], [], []>} : vector<16x128xbf16>, vector<128x128xbf16>, vector<16x128xf32> -> vector<16x128xf32>
      %c0_23 = arith.constant 0 : index
      %c0_24 = arith.constant 0 : index
      %37 = vector.load %arg9[%c0_23, %c0_24] : memref<128x128xbf16, #tpu.memory_space<vmem>>, vector<128x128xbf16>
      %cst_25 = arith.constant dense<0.000000e+00> : vector<16x128xf32>
      %38 = tpu.matmul %34, %37, %cst_25 {dimension_numbers = #tpu.dot_dimension_numbers<[1], [0], [0], [1], [0, 0, 1, 1], [], []>} : vector<16x128xbf16>, vector<128x128xbf16>, vector<16x128xf32> -> vector<16x128xf32>
      %39 = arith.truncf %33 : vector<8x128xf32> to vector<8x128xbf16>
      %c0_26 = arith.constant 0 : index
      %c0_27 = arith.constant 0 : index
      %40 = vector.load %arg7[%c0_26, %c0_27] : memref<128x128xbf16, #tpu.memory_space<vmem>>, vector<128x128xbf16>
      %cst_28 = arith.constant dense<0.000000e+00> : vector<8x128xf32>
      %41 = tpu.matmul %39, %40, %cst_28 {dimension_numbers = #tpu.dot_dimension_numbers<[1], [0], [0], [1], [0, 0, 1, 1], [], []>} : vector<8x128xbf16>, vector<128x128xbf16>, vector<8x128xf32> -> vector<8x128xf32>
      %42 = arith.truncf %41 : vector<8x128xf32> to vector<8x128xbf16>
      %43 = arith.truncf %36 : vector<16x128xf32> to vector<16x128xbf16>
      %cst_29 = arith.constant dense<0.000000e+00> : vector<8x16xf32>
      %44 = tpu.matmul %42, %43, %cst_29 {dimension_numbers = #tpu.dot_dimension_numbers<[1], [1], [0], [0], [0, 0, 1, 0], [], []>} : vector<8x128xbf16>, vector<16x128xbf16>, vector<8x16xf32> -> vector<8x16xf32>
      %cst_30 = arith.constant 0.0883883461 : f32
      %45 = vector.broadcast %cst_30 : f32 to vector<8x16xf32>
      %46 = arith.mulf %44, %45 : vector<8x16xf32>
      %c0_31 = arith.constant 0 : index
      %c0_32 = arith.constant 0 : index
      %c0_33 = arith.constant 0 : index
      %47 = vector.load %arg3[%c0_31, %c0_32, %c0_33] : memref<2x1x16xf32, #tpu.memory_space<vmem>>, vector<1x1x16xf32>
      %48 = vector.shape_cast %47 : vector<1x1x16xf32> to vector<1x16xf32>
      %cst_34 = arith.constant 5.000000e-01 : f32
      %49 = vector.broadcast %cst_34 : f32 to vector<1x16xf32>
      %50 = arith.cmpf ogt, %48, %49 : vector<1x16xf32>
      %51 = vector.broadcast %50 : vector<1x16xi1> to vector<8x16xi1>
      %52 = arith.andi %31, %51 : vector<8x16xi1>
      %cst_35 = arith.constant -1.000000e+30 : f32
      %53 = vector.broadcast %cst_35 : f32 to vector<8x16xf32>
      %54 = arith.select %52, %46, %53 : vector<8x16xi1>, vector<8x16xf32>
      %cst_36 = arith.constant dense<0xFF800000> : vector<8xf32>
      %55 = vector.multi_reduction <maximumf>, %54, %cst_36 [1] : vector<8x16xf32> to vector<8xf32>
      %56 = vector.shape_cast %55 : vector<8xf32> to vector<8x1xf32>
      %57 = vector.broadcast %56 : vector<8x1xf32> to vector<8x16xf32>
      %58 = arith.subf %54, %57 : vector<8x16xf32>
      %59 = math.exp %58 : vector<8x16xf32>
      %cst_37 = arith.constant dense<0.000000e+00> : vector<8xf32>
      %60 = vector.multi_reduction <add>, %59, %cst_37 [1] : vector<8x16xf32> to vector<8xf32>
      %61 = vector.shape_cast %60 : vector<8xf32> to vector<8x1xf32>
      %62 = vector.broadcast %61 : vector<8x1xf32> to vector<8x16xf32>
      %63 = arith.divf %59, %62 : vector<8x16xf32>
      %64 = arith.truncf %63 : vector<8x16xf32> to vector<8x16xbf16>
      %65 = arith.truncf %38 : vector<16x128xf32> to vector<16x128xbf16>
      %cst_38 = arith.constant dense<0.000000e+00> : vector<8x128xf32>
      %66 = tpu.matmul %64, %65, %cst_38 {dimension_numbers = #tpu.dot_dimension_numbers<[1], [0], [0], [1], [0, 0, 1, 1], [], []>} : vector<8x16xbf16>, vector<16x128xbf16>, vector<8x128xf32> -> vector<8x128xf32>
      %67 = arith.truncf %66 : vector<8x128xf32> to vector<8x128xbf16>
      %c0_39 = arith.constant 0 : index
      %c0_40 = arith.constant 0 : index
      %68 = vector.load %arg10[%c0_39, %c0_40] : memref<128x128xbf16, #tpu.memory_space<vmem>>, vector<128x128xbf16>
      %cst_41 = arith.constant dense<0.000000e+00> : vector<8x128xf32>
      %69 = tpu.matmul %67, %68, %cst_41 {dimension_numbers = #tpu.dot_dimension_numbers<[1], [0], [0], [1], [0, 0, 1, 1], [], []>} : vector<8x128xbf16>, vector<128x128xbf16>, vector<8x128xf32> -> vector<8x128xf32>
      %70 = arith.addf %33, %69 : vector<8x128xf32>
      %c0_42 = arith.constant 0 : index
      %c0_43 = arith.constant 0 : index
      %71 = vector.load %arg15[%c0_42, %c0_43] : memref<16x128xf32, #tpu.memory_space<vmem>>, vector<8x128xf32>
      tpu.vector_store %arg15[%c0_42, %c0_43], %70 {strides = array<i32>} : memref<16x128xf32, #tpu.memory_space<vmem>>, vector<8x128xf32>,
      %72 = arith.truncf %70 : vector<8x128xf32> to vector<8x128xbf16>
      %c0_44 = arith.constant 0 : index
      %c0_45 = arith.constant 0 : index
      %73 = vector.load %arg16[%c0_44, %c0_45] : memref<16x128xbf16, #tpu.memory_space<vmem>>, vector<8x128xbf16>
      tpu.vector_store %arg16[%c0_44, %c0_45], %72 {strides = array<i32>} : memref<16x128xbf16, #tpu.memory_space<vmem>>, vector<8x128xbf16>,
      %c0_46 = arith.constant 0 : index
      %c0_47 = arith.constant 0 : index
      %74 = vector.load %arg13[%c0_46, %c0_47] : memref<16x128xf32, #tpu.memory_space<vmem>>, vector<8x128xf32>
      tpu.vector_store %arg13[%c0_46, %c0_47], %70 {strides = array<i32>} : memref<16x128xf32, #tpu.memory_space<vmem>>, vector<8x128xf32>,
      %c16 = arith.constant 16 : index
      %c0_48 = arith.constant 0 : index
      %75 = vector.load %arg2[%c16, %c0_48] : memref<32x128xf32, #tpu.memory_space<vmem>>, vector<16x128xf32>
      %76 = vector.extract_strided_slice %75 {offsets = [8, 0], sizes = [8, 128], strides = [1, 1]} : vector<16x128xf32> to vector<8x128xf32>
      %77 = arith.truncf %75 : vector<16x128xf32> to vector<16x128xbf16>
      %c0_49 = arith.constant 0 : index
      %c0_50 = arith.constant 0 : index
      %78 = vector.load %arg8[%c0_49, %c0_50] : memref<128x128xbf16, #tpu.memory_space<vmem>>, vector<128x128xbf16>
      %cst_51 = arith.constant dense<0.000000e+00> : vector<16x128xf32>
      %79 = tpu.matmul %77, %78, %cst_51 {dimension_numbers = #tpu.dot_dimension_numbers<[1], [0], [0], [1], [0, 0, 1, 1], [], []>} : vector<16x128xbf16>, vector<128x128xbf16>, vector<16x128xf32> -> vector<16x128xf32>
      %c0_52 = arith.constant 0 : index
      %c0_53 = arith.constant 0 : index
      %80 = vector.load %arg9[%c0_52, %c0_53] : memref<128x128xbf16, #tpu.memory_space<vmem>>, vector<128x128xbf16>
      %cst_54 = arith.constant dense<0.000000e+00> : vector<16x128xf32>
      %81 = tpu.matmul %77, %80, %cst_54 {dimension_numbers = #tpu.dot_dimension_numbers<[1], [0], [0], [1], [0, 0, 1, 1], [], []>} : vector<16x128xbf16>, vector<128x128xbf16>, vector<16x128xf32> -> vector<16x128xf32>
      %82 = arith.truncf %76 : vector<8x128xf32> to vector<8x128xbf16>
      %c0_55 = arith.constant 0 : index
      %c0_56 = arith.constant 0 : index
      %83 = vector.load %arg7[%c0_55, %c0_56] : memref<128x128xbf16, #tpu.memory_space<vmem>>, vector<128x128xbf16>
      %cst_57 = arith.constant dense<0.000000e+00> : vector<8x128xf32>
      %84 = tpu.matmul %82, %83, %cst_57 {dimension_numbers = #tpu.dot_dimension_numbers<[1], [0], [0], [1], [0, 0, 1, 1], [], []>} : vector<8x128xbf16>, vector<128x128xbf16>, vector<8x128xf32> -> vector<8x128xf32>
      %85 = arith.truncf %84 : vector<8x128xf32> to vector<8x128xbf16>
      %86 = arith.truncf %79 : vector<16x128xf32> to vector<16x128xbf16>
      %cst_58 = arith.constant dense<0.000000e+00> : vector<8x16xf32>
      %87 = tpu.matmul %85, %86, %cst_58 {dimension_numbers = #tpu.dot_dimension_numbers<[1], [1], [0], [0], [0, 0, 1, 0], [], []>} : vector<8x128xbf16>, vector<16x128xbf16>, vector<8x16xf32> -> vector<8x16xf32>
      %cst_59 = arith.constant 0.0883883461 : f32
      %88 = vector.broadcast %cst_59 : f32 to vector<8x16xf32>
      %89 = arith.mulf %87, %88 : vector<8x16xf32>
      %c1 = arith.constant 1 : index
      %c0_60 = arith.constant 0 : index
      %c0_61 = arith.constant 0 : index
      %90 = vector.load %arg3[%c1, %c0_60, %c0_61] : memref<2x1x16xf32, #tpu.memory_space<vmem>>, vector<1x1x16xf32>
      %91 = vector.shape_cast %90 : vector<1x1x16xf32> to vector<1x16xf32>
      %cst_62 = arith.constant 5.000000e-01 : f32
      %92 = vector.broadcast %cst_62 : f32 to vector<1x16xf32>
      %93 = arith.cmpf ogt, %91, %92 : vector<1x16xf32>
      %94 = vector.broadcast %93 : vector<1x16xi1> to vector<8x16xi1>
      %95 = arith.andi %31, %94 : vector<8x16xi1>
      %cst_63 = arith.constant -1.000000e+30 : f32
      %96 = vector.broadcast %cst_63 : f32 to vector<8x16xf32>
      %97 = arith.select %95, %89, %96 : vector<8x16xi1>, vector<8x16xf32>
      %cst_64 = arith.constant dense<0xFF800000> : vector<8xf32>
      %98 = vector.multi_reduction <maximumf>, %97, %cst_64 [1] : vector<8x16xf32> to vector<8xf32>
      %99 = vector.shape_cast %98 : vector<8xf32> to vector<8x1xf32>
      %100 = vector.broadcast %99 : vector<8x1xf32> to vector<8x16xf32>
      %101 = arith.subf %97, %100 : vector<8x16xf32>
      %102 = math.exp %101 : vector<8x16xf32>
      %cst_65 = arith.constant dense<0.000000e+00> : vector<8xf32>
      %103 = vector.multi_reduction <add>, %102, %cst_65 [1] : vector<8x16xf32> to vector<8xf32>
      %104 = vector.shape_cast %103 : vector<8xf32> to vector<8x1xf32>
      %105 = vector.broadcast %104 : vector<8x1xf32> to vector<8x16xf32>
      %106 = arith.divf %102, %105 : vector<8x16xf32>
      %107 = arith.truncf %106 : vector<8x16xf32> to vector<8x16xbf16>
      %108 = arith.truncf %81 : vector<16x128xf32> to vector<16x128xbf16>
      %cst_66 = arith.constant dense<0.000000e+00> : vector<8x128xf32>
      %109 = tpu.matmul %107, %108, %cst_66 {dimension_numbers = #tpu.dot_dimension_numbers<[1], [0], [0], [1], [0, 0, 1, 1], [], []>} : vector<8x16xbf16>, vector<16x128xbf16>, vector<8x128xf32> -> vector<8x128xf32>
      %110 = arith.truncf %109 : vector<8x128xf32> to vector<8x128xbf16>
      %c0_67 = arith.constant 0 : index
      %c0_68 = arith.constant 0 : index
      %111 = vector.load %arg10[%c0_67, %c0_68] : memref<128x128xbf16, #tpu.memory_space<vmem>>, vector<128x128xbf16>
      %cst_69 = arith.constant dense<0.000000e+00> : vector<8x128xf32>
      %112 = tpu.matmul %110, %111, %cst_69 {dimension_numbers = #tpu.dot_dimension_numbers<[1], [0], [0], [1], [0, 0, 1, 1], [], []>} : vector<8x128xbf16>, vector<128x128xbf16>, vector<8x128xf32> -> vector<8x128xf32>
      %113 = arith.addf %76, %112 : vector<8x128xf32>
      %c8 = arith.constant 8 : index
      %c0_70 = arith.constant 0 : index
      %114 = vector.load %arg15[%c8, %c0_70] : memref<16x128xf32, #tpu.memory_space<vmem>>, vector<8x128xf32>
      tpu.vector_store %arg15[%c8, %c0_70], %113 {strides = array<i32>} : memref<16x128xf32, #tpu.memory_space<vmem>>, vector<8x128xf32>,
      %115 = arith.truncf %113 : vector<8x128xf32> to vector<8x128xbf16>
      %c8_71 = arith.constant 8 : index
      %c0_72 = arith.constant 0 : index
      %116 = vector.load %arg16[%c8_71, %c0_72] : memref<16x128xbf16, #tpu.memory_space<vmem>>, vector<8x128xbf16>
      tpu.vector_store %arg16[%c8_71, %c0_72], %115 {strides = array<i32>} : memref<16x128xbf16, #tpu.memory_space<vmem>>, vector<8x128xbf16>,
      %c8_73 = arith.constant 8 : index
      %c0_74 = arith.constant 0 : index
      %117 = vector.load %arg13[%c8_73, %c0_74] : memref<16x128xf32, #tpu.memory_space<vmem>>, vector<8x128xf32>
      tpu.vector_store %arg13[%c8_73, %c0_74], %113 {strides = array<i32>} : memref<16x128xf32, #tpu.memory_space<vmem>>, vector<8x128xf32>,
      %cst_75 = arith.constant -1.000000e+30 : f32
      %118 = vector.broadcast %cst_75 : f32 to vector<16x1xf32>
      %c0_76 = arith.constant 0 : index
      %c0_77 = arith.constant 0 : index
      %119 = vector.load %arg17[%c0_76, %c0_77] : memref<16x1xf32, #tpu.memory_space<vmem>>, vector<16x1xf32>
      tpu.vector_store %arg17[%c0_76, %c0_77], %118 {strides = array<i32>} : memref<16x1xf32, #tpu.memory_space<vmem>>, vector<16x1xf32>,
      %cst_78 = arith.constant 0.000000e+00 : f32
      %120 = vector.broadcast %cst_78 : f32 to vector<16x1xf32>
      %c0_79 = arith.constant 0 : index
      %c0_80 = arith.constant 0 : index
      %121 = vector.load %arg18[%c0_79, %c0_80] : memref<16x1xf32, #tpu.memory_space<vmem>>, vector<16x1xf32>
      tpu.vector_store %arg18[%c0_79, %c0_80], %120 {strides = array<i32>} : memref<16x1xf32, #tpu.memory_space<vmem>>, vector<16x1xf32>,
    } else {
    }
    %c0 = arith.constant 0 : index
    %c0_1 = arith.constant 0 : index
    %3 = vector.load %arg16[%c0, %c0_1] : memref<16x128xbf16, #tpu.memory_space<vmem>>, vector<16x128xbf16>
    %c0_2 = arith.constant 0 : index
    %c0_3 = arith.constant 0 : index
    %4 = vector.load %arg11[%c0_2, %c0_3] : memref<128x512xbf16, #tpu.memory_space<vmem>>, vector<128x512xbf16>
    %cst = arith.constant dense<0.000000e+00> : vector<16x512xf32>
    %5 = tpu.matmul %3, %4, %cst {dimension_numbers = #tpu.dot_dimension_numbers<[1], [0], [0], [1], [0, 0, 1, 1], [], []>} : vector<16x128xbf16>, vector<128x512xbf16>, vector<16x512xf32> -> vector<16x512xf32>
    %6 = arith.truncf %5 : vector<16x512xf32> to vector<16x512xbf16>
    %c0_4 = arith.constant 0 : index
    %c0_5 = arith.constant 0 : index
    %7 = vector.load %arg12[%c0_4, %c0_5] : memref<16x512xbf16, #tpu.memory_space<vmem>>, vector<16x512xbf16>
    tpu.vector_store %arg12[%c0_4, %c0_5], %6 {strides = array<i32>} : memref<16x512xbf16, #tpu.memory_space<vmem>>, vector<16x512xbf16>,
    %c0_6 = arith.constant 0 : index
    %c0_7 = arith.constant 0 : index
    %8 = vector.load %arg17[%c0_6, %c0_7] : memref<16x1xf32, #tpu.memory_space<vmem>>, vector<16x1xf32>
    %cst_8 = arith.constant dense<0xFF800000> : vector<16xf32>
    %9 = vector.multi_reduction <maximumf>, %5, %cst_8 [1] : vector<16x512xf32> to vector<16xf32>
    %10 = vector.shape_cast %9 : vector<16xf32> to vector<16x1xf32>
    %11 = arith.maximumf %8, %10 : vector<16x1xf32>
    %c0_9 = arith.constant 0 : index
    %c0_10 = arith.constant 0 : index
    %12 = vector.load %arg18[%c0_9, %c0_10] : memref<16x1xf32, #tpu.memory_space<vmem>>, vector<16x1xf32>
    %13 = arith.subf %8, %11 : vector<16x1xf32>
    %14 = math.exp %13 : vector<16x1xf32>
    %15 = arith.mulf %12, %14 : vector<16x1xf32>
    %16 = vector.broadcast %11 : vector<16x1xf32> to vector<16x512xf32>
    %17 = arith.subf %5, %16 : vector<16x512xf32>
    %18 = math.exp %17 : vector<16x512xf32>
    %cst_11 = arith.constant dense<0.000000e+00> : vector<16xf32>
    %19 = vector.multi_reduction <add>, %18, %cst_11 [1] : vector<16x512xf32> to vector<16xf32>
    %20 = vector.shape_cast %19 : vector<16xf32> to vector<16x1xf32>
    %21 = arith.addf %15, %20 : vector<16x1xf32>
    %c0_12 = arith.constant 0 : index
    %c0_13 = arith.constant 0 : index
    %22 = vector.load %arg18[%c0_12, %c0_13] : memref<16x1xf32, #tpu.memory_space<vmem>>, vector<16x1xf32>
    tpu.vector_store %arg18[%c0_12, %c0_13], %21 {strides = array<i32>} : memref<16x1xf32, #tpu.memory_space<vmem>>, vector<16x1xf32>,
    %c0_14 = arith.constant 0 : index
    %c0_15 = arith.constant 0 : index
    %23 = vector.load %arg17[%c0_14, %c0_15] : memref<16x1xf32, #tpu.memory_space<vmem>>, vector<16x1xf32>
    tpu.vector_store %arg17[%c0_14, %c0_15], %11 {strides = array<i32>} : memref<16x1xf32, #tpu.memory_space<vmem>>, vector<16x1xf32>,
    %c0_i32_16 = arith.constant 0 : i32
    %24 = arith.cmpi eq, %arg1, %c0_i32_16 : i32
    %25 = arith.extui %24 : i1 to i32
    %c0_i32_17 = arith.constant 0 : i32
    %26 = arith.cmpi ne, %25, %c0_i32_17 : i32
    scf.if %26 {
      %c0_18 = arith.constant 0 : index
      %c0_19 = arith.constant 0 : index
      %27 = vector.load %arg17[%c0_18, %c0_19] : memref<16x1xf32, #tpu.memory_space<vmem>>, vector<16x1xf32>
      %c0_20 = arith.constant 0 : index
      %c0_21 = arith.constant 0 : index
      %28 = vector.load %arg18[%c0_20, %c0_21] : memref<16x1xf32, #tpu.memory_space<vmem>>, vector<16x1xf32>
      %29 = math.log %28 : vector<16x1xf32>
      %30 = arith.addf %27, %29 : vector<16x1xf32>
      %c0_22 = arith.constant 0 : index
      %c0_23 = arith.constant 0 : index
      %31 = vector.load %arg15[%c0_22, %c0_23] : memref<16x128xf32, #tpu.memory_space<vmem>>, vector<16x128xf32>
      %c0_24 = arith.constant 0 : index
      %c0_25 = arith.constant 0 : index
      %32 = vector.load %arg5[%c0_24, %c0_25] : memref<16x128xf32, #tpu.memory_space<vmem>>, vector<16x128xf32>
      %33 = arith.mulf %31, %32 : vector<16x128xf32>
      %cst_26 = arith.constant dense<0.000000e+00> : vector<16xf32>
      %34 = vector.multi_reduction <add>, %33, %cst_26 [1] : vector<16x128xf32> to vector<16xf32>
      %35 = vector.shape_cast %34 : vector<16xf32> to vector<16x1xf32>
      %c0_27 = arith.constant 0 : index
      %c0_28 = arith.constant 0 : index
      %36 = vector.load %arg6[%c0_27, %c0_28] : memref<16x1xf32, #tpu.memory_space<vmem>>, vector<16x1xf32>
      %37 = arith.subf %30, %35 : vector<16x1xf32>
      %38 = arith.mulf %37, %36 : vector<16x1xf32>
      %39 = vector.shape_cast %38 : vector<16x1xf32> to vector<1x16x1xf32>
      %cst_29 = arith.constant dense<0.000000e+00> : vector<1xf32>
      %40 = vector.multi_reduction <add>, %39, %cst_29 [1, 2] : vector<1x16x1xf32> to vector<1xf32>
      %41 = vector.shape_cast %40 : vector<1xf32> to vector<1x1x1xf32>
      %42 = vector.extract %41[0, 0, 0] : f32 from vector<1x1x1xf32>
      %43 = vector.shape_cast %36 : vector<16x1xf32> to vector<1x16x1xf32>
      %cst_30 = arith.constant dense<0.000000e+00> : vector<1xf32>
      %44 = vector.multi_reduction <add>, %43, %cst_30 [1, 2] : vector<1x16x1xf32> to vector<1xf32>
      %45 = vector.shape_cast %44 : vector<1xf32> to vector<1x1x1xf32>
      %46 = vector.extract %45[0, 0, 0] : f32 from vector<1x1x1xf32>
      %c0_31 = arith.constant 0 : index
      %c0_32 = arith.constant 0 : index
      %47 = vector.load %arg2[%c0_31, %c0_32] : memref<32x128xf32, #tpu.memory_space<vmem>>, vector<8x128xf32>
      %c0_33 = arith.constant 0 : index
      %c0_34 = arith.constant 0 : index
      %48 = vector.load %arg4[%c0_33, %c0_34] : memref<16x128xf32, #tpu.memory_space<vmem>>, vector<8x128xf32>
      %49 = arith.subf %47, %48 : vector<8x128xf32>
      %50 = arith.mulf %49, %49 : vector<8x128xf32>
      %51 = vector.shape_cast %50 : vector<8x128xf32> to vector<1x8x128xf32>
      %cst_35 = arith.constant dense<0.000000e+00> : vector<1xf32>
      %52 = vector.multi_reduction <add>, %51, %cst_35 [1, 2] : vector<1x8x128xf32> to vector<1xf32>
      %53 = vector.shape_cast %52 : vector<1xf32> to vector<1x1x1xf32>
      %54 = vector.extract %53[0, 0, 0] : f32 from vector<1x1x1xf32>
      %cst_36 = arith.constant 0.000000e+00 : f32
      %55 = arith.addf %cst_36, %54 : f32
      %c16 = arith.constant 16 : index
      %c0_37 = arith.constant 0 : index
      %56 = vector.load %arg2[%c16, %c0_37] : memref<32x128xf32, #tpu.memory_space<vmem>>, vector<8x128xf32>
      %c8 = arith.constant 8 : index
      %c0_38 = arith.constant 0 : index
      %57 = vector.load %arg4[%c8, %c0_38] : memref<16x128xf32, #tpu.memory_space<vmem>>, vector<8x128xf32>
      %58 = arith.subf %56, %57 : vector<8x128xf32>
      %59 = arith.mulf %58, %58 : vector<8x128xf32>
      %60 = vector.shape_cast %59 : vector<8x128xf32> to vector<1x8x128xf32>
      %cst_39 = arith.constant dense<0.000000e+00> : vector<1xf32>
      %61 = vector.multi_reduction <add>, %60, %cst_39 [1, 2] : vector<1x8x128xf32> to vector<1xf32>
      %62 = vector.shape_cast %61 : vector<1xf32> to vector<1x1x1xf32>
      %63 = vector.extract %62[0, 0, 0] : f32 from vector<1x1x1xf32>
      %64 = arith.addf %55, %63 : f32
      %65 = tpu.iota {dimensions = array<i32: 1>} : vector<1x128xi32>
      %c0_i32_40 = arith.constant 0 : i32
      %66 = vector.broadcast %c0_i32_40 : i32 to vector<1x128xi32>
      %67 = arith.cmpi eq, %65, %66 : vector<1x128xi32>
      %cst_41 = arith.constant 0.000000e+00 : f32
      %68 = vector.broadcast %42 : f32 to vector<1x128xf32>
      %69 = vector.broadcast %cst_41 : f32 to vector<1x128xf32>
      %70 = arith.select %67, %68, %69 : vector<1x128xi1>, vector<1x128xf32>
      %c1_i32 = arith.constant 1 : i32
      %71 = vector.broadcast %c1_i32 : i32 to vector<1x128xi32>
      %72 = arith.cmpi eq, %65, %71 : vector<1x128xi32>
      %cst_42 = arith.constant 0.000000e+00 : f32
      %73 = vector.broadcast %46 : f32 to vector<1x128xf32>
      %74 = vector.broadcast %cst_42 : f32 to vector<1x128xf32>
      %75 = arith.select %72, %73, %74 : vector<1x128xi1>, vector<1x128xf32>
      %76 = arith.addf %70, %75 : vector<1x128xf32>
      %c2_i32 = arith.constant 2 : i32
      %77 = vector.broadcast %c2_i32 : i32 to vector<1x128xi32>
      %78 = arith.cmpi eq, %65, %77 : vector<1x128xi32>
      %cst_43 = arith.constant 0.000000e+00 : f32
      %79 = vector.broadcast %64 : f32 to vector<1x128xf32>
      %80 = vector.broadcast %cst_43 : f32 to vector<1x128xf32>
      %81 = arith.select %78, %79, %80 : vector<1x128xi1>, vector<1x128xf32>
      %82 = arith.addf %76, %81 : vector<1x128xf32>
      %c0_44 = arith.constant 0 : index
      %c0_45 = arith.constant 0 : index
      %c0_46 = arith.constant 0 : index
      %83 = vector.load %arg14[%c0_44, %c0_45, %c0_46] : memref<1x1x128xf32, #tpu.memory_space<vmem>>, vector<1x1x128xf32>
      %84 = vector.shape_cast %83 : vector<1x1x128xf32> to vector<1x128xf32>
      %85 = vector.shape_cast %82 : vector<1x128xf32> to vector<1x1x128xf32>
      tpu.vector_store %arg14[%c0_44, %c0_45, %c0_46], %85 {strides = array<i32>} : memref<1x1x128xf32, #tpu.memory_space<vmem>>, vector<1x1x128xf32>,
    } else {
    }
    return
  }
  func.func @transform_0(%arg0: i32, %arg1: i32) -> (i32, i32) {
    %c0_i32 = arith.constant 0 : i32
    %c0_i32_0 = arith.constant 0 : i32
    return %arg0, %c0_i32 : i32, i32
  }
  func.func @transform_1(%arg0: i32, %arg1: i32) -> (i32, i32, i32) {
    %c0_i32 = arith.constant 0 : i32
    %c0_i32_0 = arith.constant 0 : i32
    %c0_i32_1 = arith.constant 0 : i32
    return %arg0, %c0_i32, %c0_i32_0 : i32, i32, i32
  }
  func.func @transform_2(%arg0: i32, %arg1: i32) -> (i32, i32) {
    %c0_i32 = arith.constant 0 : i32
    %c0_i32_0 = arith.constant 0 : i32
    return %arg0, %c0_i32 : i32, i32
  }
  func.func @transform_3(%arg0: i32, %arg1: i32) -> (i32, i32) {
    %c0_i32 = arith.constant 0 : i32
    %c0_i32_0 = arith.constant 0 : i32
    return %arg0, %c0_i32 : i32, i32
  }
  func.func @transform_4(%arg0: i32, %arg1: i32) -> (i32, i32) {
    %c0_i32 = arith.constant 0 : i32
    %c0_i32_0 = arith.constant 0 : i32
    return %arg0, %c0_i32 : i32, i32
  }
  func.func @transform_5(%arg0: i32, %arg1: i32) -> (i32, i32) {
    %c0_i32 = arith.constant 0 : i32
    %c0_i32_0 = arith.constant 0 : i32
    %c0_i32_1 = arith.constant 0 : i32
    return %c0_i32, %c0_i32_0 : i32, i32
  }
  func.func @transform_6(%arg0: i32, %arg1: i32) -> (i32, i32) {
    %c0_i32 = arith.constant 0 : i32
    %c0_i32_0 = arith.constant 0 : i32
    %c0_i32_1 = arith.constant 0 : i32
    return %c0_i32, %c0_i32_0 : i32, i32
  }
  func.func @transform_7(%arg0: i32, %arg1: i32) -> (i32, i32) {
    %c0_i32 = arith.constant 0 : i32
    %c0_i32_0 = arith.constant 0 : i32
    %c0_i32_1 = arith.constant 0 : i32
    return %c0_i32, %c0_i32_0 : i32, i32
  }
  func.func @transform_8(%arg0: i32, %arg1: i32) -> (i32, i32) {
    %c0_i32 = arith.constant 0 : i32
    %c0_i32_0 = arith.constant 0 : i32
    %c0_i32_1 = arith.constant 0 : i32
    return %c0_i32, %c0_i32_0 : i32, i32
  }
  func.func @transform_9(%arg0: i32, %arg1: i32) -> (i32, i32) {
    %c0_i32 = arith.constant 0 : i32
    %c0_i32_0 = arith.constant 0 : i32
    return %c0_i32, %arg1 : i32, i32
  }
  func.func @transform_10(%arg0: i32, %arg1: i32) -> (i32, i32) {
    %c0_i32 = arith.constant 0 : i32
    return %arg0, %arg1 : i32, i32
  }
  func.func @transform_11(%arg0: i32, %arg1: i32) -> (i32, i32) {
    %c0_i32 = arith.constant 0 : i32
    %c0_i32_0 = arith.constant 0 : i32
    return %arg0, %c0_i32 : i32, i32
  }
  func.func @transform_12(%arg0: i32, %arg1: i32) -> (i32, i32, i32) {
    %c0_i32 = arith.constant 0 : i32
    %c0_i32_0 = arith.constant 0 : i32
    %c0_i32_1 = arith.constant 0 : i32
    return %arg0, %c0_i32, %c0_i32_0 : i32, i32, i32
  }
}

</mosaic_0001>

<bundles_post_ra>
// kernel: tpu_custom_call.1
= control target key start
LH: loop header
LB: loop body
LE: loop exit
PB: predicated region body
PF: predicated region fallthrough
CT: control target
= control target key end

     0   :  { %18 = vsyncpa [#allocation7], 0  ;;  %s2980_s0 = inlined_call_operand.hbm [shape: f32[32,128], index: 0, kind: input, shape index: {}]   ;;  %s2981_s1 = inlined_call_operand.vmem [shape: f32[2,1,16], index: 1, kind: input, shape index: {}]   ;;  %s2982_s2 = inlined_call_operand.vmem [shape: f32[16,128], index: 2, kind: input, shape index: {}]   ;;  %s2983_s3 = inlined_call_operand.hbm [shape: f32[16,128], index: 3, kind: input, shape index: {}]   ;;  %s2984_s4 = inlined_call_operand.vmem [shape: f32[16,1], index: 4, kind: input, shape index: {}]   ;;  %s2985_s5 = inlined_call_operand.hbm [shape: bf16[128,128], index: 5, kind: input, shape index: {}]   ;;  %s2986_s6 = inlined_call_operand.hbm [shape: bf16[128,128], index: 6, kind: input, shape index: {}]   ;;  %s2987_s7 = inlined_call_operand.hbm [shape: bf16[128,128], index: 7, kind: input, shape index: {}]   ;;  %s2988_s8 = inlined_call_operand.hbm [shape: bf16[128,128], index: 8, kind: input, shape index: {}]   ;;  %s2989_s9 = inlined_call_operand.hbm [shape: bf16[128,512], index: 9, kind: input, shape index: {}]   ;;  %s2990_s10 = inlined_call_operand.hbm [shape: bf16[16,512], index: 10, kind: output, shape index: {0}]   ;;  %s2991_s11 = inlined_call_operand.hbm [shape: f32[16,128], index: 11, kind: output, shape index: {1}]   ;;  %s2992_s12 = inlined_call_operand.hbm [shape: f32[1,1,128], index: 12, kind: output, shape index: {2}]  }
   0x1   :  { %19 = vsyncpa [#allocation10], 0 }
   0x2   :  { %20 = vsyncpa [#allocation13], 0 }
   0x3   :  { %21 = vsyncpa [#allocation16], 0 }
   0x4   :  { %22 = vsyncpa [#allocation8], 0 }
   0x5   :  { %23 = vsyncpa [#allocation20], 0  ;;  %s2533_s21 = smov [#allocation9]   ;;  %s2301_s25 = scalar_lea.hbm %s2983_s3, 256 }
   0x6   :  { %s45_s22 = sshll.u32 %s2533_s21, 4  ;;  %p2302_p0 = scmp.ne.s32.totalorder %s2983_s3, %s2301_s25  ;;  %s46_s22 = int_to_ptr.vmem [resolvable:$true] %s45_s22 }
   0x7   :  { %p2305_p1 = scmp.lt.u32.totalorder %s2301_s25, %s2983_s3 }
   0x9   :  { %p2307_p2 = pnand %p2305_p1, %p2302_p0 }
   0xb   :  { %2310 = shalt.err (!%p2307_p2)
}
   0xc   :  { %s2311_s30 = scalar_lea.vmem %s46_s22, 256  ;;  %p2316_p4 = scmp.lt.s32.totalorder %s46_s22, %s46_s22 }
   0xd   :  { %p2312_p3 = scmp.ne.s32.totalorder %s46_s22, %s2311_s30  ;;  %p2317_p5 = scmp.lt.s32.totalorder %s2311_s30, %s2311_s30 }
   0xf   :  { %p2318_p6 = por %p2317_p5, %p2316_p4 }
  0x11   :  { %p2319_p7 = pnand %p2318_p6, %p2312_p3 }
  0x13   :  { %2322 = shalt.err (!%p2319_p7)
}
  0x14   :  { %s2534_s13 = smov 128   ;;  %s2535_s14 = smov 8  }
  0x15   :  { %51 = dma.hbm_to_vmem [thread:$0]  %s2983_s3, 256, %s46_s22, [#allocation10], %s2534_s13, %s2534_s13, %s2535_s14  }
  0x16   :  { %s2536_s17 = smov [#allocation12]   ;;  %s2537_s19 = smov [#allocation15]  }
  0x17   :  { %s71_s18 = sshll.u32 %s2536_s17, 4  ;;  %s95_s20 = sshll.u32 %s2537_s19, 4  ;;  %s72_s18 = int_to_ptr.vmem [resolvable:$true] %s71_s18  ;;  %s96_s20 = int_to_ptr.vmem [resolvable:$true] %s95_s20 }
  0x18   :  { %s2323_s24 = scalar_lea.hbm %s2986_s6, 1024 }
  0x19   :  { %p2324_p8 = scmp.ne.s32.totalorder %s2986_s6, %s2323_s24  ;;  %p2327_p9 = scmp.lt.u32.totalorder %s2323_s24, %s2986_s6 }
  0x1b   :  { %p2329_p10 = pnand %p2327_p9, %p2324_p8 }
  0x1d   :  { %2332 = shalt.err (!%p2329_p10)
}
  0x1e   :  { %s2333_s3 = scalar_lea.vmem %s72_s18, 1024  ;;  %p2338_p12 = scmp.lt.s32.totalorder %s72_s18, %s72_s18 }
  0x1f   :  { %p2334_p11 = scmp.ne.s32.totalorder %s72_s18, %s2333_s3  ;;  %p2339_p13 = scmp.lt.s32.totalorder %s2333_s3, %s2333_s3 }
  0x21   :  { %p2340_p0 = por %p2339_p13, %p2338_p12 }
  0x23   :  { %p2341_p1 = pnand %p2340_p0, %p2334_p11 }
  0x25   :  { %2344 = shalt.err (!%p2341_p1)
}
  0x26   :  { %s2538_s22 = smov 64   ;;  %s2539_s29 = smov 4  }
  0x27   :  { %77 = dma.hbm_to_vmem [thread:$0]  %s2986_s6, 1024, %s72_s18, [#allocation13], %s2538_s22, %s2538_s22, %s2539_s29  }
  0x28   :  { %s2345_s19 = scalar_lea.hbm %s2988_s8, 1024 }
  0x29   :  { %p2346_p2 = scmp.ne.s32.totalorder %s2988_s8, %s2345_s19  ;;  %p2349_p3 = scmp.lt.u32.totalorder %s2345_s19, %s2988_s8 }
  0x2b   :  { %p2351_p4 = pnand %p2349_p3, %p2346_p2 }
  0x2d   :  { %2354 = shalt.err (!%p2351_p4)
}
  0x2e   :  { %s2355_s26 = scalar_lea.vmem %s96_s20, 1024  ;;  %p2360_p6 = scmp.lt.s32.totalorder %s96_s20, %s96_s20 }
  0x2f   :  { %p2356_p5 = scmp.ne.s32.totalorder %s96_s20, %s2355_s26  ;;  %p2361_p7 = scmp.lt.s32.totalorder %s2355_s26, %s2355_s26 }
  0x31   :  { %p2362_p8 = por %p2361_p7, %p2360_p6 }
  0x33   :  { %p2363_p9 = pnand %p2362_p8, %p2356_p5 }
  0x35   :  { %2366 = shalt.err (!%p2363_p9)
}
  0x36   :  { %101 = dma.hbm_to_vmem [thread:$0]  %s2988_s8, 1024, %s96_s20, [#allocation16], %s2538_s22, %s2538_s22, %s2539_s29  }
  0x37   :  { %s2540_s27 = smov [#allocation6]   ;;  %s2541_s3 = smov [#allocation11]  }
  0x38   :  { %s29_s28 = sshll.u32 %s2540_s27, 4  ;;  %s59_s30 = sshll.u32 %s2541_s3, 4  ;;  %s30_s28 = int_to_ptr.vmem [resolvable:$true] %s29_s28  ;;  %s60_s30 = int_to_ptr.vmem [resolvable:$true] %s59_s30 }
  0x39   :  { %s2367_s17 = scalar_lea.hbm %s2980_s0, 512 }
  0x3a   :  { %p2368_p10 = scmp.ne.s32.totalorder %s2980_s0, %s2367_s17  ;;  %p2371_p11 = scmp.lt.u32.totalorder %s2367_s17, %s2980_s0 }
  0x3c   :  { %p2373_p12 = pnand %p2371_p11, %p2368_p10 }
  0x3e   :  { %2376 = shalt.err (!%p2373_p12)
}
  0x3f   :  { %s2377_s8 = scalar_lea.vmem %s30_s28, 512  ;;  %p2382_p0 = scmp.lt.s32.totalorder %s30_s28, %s30_s28 }
  0x40   :  { %p2378_p13 = scmp.ne.s32.totalorder %s30_s28, %s2377_s8  ;;  %p2383_p1 = scmp.lt.s32.totalorder %s2377_s8, %s2377_s8 }
  0x42   :  { %p2384_p2 = por %p2383_p1, %p2382_p0 }
  0x44   :  { %p2385_p3 = pnand %p2384_p2, %p2378_p13 }
  0x46   :  { %2388 = shalt.err (!%p2385_p3)
}
  0x47   :  { %35 = dma.hbm_to_vmem [thread:$0]  %s2980_s0, 512, %s30_s28, [#allocation7], %s2534_s13, %s2534_s13, %s2535_s14  }
  0x48   :  { %s2389_s18 = scalar_lea.hbm %s2985_s5, 1024 }
  0x49   :  { %p2390_p4 = scmp.ne.s32.totalorder %s2985_s5, %s2389_s18  ;;  %p2393_p5 = scmp.lt.u32.totalorder %s2389_s18, %s2985_s5 }
  0x4b   :  { %p2395_p6 = pnand %p2393_p5, %p2390_p4 }
  0x4d   :  { %2398 = shalt.err (!%p2395_p6)
}
  0x4e   :  { %s2399_s17 = scalar_lea.vmem %s60_s30, 1024  ;;  %p2404_p8 = scmp.lt.s32.totalorder %s60_s30, %s60_s30 }
  0x4f   :  { %p2400_p7 = scmp.ne.s32.totalorder %s60_s30, %s2399_s17  ;;  %p2405_p9 = scmp.lt.s32.totalorder %s2399_s17, %s2399_s17 }
  0x51   :  { %p2406_p10 = por %p2405_p9, %p2404_p8 }
  0x53   :  { %p2407_p11 = pnand %p2406_p10, %p2400_p7 }
  0x55   :  { %2410 = shalt.err (!%p2407_p11)
}
  0x56   :  { %65 = dma.hbm_to_vmem [thread:$0]  %s2985_s5, 1024, %s60_s30, [#allocation10], %s2538_s22, %s2538_s22, %s2539_s29  }
  0x57   :  { %s2542_s19 = smov [#allocation14]   ;;  %s2543_s23 = smov [#allocation17]  }
  0x58   :  { %s83_s21 = sshll.u32 %s2542_s19, 4  ;;  %s107_s24 = sshll.u32 %s2543_s23, 4  ;;  %s84_s21 = int_to_ptr.vmem [resolvable:$true] %s83_s21  ;;  %s108_s24 = int_to_ptr.vmem [resolvable:$true] %s107_s24 }
  0x59   :  { %s2411_s25 = scalar_lea.hbm %s2987_s7, 1024 }
  0x5a   :  { %p2412_p12 = scmp.ne.s32.totalorder %s2987_s7, %s2411_s25  ;;  %p2415_p13 = scmp.lt.u32.totalorder %s2411_s25, %s2987_s7 }
  0x5c   :  { %p2417_p0 = pnand %p2415_p13, %p2412_p12 }
  0x5e   :  { %2420 = shalt.err (!%p2417_p0)
}
  0x5f   :  { %s2421_s5 = scalar_lea.vmem %s84_s21, 1024  ;;  %p2426_p2 = scmp.lt.s32.totalorder %s84_s21, %s84_s21 }
  0x60   :  { %p2422_p1 = scmp.ne.s32.totalorder %s84_s21, %s2421_s5  ;;  %p2427_p3 = scmp.lt.s32.totalorder %s2421_s5, %s2421_s5 }
  0x62   :  { %p2428_p4 = por %p2427_p3, %p2426_p2 }
  0x64   :  { %p2429_p5 = pnand %p2428_p4, %p2422_p1 }
  0x66   :  { %2432 = shalt.err (!%p2429_p5)
}
  0x67   :  { %89 = dma.hbm_to_vmem [thread:$0]  %s2987_s7, 1024, %s84_s21, [#allocation13], %s2538_s22, %s2538_s22, %s2539_s29  }
  0x68   :  { %s2433_s17 = scalar_lea.hbm %s2989_s9, 4096 }
  0x69   :  { %p2434_p6 = scmp.ne.s32.totalorder %s2989_s9, %s2433_s17  ;;  %p2437_p7 = scmp.lt.u32.totalorder %s2433_s17, %s2989_s9 }
  0x6b   :  { %p2439_p8 = pnand %p2437_p7, %p2434_p6 }
  0x6d   :  { %2442 = shalt.err (!%p2439_p8)
}
  0x6e   :  { %s2443_s8 = scalar_lea.vmem %s108_s24, 4096  ;;  %p2448_p10 = scmp.lt.s32.totalorder %s108_s24, %s108_s24 }
  0x6f   :  { %p2444_p9 = scmp.ne.s32.totalorder %s108_s24, %s2443_s8  ;;  %p2449_p11 = scmp.lt.s32.totalorder %s2443_s8, %s2443_s8 }
  0x71   :  { %p2450_p12 = por %p2449_p11, %p2448_p10 }
  0x73   :  { %p2451_p13 = pnand %p2450_p12, %p2444_p9 }
  0x75   :  { %2454 = shalt.err (!%p2451_p13)
}
  0x76   :  { %s2544_s7 = smov 256   ;;  %s2545_s22 = smov 16  }
  0x77   :  { %113 = dma.hbm_to_vmem [thread:$0]  %s2989_s9, 4096, %s108_s24, [#allocation16], %s2544_s7, %s2544_s7, %s2545_s22  }
  0x78   :  { %2521 = dma.done.wait [#allocation7], 512  }
  0x79   :  { %2522 = vsyncadd [#allocation7], 4294966784 }
  0x7a   :  { %2523 = dma.done.wait [#allocation10], 1280  }
  0x7b   :  { %2524 = vsyncadd [#allocation10], 4294966016 }
  0x7c   :  { %2525 = dma.done.wait [#allocation13], 2048  }
  0x7d   :  { %2526 = vsyncadd [#allocation13], 4294965248 }
  0x7e   :  { %2527 = dma.done.wait [#allocation16], 5120  }
  0x7f   :  { %2528 = vsyncadd [#allocation16], 4294962176  ;;  %v2546_v0 = vmov 0.0   ;;  %vm2547_vm0 = vmmov 0   ;;  %v2157_v1 = vld [vmem:[#allocation12] sm:$0xff]   ;;  %v2158_v2 = vld [vmem:[#allocation12 + $0x8] sm:$0xff]   ;;  %v140_v45 = vlaneseq }
  0x80   :  { %1943 = vmatprep.subr.bf16.mxu0 %v2546_v0  ;;  %1959 = vmatprep.mubr.msk.bf16.mxu0 %vm2547_vm0, %v2546_v0  ;;  %v2159_v3 = vld [vmem:[#allocation12 + $0x10] sm:$0xff]   ;;  %v2160_v4 = vld [vmem:[#allocation12 + $0x18] sm:$0xff]   ;;  %v2161_v5 = vld [vmem:[#allocation12 + $0x20] sm:$0xff]   ;;  %v2548_v44 = vmov 0   ;;  %vm517_vm5 = vcmask 130048   ;;  %vm1225_vm9 = vcmask 7168  }
  0x81   :  { %1963 = vmatprep.subr.bf16.mxu1 %v2546_v0  ;;  %1979 = vmatprep.mubr.msk.bf16.mxu1 %vm2547_vm0, %v2546_v0  ;;  %v2173_v6 = vld [vmem:[#allocation14] sm:$0xff]   ;;  %v2162_v7 = vld [vmem:[#allocation12 + $0x28] sm:$0xff]   ;;  %v2163_v9 = vld [vmem:[#allocation12 + $0x30] sm:$0xff]   ;;  %v2773_v47 = vshrl.u32 %v140_v45, 7  ;;  %v2780_v51 = vand.u32 127, %v140_v45  ;;  %1228 = vst.msk [vmem:[#allocation5] sm:$0xff] %vm1225_vm9, %v2546_v0 }
  0x82   :  { %1944 = vmatpush3.bf16.msra.mxu0 %v2157_v1  ;;  %1964 = vmatpush3.bf16.msra.mxu1 %v2173_v6  ;;  %v2174_v8 = vld [vmem:[#allocation14 + $0x8] sm:$0xff]   ;;  %v2175_v10 = vld [vmem:[#allocation14 + $0x10] sm:$0xff]   ;;  %v2164_v11 = vld [vmem:[#allocation12 + $0x38] sm:$0xff]   ;;  %1229 = vst.msk [vmem:[#allocation5 + $0x8] sm:$0xff] %vm1225_vm9, %v2546_v0  ;;  %s2550_s3 = smov [#allocation19]   ;;  %s2551_s16 = smov [#allocation18]  }
  0x83   :  { %1945 = vmatprep.subr.bf16.mxu0 %v2546_v0  ;;  %1965 = vmatprep.subr.bf16.mxu1 %v2546_v0  ;;  %v146_v12 = vld [vmem:[#allocation6] sm:$0xff]  ;;  %v2736_v13 = vld [vmem:[#allocation6 + $0x8] sm:$0xff]  ;;  %v2165_v15 = vld [vmem:[#allocation11] sm:$0xff]   ;;  %v512_v48 = vsub.s32 0, %v2773_v47  ;;  %v2778_v50 = vadd.s32 8, %v2773_v47  ;;  %s1724_s15 = sshll.u32 %s2550_s3, 4  ;;  %s1725_s15 = int_to_ptr.vmem [resolvable:$true] %s1724_s15 }
  0x84   :  { %v2176_v14 = vld [vmem:[#allocation14 + $0x18] sm:$0xff]   ;;  %v148_v16 = vpack.c.bf16 %v2736_v13, %v146_v12  ;;  %v2177_v17 = vld [vmem:[#allocation14 + $0x20] sm:$0xff]   ;;  %v2166_v18 = vld [vmem:[#allocation11 + $0x8] sm:$0xff]   ;;  %v359_v28 = vpack.c.bf16 %v2736_v13, %v2736_v13  ;;  %2155 = vset.pattern.permute.xlu0 %v2548_v44  ;;  %2156 = vset.pattern.permute.xlu1 %v2548_v44  ;;  %s1712_s17 = sshll.u32 %s2551_s16, 4  ;;  %s2455_s0 = scalar_lea.vmem %s1725_s15, 256  ;;  %s1713_s17 = int_to_ptr.vmem [resolvable:$true] %s1712_s17 }
  0x85   :  { %v2178_v19 = vld [vmem:[#allocation14 + $0x28] sm:$0xff]   ;;  %v2167_v20 = vld [vmem:[#allocation11 + $0x10] sm:$0xff]   ;;  %v2168_v22 = vld [vmem:[#allocation11 + $0x18] sm:$0xff]   ;;  %vm145_vm2 = vcmp.le.s32.totalorder %v2780_v51, %v2778_v50  ;;  %p2456_p0 = scmp.ne.s32.totalorder %s1725_s15, %s2455_s0  ;;  %p2460_p1 = scmp.lt.s32.totalorder %s1725_s15, %s1725_s15 }
  0x86   :  { %1946 = vmatpush3.bf16.msra.mxu0 %v2158_v2  ;;  %1966 = vmatpush3.bf16.msra.mxu1 %v2174_v8  ;;  %v2179_v21 = vld [vmem:[#allocation14 + $0x30] sm:$0xff]   ;;  %v2180_v23 = vld [vmem:[#allocation14 + $0x38] sm:$0xff]   ;;  %v2169_v24 = vld [vmem:[#allocation11 + $0x20] sm:$0xff]   ;;  %p2461_p2 = scmp.lt.s32.totalorder %s2455_s0, %s2455_s0 }
  0x87   :  { %1947 = vmatprep.subr.bf16.mxu0 %v2546_v0  ;;  %1967 = vmatprep.subr.bf16.mxu1 %v2546_v0  ;;  %v2170_v25 = vld [vmem:[#allocation11 + $0x28] sm:$0xff]   ;;  %v2171_v26 = vld [vmem:[#allocation11 + $0x30] sm:$0xff]   ;;  %v2172_v27 = vld [vmem:[#allocation11 + $0x38] sm:$0xff]  }
  0x88   :  { %v507_v46 = vld [vmem:[%s2981_s1] sm:$0x1]  ;;  %v2181_v60 = vld [vmem:[#allocation12] sm:$0xff]   ;;  %v2187_v8 = vld [vmem:[#allocation12 + $0x30] sm:$0xff]   ;;  %p2462_p3 = por %p2461_p2, %p2460_p1 }
  0x89   :  { %vm508_vm1 = vcmp.gt.f32.partialorder %v507_v46, 0.5  ;;  %v2182_v61 = vld [vmem:[#allocation12 + $0x8] sm:$0xff]   ;;  %v2185_v6 = vld [vmem:[#allocation12 + $0x20] sm:$0xff]  }
  0x8a   :  { %1948 = vmatpush3.bf16.msra.mxu0 %v2159_v3  ;;  %1968 = vmatpush3.bf16.msra.mxu1 %v2175_v10  ;;  %v509_v49 = vsel %vm508_vm1, 1, %v2548_v44  ;;  %v2797_v10 = vld [vmem:[#allocation6 + $0x10] sm:$0xff]  ;;  %v2214_v50 = vld [vmem:[#allocation15 + $0x8] sm:$0xff]   ;;  %p2463_p4 = pnand %p2462_p3, %p2456_p0 }
  0x8b   :  { %1949 = vmatprep.subr.bf16.mxu0 %v2546_v0  ;;  %1969 = vmatprep.subr.bf16.mxu1 %v2546_v0  ;;  %v513_v52 = vrot.slane %v509_v49, %v512_v48  ;;  %v2205_v46 = vld [vmem:[#allocation14] sm:$0xff]  }
  0x8d   :  { %vm514_vm3 = vcmp.eq.s32.totalorder %v513_v52, 1 }
  0x8e   :  { %1950 = vmatpush3.bf16.msra.mxu0 %v2160_v4  ;;  %1970 = vmatpush3.bf16.msra.mxu1 %v2176_v14  ;;  %vm515_vm4 = vmand %vm145_vm2, %vm514_vm3  ;;  %v2183_v4 = vld [vmem:[#allocation12 + $0x10] sm:$0xff]   ;;  %v2189_v14 = vld [vmem:[#allocation11] sm:$0xff]  }
  0x8f   :  { %1951 = vmatprep.subr.bf16.mxu0 %v2546_v0  ;;  %1971 = vmatprep.subr.bf16.mxu1 %v2546_v0 }
  0x92   :  { %1952 = vmatpush3.bf16.msra.mxu0 %v2161_v5  ;;  %1972 = vmatpush3.bf16.msra.mxu1 %v2177_v17  ;;  %v2184_v5 = vld [vmem:[#allocation12 + $0x18] sm:$0xff]  }
  0x93   :  { %1953 = vmatprep.subr.bf16.mxu0 %v2546_v0  ;;  %1973 = vmatprep.subr.bf16.mxu1 %v2546_v0  ;;  %v2192_v17 = vld [vmem:[#allocation11 + $0x18] sm:$0xff]  }
  0x96   :  { %1954 = vmatpush3.bf16.msra.mxu0 %v2162_v7  ;;  %1974 = vmatpush3.bf16.msra.mxu1 %v2178_v19  ;;  %v2186_v7 = vld [vmem:[#allocation12 + $0x28] sm:$0xff]  }
  0x97   :  { %1955 = vmatprep.subr.bf16.mxu0 %v2546_v0  ;;  %1975 = vmatprep.subr.bf16.mxu1 %v2546_v0  ;;  %v2194_v19 = vld [vmem:[#allocation11 + $0x28] sm:$0xff]  }
  0x9a   :  { %1956 = vmatpush3.bf16.msra.mxu0 %v2163_v9  ;;  %1976 = vmatpush3.bf16.msra.mxu1 %v2179_v21  ;;  %v2188_v9 = vld [vmem:[#allocation12 + $0x38] sm:$0xff]  }
  0x9b   :  { %1957 = vmatprep.subr.bf16.mxu0 %v2546_v0  ;;  %1977 = vmatprep.subr.bf16.mxu1 %v2546_v0  ;;  %v2196_v21 = vld [vmem:[#allocation11 + $0x38] sm:$0xff]  }
  0x9e   :  { %1958 = vmatpush3.bf16.msra.mxu0 %v2164_v11  ;;  %1978 = vmatpush3.bf16.msra.mxu1 %v2180_v23  ;;  %v2799_v11 = vld [vmem:[#allocation6 + $0x18] sm:$0xff] }
  0x9f   :  { %1983 = vmatprep.subr.bf16.mxu0 %v2546_v0  ;;  %2003 = vmatprep.subr.bf16.mxu1 %v2546_v0  ;;  %v2804_v12 = vpack.c.bf16 %v2799_v11, %v2797_v10 }
  0xa1   :  { %1960 = vmatmul.mubr.bf16.vlgmr.msra.gmra.mrb[0].mxu0 %v148_v16  ;;  %1980 = vmatmul.mubr.bf16.vlgmr.msra.gmra.mrb[0].mxu1 %v148_v16  ;;  %v2191_v16 = vld [vmem:[#allocation11 + $0x10] sm:$0xff]  }
  0xa2   :  { %1984 = vmatpush3.bf16.msra.mxu0 %v2165_v15  ;;  %1999 = vmatprep.mubr.msk.bf16.mxu0 %vm2547_vm0, %v2546_v0  ;;  %v2190_v15 = vld [vmem:[#allocation11 + $0x8] sm:$0xff]  }
  0xa3   :  { %1985 = vmatprep.subr.bf16.mxu0 %v2546_v0  ;;  %2005 = vmatprep.mubr.msk.bf16.mxu1 %vm2547_vm0, %v2546_v0 }
  0xa6   :  { %1986 = vmatpush3.bf16.msra.mxu0 %v2166_v18  ;;  %v2193_v18 = vld [vmem:[#allocation11 + $0x20] sm:$0xff]  }
  0xa7   :  { %1987 = vmatprep.subr.bf16.mxu0 %v2546_v0 }
  0xaa   :  { %1988 = vmatpush3.bf16.msra.mxu0 %v2167_v20  ;;  %v2195_v20 = vld [vmem:[#allocation11 + $0x30] sm:$0xff]  }
  0xab   :  { %1989 = vmatprep.subr.bf16.mxu0 %v2546_v0 }
  0xae   :  { %1990 = vmatpush3.bf16.msra.mxu0 %v2168_v22  ;;  %v897_v22 = vpack.c.bf16 %v2799_v11, %v2799_v11 }
  0xaf   :  { %1991 = vmatprep.subr.bf16.mxu0 %v2546_v0 }
  0xb2   :  { %1992 = vmatpush3.bf16.msra.mxu0 %v2169_v24 }
  0xb3   :  { %1993 = vmatprep.subr.bf16.mxu0 %v2546_v0 }
  0xb6   :  { %1994 = vmatpush3.bf16.msra.mxu0 %v2170_v25 }
  0xb7   :  { %1995 = vmatprep.subr.bf16.mxu0 %v2546_v0 }
  0xba   :  { %1996 = vmatpush3.bf16.msra.mxu0 %v2171_v26  ;;  %v2197_v26 = vld [vmem:[#allocation15] sm:$0xff]  }
  0xbb   :  { %1997 = vmatprep.subr.bf16.mxu0 %v2546_v0 }
  0xbe   :  { %1998 = vmatpush3.bf16.msra.mxu0 %v2172_v27 }
  0xbf   :  { %2035 = vmatprep.subr.bf16.mxu0 %v2546_v0 }
  0xc1   :  { %2000 = vmatmul.mubr.bf16.vlgmr.msra.gmra.mrb[4].mxu0 %v359_v28  ;;  %v2198_v28 = vld [vmem:[#allocation15 + $0x8] sm:$0xff]  }
  0xc2   :  { %2051 = vmatprep.mubr.msk.bf16.mxu0 %vm2547_vm0, %v2546_v0  ;;  %2036 = vmatpush3.bf16.msra.mxu0 %v2181_v60  ;;  %v2211_v60 = vld [vmem:[#allocation14 + $0x30] sm:$0xff]  }
  0xc3   :  { %2037 = vmatprep.subr.bf16.mxu0 %v2546_v0 }
  0xc6   :  { %2038 = vmatpush3.bf16.msra.mxu0 %v2182_v61  ;;  %v2212_v61 = vld [vmem:[#allocation14 + $0x38] sm:$0xff]  }
  0xc7   :  { %2039 = vmatprep.subr.bf16.mxu0 %v2546_v0 }
  0xca   :  { %2040 = vmatpush3.bf16.msra.mxu0 %v2183_v4 }
  0xcb   :  { %2041 = vmatprep.subr.bf16.mxu0 %v2546_v0 }
  0xce   :  { %2042 = vmatpush3.bf16.msra.mxu0 %v2184_v5 }
  0xcf   :  { %2043 = vmatprep.subr.bf16.mxu0 %v2546_v0 }
  0xd2   :  { %2044 = vmatpush3.bf16.msra.mxu0 %v2185_v6  ;;  %v1813_v6 = vld [vmem:[%s2981_s1 + $0x1] sm:$0x1] }
  0xd3   :  { %2045 = vmatprep.subr.bf16.mxu0 %v2546_v0  ;;  %vm1047_vm6 = vcmp.gt.f32.partialorder %v1813_v6, 0.5  ;;  %v2256_v6 = vld [vmem:[#allocation17 + $0xac] ss:$16 sps:$4 sm:$0xff]  }
  0xd6   :  { %2046 = vmatpush3.bf16.msra.mxu0 %v2186_v7 }
  0xd7   :  { %2047 = vmatprep.subr.bf16.mxu0 %v2546_v0 }
  0xda   :  { %2048 = vmatpush3.bf16.msra.mxu0 %v2187_v8 }
  0xdb   :  { %2049 = vmatprep.subr.bf16.mxu0 %v2546_v0 }
  0xde   :  { %2050 = vmatpush3.bf16.msra.mxu0 %v2188_v9 }
  0xdf   :  { %2075 = vmatprep.subr.bf16.mxu0 %v2546_v0 }
  0xe1   :  { %2052 = vmatmul.mubr.bf16.vlgmr.msra.gmra.mrb[8].mxu0 %v2804_v12 }
  0xe2   :  { %2076 = vmatpush3.bf16.msra.mxu0 %v2189_v14  ;;  %2091 = vmatprep.mubr.msk.bf16.mxu0 %vm2547_vm0, %v2546_v0  ;;  %v1048_v14 = vsel %vm1047_vm6, 1, %v2548_v44 }
  0xe3   :  { %2077 = vmatprep.subr.bf16.mxu0 %v2546_v0 }
  0xe6   :  { %2078 = vmatpush3.bf16.msra.mxu0 %v2190_v15  ;;  %v1052_v15 = vrot.slane %v1048_v14, %v512_v48  ;;  %v2265_v14 = vld [vmem:[#allocation17 + $0xe4] ss:$16 sps:$4 sm:$0xff]  }
  0xe7   :  { %2079 = vmatprep.subr.bf16.mxu0 %v2546_v0 }
  0xe8   :  { %vm1053_vm7 = vcmp.eq.s32.totalorder %v1052_v15, 1  ;;  %v2263_v15 = vld [vmem:[#allocation17 + $0xe0] ss:$16 sps:$4 sm:$0xff]  }
  0xe9   :  { %vm1054_vm8 = vmand %vm145_vm2, %vm1053_vm7 }
  0xea   :  { %2080 = vmatpush3.bf16.msra.mxu0 %v2191_v16 }
  0xeb   :  { %2081 = vmatprep.subr.bf16.mxu0 %v2546_v0 }
  0xee   :  { %2082 = vmatpush3.bf16.msra.mxu0 %v2192_v17 }
  0xef   :  { %2083 = vmatprep.subr.bf16.mxu0 %v2546_v0 }
  0xf2   :  { %2084 = vmatpush3.bf16.msra.mxu0 %v2193_v18 }
  0xf3   :  { %2085 = vmatprep.subr.bf16.mxu0 %v2546_v0 }
  0xf6   :  { %2086 = vmatpush3.bf16.msra.mxu0 %v2194_v19 }
  0xf7   :  { %2087 = vmatprep.subr.bf16.mxu0 %v2546_v0 }
  0xfa   :  { %2088 = vmatpush3.bf16.msra.mxu0 %v2195_v20 }
  0xfb   :  { %2089 = vmatprep.subr.bf16.mxu0 %v2546_v0 }
  0xfe   :  { %2090 = vmatpush3.bf16.msra.mxu0 %v2196_v21 }
  0xff   :  { %2107 = vmatprep.subr.bf16.mxu0 %v2546_v0 }
 0x101   :  { %2092 = vmatmul.mubr.bf16.vlgmr.msra.gmra.mrb[12].mxu0 %v897_v22 }
 0x102   :  { %2123 = vmatprep.mubr.msk.bf16.mxu0 %vm2547_vm0, %v2546_v0 }
 0x174   :  { %v247_v29 = vpop.f32.mrb[0].mxu0  ;;  %v352_v34 = vpop.f32.mrb[0].mxu1 }
 0x175   :  { %v1961_v30 = vpop.f32.mrb[1].mxu0  ;;  %v1981_v35 = vpop.f32.mrb[1].mxu1 }
 0x176   :  { %v250_v31 = vpop.f32.mrb[2].mxu0  ;;  %v355_v36 = vpop.f32.mrb[2].mxu1  ;;  %v2200_v30 = vld [vmem:[#allocation15 + $0x18] sm:$0xff]  }
 0x177   :  { %v465_v32 = vpack.c.bf16 %v250_v31, %v247_v29  ;;  %v1962_v33 = vpop.f32.mrb[3].mxu0  ;;  %v530_v37 = vpack.c.bf16 %v355_v36, %v352_v34  ;;  %v1982_v38 = vpop.f32.mrb[3].mxu1  ;;  %v2199_v29 = vld [vmem:[#allocation15 + $0x10] sm:$0xff]   ;;  %v2201_v31 = vld [vmem:[#allocation15 + $0x20] sm:$0xff]   ;;  %v2204_v34 = vld [vmem:[#allocation15 + $0x38] sm:$0xff]  }
 0x178   :  { %v2203_v33 = vld [vmem:[#allocation15 + $0x30] sm:$0xff]  }
 0x179   :  { %2004 = vmatpush3.bf16.xpose.msra.mxu1 %v465_v32  ;;  %v2202_v32 = vld [vmem:[#allocation15 + $0x28] sm:$0xff]  }
 0x17a   :  { %2009 = vmatprep.subr.bf16.mxu1 %v2546_v0 }
 0x194   :  { %v458_v39 = vpop.f32.mrb[4].mxu0 }
 0x195   :  { %v464_v40 = vpack.c.bf16 %v458_v39, %v458_v39  ;;  %v2001_v41 = vpop.f32.mrb[5].mxu0 }
 0x196   :  { %v461_v42 = vpop.f32.mrb[6].mxu0 }
 0x197   :  { %v2002_v43 = vpop.f32.mrb[7].mxu0  ;;  %2006 = vmatmul.mubr.bf16.vlgmr.msra.gmra.mrb[4].mxu1 %v464_v40 }
 0x198   :  { %2010 = vmatpush3.bf16.msra.mxu1 %v530_v37  ;;  %2011 = vmatprep.mubr.msk.bf16.mxu1 %vm2547_vm0, %v2546_v0 }
 0x199   :  { %2015 = vmatprep.subr.bf16.mxu1 %v2546_v0 }
 0x1b4   :  { %v785_v35 = vpop.f32.mrb[8].mxu0 }
 0x1b5   :  { %v2053_v36 = vpop.f32.mrb[9].mxu0 }
 0x1b6   :  { %v788_v37 = vpop.f32.mrb[10].mxu0  ;;  %v2220_v36 = vld [vmem:[#allocation15 + $0x38] sm:$0xff]  }
 0x1b7   :  { %v1003_v38 = vpack.c.bf16 %v788_v37, %v785_v35  ;;  %v2054_v39 = vpop.f32.mrb[11].mxu0  ;;  %v2221_v37 = vld [vmem:[#allocation17] ss:$16 sps:$4 sm:$0xff]  }
 0x1b8   :  { %v2226_v39 = vld [vmem:[#allocation17 + $0xc] ss:$16 sps:$4 sm:$0xff]  }
 0x1d4   :  { %v996_v40 = vpop.f32.mrb[12].mxu0 }
 0x1d5   :  { %v2093_v41 = vpop.f32.mrb[13].mxu0 }
 0x1d6   :  { %v999_v42 = vpop.f32.mrb[14].mxu0  ;;  %v2227_v41 = vld [vmem:[#allocation17 + $0x20] ss:$16 sps:$4 sm:$0xff]  }
 0x1d7   :  { %v2094_v43 = vpop.f32.mrb[15].mxu0  ;;  %v2235_v42 = vld [vmem:[#allocation17 + $0x44] ss:$16 sps:$4 sm:$0xff]  }
 0x1d8   :  { %v2233_v43 = vld [vmem:[#allocation17 + $0x40] ss:$16 sps:$4 sm:$0xff]  }
 0x26a   :  { %v500_v53 = vpop.f32.mrb[4].mxu1 }
 0x26b   :  { %v506_v54 = vmul.f32 0.088388346, %v500_v53  ;;  %v2007_v55 = vpop.f32.mrb[5].mxu1 }
 0x26c   :  { %v503_v56 = vpop.f32.mrb[6].mxu1  ;;  %v2206_v55 = vld [vmem:[#allocation14 + $0x8] sm:$0xff]  }
 0x26d   :  { %v2008_v57 = vpop.f32.mrb[7].mxu1  ;;  %v516_v58 = vsel %vm515_vm4, %v506_v54, -1e+30  ;;  %v2207_v56 = vld [vmem:[#allocation14 + $0x10] sm:$0xff]  }
 0x26e   :  { %v518_v59 = vsel %vm517_vm5, %v516_v58, -inf  ;;  %v2208_v57 = vld [vmem:[#allocation14 + $0x18] sm:$0xff]  }
 0x26f   :  { %519 = vmax.xlane.f32.xlu0 %v518_v59  ;;  %v2210_v59 = vld [vmem:[#allocation14 + $0x28] sm:$0xff]  }
 0x2fc   :  { %v520_v62 = vpop.xlane.xlu0 %519 }
 0x2fd   :  { %v521_v63 = vsub.f32 %v516_v58, %v520_v62  ;;  %v2209_v58 = vld [vmem:[#allocation14 + $0x20] sm:$0xff]   ;;  %v1002_v62 = vpack.c.bf16 %v996_v40, %v996_v40 }
 0x2fe   :  { %v2229_v40 = vld [vmem:[#allocation17 + $0x24] ss:$16 sps:$4 sm:$0xff]  }
 0x2ff   :  { %v522_v1 = vmul.f32 1.442695, %v521_v63 }
 0x301   :  { %2269 = vpow2.f32 %v522_v1 }
 0x30b   :  { %v2270_v2 = vpop.eup %2269 }
 0x30c   :  { %v524_v3 = vsel %vm517_vm5, %v2270_v2, 0.0 }
 0x30d   :  { %525 = vadd.xlane.f32.xlu0 %v524_v3 }
 0x39a   :  { %v526_v23 = vpop.xlane.xlu0 %525 }
 0x39b   :  { %2271 = vrcp.f32 %v526_v23 }
 0x3a5   :  { %v2272_v24 = vpop.eup %2271 }
 0x3a6   :  { %v528_v25 = vmul.f32 %v2272_v24, %v2270_v2 }
 0x3a8   :  { %v529_v27 = vpack.c.bf16 %v528_v25, %v528_v25 }
 0x3aa   :  { %2012 = vmatmul.mubr.msk.bf16.vlgmr.msra.gmra.mrb[8].mxu1 %vm517_vm5, %v529_v27  ;;  %v2215_v27 = vld [vmem:[#allocation15 + $0x10] sm:$0xff]  }
 0x3ab   :  { %2016 = vmatpush3.bf16.msra.mxu1 %v2197_v26  ;;  %2031 = vmatprep.mubr.msk.bf16.mxu1 %vm2547_vm0, %v2546_v0  ;;  %v2213_v26 = vld [vmem:[#allocation15] sm:$0xff]  }
 0x3ac   :  { %2017 = vmatprep.subr.bf16.mxu1 %v2546_v0  ;;  %2108 = vmatpush3.bf16.msra.mxu0 %v2213_v26 }
 0x3ad   :  { %2109 = vmatprep.subr.bf16.mxu0 %v2546_v0 }
 0x3af   :  { %2018 = vmatpush3.bf16.msra.mxu1 %v2198_v28  ;;  %v2216_v28 = vld [vmem:[#allocation15 + $0x18] sm:$0xff]  }
 0x3b0   :  { %2019 = vmatprep.subr.bf16.mxu1 %v2546_v0  ;;  %2110 = vmatpush3.bf16.msra.mxu0 %v2214_v50 }
 0x3b1   :  { %2111 = vmatprep.subr.bf16.mxu0 %v2546_v0 }
 0x3b3   :  { %2020 = vmatpush3.bf16.msra.mxu1 %v2199_v29  ;;  %v2217_v29 = vld [vmem:[#allocation15 + $0x20] sm:$0xff]  }
 0x3b4   :  { %2021 = vmatprep.subr.bf16.mxu1 %v2546_v0  ;;  %2112 = vmatpush3.bf16.msra.mxu0 %v2215_v27 }
 0x3b5   :  { %2113 = vmatprep.subr.bf16.mxu0 %v2546_v0 }
 0x3b7   :  { %2022 = vmatpush3.bf16.msra.mxu1 %v2200_v30  ;;  %v2218_v30 = vld [vmem:[#allocation15 + $0x28] sm:$0xff]  }
 0x3b8   :  { %2023 = vmatprep.subr.bf16.mxu1 %v2546_v0  ;;  %2114 = vmatpush3.bf16.msra.mxu0 %v2216_v28 }
 0x3b9   :  { %2115 = vmatprep.subr.bf16.mxu0 %v2546_v0 }
 0x3bb   :  { %2024 = vmatpush3.bf16.msra.mxu1 %v2201_v31  ;;  %v2219_v31 = vld [vmem:[#allocation15 + $0x30] sm:$0xff]  }
 0x3bc   :  { %2025 = vmatprep.subr.bf16.mxu1 %v2546_v0  ;;  %2116 = vmatpush3.bf16.msra.mxu0 %v2217_v29 }
 0x3bd   :  { %2117 = vmatprep.subr.bf16.mxu0 %v2546_v0 }
 0x3bf   :  { %2026 = vmatpush3.bf16.msra.mxu1 %v2202_v32 }
 0x3c0   :  { %2027 = vmatprep.subr.bf16.mxu1 %v2546_v0  ;;  %2118 = vmatpush3.bf16.msra.mxu0 %v2218_v30 }
 0x3c1   :  { %2119 = vmatprep.subr.bf16.mxu0 %v2546_v0 }
 0x3c3   :  { %2028 = vmatpush3.bf16.msra.mxu1 %v2203_v33 }
 0x3c4   :  { %2029 = vmatprep.subr.bf16.mxu1 %v2546_v0  ;;  %2120 = vmatpush3.bf16.msra.mxu0 %v2219_v31 }
 0x3c5   :  { %2121 = vmatprep.subr.bf16.mxu0 %v2546_v0 }
 0x3c7   :  { %2030 = vmatpush3.bf16.msra.mxu1 %v2204_v34 }
 0x3c8   :  { %2055 = vmatprep.subr.bf16.mxu1 %v2546_v0  ;;  %2122 = vmatpush3.bf16.msra.mxu0 %v2220_v36 }
 0x3c9   :  { %1466 = vmatprep.subr.bf16.mxu0 %v2226_v39 }
 0x47d   :  { %v568_v45 = vpop.f32.mrb[8].mxu1 }
 0x47e   :  { %v574_v49 = vpack.c.bf16 %v568_v45, %v568_v45  ;;  %v2013_v52 = vpop.f32.mrb[9].mxu1  ;;  %v2241_v45 = vld [vmem:[#allocation17 + $0x64] ss:$16 sps:$4 sm:$0xff]  }
 0x47f   :  { %v571_v53 = vpop.f32.mrb[10].mxu1  ;;  %v2245_v52 = vld [vmem:[#allocation17 + $0x80] ss:$16 sps:$4 sm:$0xff]  }
 0x480   :  { %v2014_v54 = vpop.f32.mrb[11].mxu1  ;;  %2032 = vmatmul.mubr.bf16.vlgmr.msra.gmra.mrb[12].mxu1 %v574_v49  ;;  %v2247_v49 = vld [vmem:[#allocation17 + $0x84] ss:$16 sps:$4 sm:$0xff]  }
 0x481   :  { %2056 = vmatpush3.bf16.msra.mxu1 %v2205_v46  ;;  %2071 = vmatprep.mubr.msk.bf16.mxu1 %vm2547_vm0, %v2546_v0  ;;  %v2239_v46 = vld [vmem:[#allocation17 + $0x60] ss:$16 sps:$4 sm:$0xff]   ;;  %v2224_v54 = vld [vmem:[#allocation17 + $0x8] ss:$16 sps:$4 sm:$0xff]  }
 0x482   :  { %2057 = vmatprep.subr.bf16.mxu1 %v2546_v0 }
 0x485   :  { %2058 = vmatpush3.bf16.msra.mxu1 %v2206_v55 }
 0x486   :  { %2059 = vmatprep.subr.bf16.mxu1 %v2546_v0 }
 0x489   :  { %2060 = vmatpush3.bf16.msra.mxu1 %v2207_v56 }
 0x48a   :  { %2061 = vmatprep.subr.bf16.mxu1 %v2546_v0 }
 0x48d   :  { %2062 = vmatpush3.bf16.msra.mxu1 %v2208_v57  ;;  %v2232_v57 = vld [vmem:[#allocation17 + $0x2c] ss:$16 sps:$4 sm:$0xff]  }
 0x48e   :  { %2063 = vmatprep.subr.bf16.mxu1 %v2546_v0 }
 0x491   :  { %2064 = vmatpush3.bf16.msra.mxu1 %v2209_v58 }
 0x492   :  { %2065 = vmatprep.subr.bf16.mxu1 %v2546_v0 }
 0x495   :  { %2066 = vmatpush3.bf16.msra.mxu1 %v2210_v59 }
 0x496   :  { %2067 = vmatprep.subr.bf16.mxu1 %v2546_v0 }
 0x499   :  { %2068 = vmatpush3.bf16.msra.mxu1 %v2211_v60  ;;  %v2230_v60 = vld [vmem:[#allocation17 + $0x28] ss:$16 sps:$4 sm:$0xff]  }
 0x49a   :  { %2069 = vmatprep.subr.bf16.mxu1 %v2546_v0 }
 0x49d   :  { %2070 = vmatpush3.bf16.msra.mxu1 %v2212_v61  ;;  %v2238_v61 = vld [vmem:[#allocation17 + $0x4c] ss:$16 sps:$4 sm:$0xff]  }
 0x49e   :  { %2095 = vmatprep.subr.bf16.mxu1 %v2546_v0 }
 0x4a0   :  { %2072 = vmatmul.mubr.bf16.vlgmr.msra.gmra.mrb[16].mxu1 %v2804_v12 }
 0x4a1   :  { %2097 = vmatprep.mubr.msk.bf16.mxu1 %vm2547_vm0, %v2546_v0 }
 0x4a6   :  { %2096 = vmatpush3.bf16.xpose.msra.mxu1 %v1003_v38  ;;  %v2223_v38 = vld [vmem:[#allocation17 + $0x4] ss:$16 sps:$4 sm:$0xff]  }
 0x4a7   :  { %2101 = vmatprep.subr.bf16.mxu1 %v2546_v0 }
 0x4ad   :  { %2098 = vmatmul.mubr.bf16.vlgmr.msra.gmra.mrb[20].mxu1 %v1002_v62  ;;  %v2236_v62 = vld [vmem:[#allocation17 + $0x48] ss:$16 sps:$4 sm:$0xff]  }
 0x4ae   :  { %2103 = vmatprep.mubr.msk.bf16.mxu1 %vm2547_vm0, %v2546_v0 }
 0x553   :  { %v673_v63 = vpop.f32.mrb[12].mxu1 }
 0x554   :  { %v2850_v1 = vadd.f32 %v673_v63, %v2736_v13  ;;  %v2033_v2 = vpop.f32.mrb[13].mxu1  ;;  %v2244_v63 = vld [vmem:[#allocation17 + $0x6c] ss:$16 sps:$4 sm:$0xff]  }
 0x555   :  { %v676_v3 = vpop.f32.mrb[14].mxu1  ;;  %v2242_v2 = vld [vmem:[#allocation17 + $0x68] ss:$16 sps:$4 sm:$0xff]  }
 0x556   :  { %v681_v4 = vpack.c.bf16 %v2850_v1, %v2850_v1  ;;  %683 = vst [vmem:[#allocation19] sm:$0xff] %v2850_v1  ;;  %v2034_v5 = vpop.f32.mrb[15].mxu1  ;;  %v2250_v3 = vld [vmem:[#allocation17 + $0x8c] ss:$16 sps:$4 sm:$0xff]  }
 0x557   :  { %v2253_v5 = vld [vmem:[#allocation17 + $0xa4] ss:$16 sps:$4 sm:$0xff]  }
 0x558   :  { %682 = vst [vmem:[#allocation3] sm:$0xf] %v681_v4  ;;  %v2248_v4 = vld [vmem:[#allocation17 + $0x88] ss:$16 sps:$4 sm:$0xff]  }
 0x573   :  { %v890_v7 = vpop.f32.mrb[16].mxu1 }
 0x574   :  { %v2073_v8 = vpop.f32.mrb[17].mxu1 }
 0x575   :  { %v893_v9 = vpop.f32.mrb[18].mxu1  ;;  %v2254_v8 = vld [vmem:[#allocation17 + $0xa8] ss:$16 sps:$4 sm:$0xff]  }
 0x576   :  { %v1068_v12 = vpack.c.bf16 %v893_v9, %v890_v7  ;;  %v2074_v13 = vpop.f32.mrb[19].mxu1  ;;  %v2251_v7 = vld [vmem:[#allocation17 + $0xa0] ss:$16 sps:$4 sm:$0xff]   ;;  %v2262_v9 = vld [vmem:[#allocation17 + $0xcc] ss:$16 sps:$4 sm:$0xff]  }
 0x577   :  { %v2260_v13 = vld [vmem:[#allocation17 + $0xc8] ss:$16 sps:$4 sm:$0xff]  }
 0x578   :  { %2102 = vmatpush3.bf16.msra.mxu1 %v1068_v12  ;;  %v2257_v12 = vld [vmem:[#allocation17 + $0xc0] ss:$16 sps:$4 sm:$0xff]  }
 0x579   :  { %1423 = vmatprep.subr.bf16.mxu1 %v2223_v38 }
 0x580   :  { %v1038_v16 = vpop.f32.mrb[20].mxu1 }
 0x581   :  { %v1044_v17 = vmul.f32 0.088388346, %v1038_v16  ;;  %v2099_v18 = vpop.f32.mrb[21].mxu1  ;;  %v2266_v16 = vld [vmem:[#allocation17 + $0xe8] ss:$16 sps:$4 sm:$0xff]  }
 0x582   :  { %v1041_v19 = vpop.f32.mrb[22].mxu1 }
 0x583   :  { %v2100_v20 = vpop.f32.mrb[23].mxu1  ;;  %v1055_v21 = vsel %vm1054_vm8, %v1044_v17, -1e+30  ;;  %v2268_v17 = vld [vmem:[#allocation17 + $0xec] ss:$16 sps:$4 sm:$0xff]  }
 0x584   :  { %v1056_v22 = vsel %vm517_vm5, %v1055_v21, -inf }
 0x585   :  { %1057 = vmax.xlane.f32.xlu1 %v1056_v22 }
 0x612   :  { %v1058_v23 = vpop.xlane.xlu1 %1057 }
 0x613   :  { %v1059_v24 = vsub.f32 %v1055_v21, %v1058_v23 }
 0x615   :  { %v1060_v25 = vmul.f32 1.442695, %v1059_v24 }
 0x617   :  { %2273 = vpow2.f32 %v1060_v25 }
 0x621   :  { %v2274_v47 = vpop.eup %2273 }
 0x622   :  { %v1062_v48 = vsel %vm517_vm5, %v2274_v47, 0.0 }
 0x623   :  { %1063 = vadd.xlane.f32.xlu1 %v1062_v48 }
 0x6b0   :  { %v1064_v32 = vpop.xlane.xlu1 %1063 }
 0x6b1   :  { %2275 = vrcp.f32 %v1064_v32 }
 0x6bb   :  { %v2276_v33 = vpop.eup %2275 }
 0x6bc   :  { %v1066_v34 = vmul.f32 %v2276_v33, %v2274_v47  ;;  %v2549_v47 = vmov -1e+30  }
 0x6bd   :  { %1226 = vst.msk [vmem:[#allocation4] sm:$0xff] %vm1225_vm9, %v2549_v47  ;;  %1227 = vst.msk [vmem:[#allocation4 + $0x8] sm:$0xff] %vm1225_vm9, %v2549_v47 }
 0x6be   :  { %v1067_v35 = vpack.c.bf16 %v1066_v34, %v1066_v34 }
 0x6c0   :  { %2104 = vmatmul.mubr.msk.bf16.vlgmr.msra.gmra.mrb[24].mxu1 %vm517_vm5, %v1067_v35 }
 0x6c1   :  { %1455 = vmatprep.mubr.bf16.mxu1 %v2548_v44  ;;  %1424 = vmatpush1.bf16.msra.mxu1 %v2221_v37 }
 0x6c2   :  { %1425 = vmatprep.subr.bf16.mxu1 %v2229_v40 }
 0x6c4   :  { %v2888_v40 = vld [vmem:[#allocation4] sm:$0xff] }
 0x6c5   :  { %1426 = vmatpush1.bf16.msra.mxu1 %v2227_v41 }
 0x6c6   :  { %1427 = vmatprep.subr.bf16.mxu1 %v2235_v42  ;;  %v2890_v42 = vld [vmem:[#allocation4 + $0x8] sm:$0xff] }
 0x6c9   :  { %1428 = vmatpush1.bf16.msra.mxu1 %v2233_v43 }
 0x6ca   :  { %1429 = vmatprep.subr.bf16.mxu1 %v2241_v45 }
 0x6cd   :  { %1430 = vmatpush1.bf16.msra.mxu1 %v2239_v46 }
 0x6ce   :  { %1431 = vmatprep.subr.bf16.mxu1 %v2247_v49 }
 0x6d1   :  { %1432 = vmatpush1.bf16.msra.mxu1 %v2245_v52 }
 0x6d2   :  { %1433 = vmatprep.subr.bf16.mxu1 %v2253_v5 }
 0x6d5   :  { %1434 = vmatpush1.bf16.msra.mxu1 %v2251_v7 }
 0x793   :  { %v1106_v53 = vpop.f32.mrb[24].mxu1 }
 0x794   :  { %v1112_v55 = vpack.c.bf16 %v1106_v53, %v1106_v53  ;;  %v2105_v56 = vpop.f32.mrb[25].mxu1 }
 0x795   :  { %v1109_v58 = vpop.f32.mrb[26].mxu1 }
 0x796   :  { %v2106_v59 = vpop.f32.mrb[27].mxu1  ;;  %2124 = vmatmul.mubr.bf16.vlgmr.msra.gmra.mrb[16].mxu0 %v1112_v55 }
 0x797   :  { %1467 = vmatpush1.bf16.msra.mxu0 %v2224_v54  ;;  %1498 = vmatprep.mubr.bf16.mxu0 %v2548_v44  ;;  %v2259_v44 = vld [vmem:[#allocation17 + $0xc4] ss:$16 sps:$4 sm:$0xff]  }
 0x798   :  { %1468 = vmatprep.subr.bf16.mxu0 %v2232_v57  ;;  %1435 = vmatprep.subr.bf16.mxu1 %v2259_v44 }
 0x799   :  { %1436 = vmatpush1.bf16.msra.mxu1 %v2257_v12 }
 0x79a   :  { %1437 = vmatprep.subr.bf16.mxu1 %v2265_v14 }
 0x79b   :  { %1469 = vmatpush1.bf16.msra.mxu0 %v2230_v60 }
 0x79c   :  { %1470 = vmatprep.subr.bf16.mxu0 %v2238_v61 }
 0x79d   :  { %1438 = vmatpush1.bf16.msra.mxu1 %v2263_v15 }
 0x79f   :  { %1471 = vmatpush1.bf16.msra.mxu0 %v2236_v62 }
 0x7a0   :  { %1472 = vmatprep.subr.bf16.mxu0 %v2244_v63 }
 0x7a3   :  { %1473 = vmatpush1.bf16.msra.mxu0 %v2242_v2 }
 0x7a4   :  { %1474 = vmatprep.subr.bf16.mxu0 %v2250_v3 }
 0x7a7   :  { %1475 = vmatpush1.bf16.msra.mxu0 %v2248_v4 }
 0x7a8   :  { %1476 = vmatprep.subr.bf16.mxu0 %v2256_v6 }
 0x7ab   :  { %1477 = vmatpush1.bf16.msra.mxu0 %v2254_v8 }
 0x7ac   :  { %1478 = vmatprep.subr.bf16.mxu0 %v2262_v9 }
 0x7af   :  { %1479 = vmatpush1.bf16.msra.mxu0 %v2260_v13 }
 0x7b0   :  { %1480 = vmatprep.subr.bf16.mxu0 %v2268_v17 }
 0x7b3   :  { %1481 = vmatpush1.bf16.msra.mxu0 %v2266_v16 }
 0x869   :  { %v1211_v18 = vpop.f32.mrb[16].mxu0 }
 0x86a   :  { %v2877_v19 = vadd.f32 %v1211_v18, %v2799_v11  ;;  %v2125_v20 = vpop.f32.mrb[17].mxu0 }
 0x86b   :  { %v1214_v21 = vpop.f32.mrb[18].mxu0 }
 0x86c   :  { %v1219_v22 = vpack.c.bf16 %v2877_v19, %v2877_v19  ;;  %1224 = vst [vmem:[#allocation19 + $0x8] sm:$0xff] %v2877_v19  ;;  %v2126_v23 = vpop.f32.mrb[19].mxu0 }
 0x86e   :  { %v1221_v24 = vrot.slane %v1219_v22, 4  ;;  %v1627_v22 = vld [vmem:[#allocation9] sm:$0xff] }
 0x86f   :  { %v1629_v47 = vmul.f32 %v1627_v22, %v2850_v1  ;;  %v1665_v1 = vld [vmem:[#allocation6] sm:$0xff] }
 0x870   :  { %1223 = vst [vmem:[#allocation3] sm:$0xf0] %v1221_v24 }
 0x877   :  { %v1230_v25 = vld [vmem:[#allocation3] sm:$0xff] }
 0x878   :  { %1456 = vmatmul.mubr.bf16.vlgmr.msra.gmra.mrb[28].mxu1 %v1230_v25  ;;  %1499 = vmatmul.mubr.bf16.vlgmr.msra.gmra.mrb[20].mxu0 %v1230_v25 }
 0x94b   :  { %v1457_v11 = vpop.f32.mrb[28].mxu1  ;;  %v1500_v48 = vpop.f32.mrb[20].mxu0 }
 0x94c   :  { %v1459_v26 = vpop.f32.mrb[29].mxu1  ;;  %v1502_v50 = vpop.f32.mrb[21].mxu0  ;;  %v1539_v27 = vmax.f32 %v1457_v11, %v1500_v48 }
 0x94d   :  { %v1859_v28 = vpack.c.bf16 %v1459_v26, %v1457_v11  ;;  %v1860_v29 = vpack.c.bf16 %v1502_v50, %v1500_v48  ;;  %v1461_v30 = vpop.f32.mrb[30].mxu1  ;;  %v1504_v31 = vpop.f32.mrb[22].mxu0  ;;  %v1540_v32 = vmax.f32 %v1459_v26, %v1502_v50 }
 0x94e   :  { %v1463_v33 = vpop.f32.mrb[31].mxu1  ;;  %v1506_v34 = vpop.f32.mrb[23].mxu0  ;;  %v1544_v35 = vmax.f32 %v1461_v30, %v1504_v31 }
 0x94f   :  { %1533 = vst [vmem:[#allocation18] sm:$0xff] %v1859_v28  ;;  %1534 = vst [vmem:[#allocation18 + $0x8] sm:$0xff] %v1860_v29  ;;  %v1861_v36 = vpack.c.bf16 %v1463_v33, %v1461_v30  ;;  %v1862_v37 = vpack.c.bf16 %v1506_v34, %v1504_v31  ;;  %v1545_v38 = vmax.f32 %v1463_v33, %v1506_v34 }
 0x950   :  { %v1541_v39 = vmax.f32 %v1539_v27, %v1540_v32 }
 0x951   :  { %1535 = vst [vmem:[#allocation18 + $0x10] sm:$0xff] %v1861_v36  ;;  %1536 = vst [vmem:[#allocation18 + $0x18] sm:$0xff] %v1862_v37  ;;  %v1546_v0 = vmax.f32 %v1544_v35, %v1545_v38  ;;  %v1551_v35 = vld [vmem:[#allocation5] sm:$0xff] }
 0x952   :  { %1542 = vmax.xlane.f32.xlu0 %v1541_v39  ;;  %v1552_v39 = vld [vmem:[#allocation5 + $0x8] sm:$0xff] }
 0x953   :  { %1547 = vmax.xlane.f32.xlu1 %v1546_v0 }
 0x9df   :  { %v1543_v41 = vpop.xlane.xlu0 %1542 }
 0x9e0   :  { %v2893_v43 = vmax.f32 %v2888_v40, %v1543_v41  ;;  %v1548_v45 = vpop.xlane.xlu1 %1547 }
 0x9e1   :  { %v2900_v49 = vmax.f32 %v2890_v42, %v1548_v45 }
 0x9e2   :  { %v1553_v46 = vsub.f32 %v2888_v40, %v2893_v43  ;;  %1610 = vst.msk [vmem:[#allocation4] sm:$0xff] %vm1225_vm9, %v2893_v43  ;;  %1563 = vperm.xlu0 %2155, %v2893_v43  }
 0x9e3   :  { %v1554_v52 = vsub.f32 %v2890_v42, %v2900_v49  ;;  %1611 = vst.msk [vmem:[#allocation4 + $0x8] sm:$0xff] %vm1225_vm9, %v2900_v49  ;;  %1568 = vperm.xlu1 %2156, %v2900_v49  }
 0x9e4   :  { %v1555_v32 = vmul.f32 1.442695, %v1553_v46 }
 0x9e9   :  { %v1615_v49 = vld [vmem:[#allocation4] sm:$0xff] }
 0xa61   :  { %v1564_v53 = vpop.permute.xlu0 %1563 }
 0xa62   :  { %v1571_v54 = vsub.f32 %v1457_v11, %v1564_v53  ;;  %v1572_v55 = vsub.f32 %v1459_v26, %v1564_v53  ;;  %v1573_v56 = vsub.f32 %v1500_v48, %v1564_v53  ;;  %v1574_v57 = vsub.f32 %v1502_v50, %v1564_v53  ;;  %v1569_v58 = vpop.permute.xlu1 %1568  ;;  %v1628_v11 = vld [vmem:[#allocation9 + $0x8] sm:$0xff]  ;;  %v1635_v26 = vld [vmem:[%s2984_s4] sm:$0xff]  ;;  %v1636_v50 = vld [vmem:[%s2984_s4 + $0x8] sm:$0xff] }
 0xa63   :  { %v1575_v62 = vsub.f32 %v1461_v30, %v1569_v58  ;;  %v1576_v2 = vsub.f32 %v1463_v33, %v1569_v58  ;;  %v1577_v3 = vsub.f32 %v1504_v31, %v1569_v58  ;;  %v1578_v5 = vsub.f32 %v1506_v34, %v1569_v58  ;;  %v1666_v30 = vld [vmem:[%s2982_s2] sm:$0xff]  ;;  %v1616_v58 = vld [vmem:[#allocation4 + $0x8] sm:$0xff] }
 0xa64   :  { %v1579_v59 = vmul.f32 1.442695, %v1571_v54  ;;  %v1581_v60 = vmul.f32 1.442695, %v1572_v55  ;;  %v1583_v61 = vmul.f32 1.442695, %v1573_v56  ;;  %v1630_v48 = vmul.f32 %v1628_v11, %v2877_v19 }
 0xa65   :  { %v1585_v63 = vmul.f32 1.442695, %v1574_v57  ;;  %v1587_v4 = vmul.f32 1.442695, %v1575_v62  ;;  %v1589_v6 = vmul.f32 1.442695, %v1576_v2  ;;  %v1667_v19 = vsub.f32 %v1665_v1, %v1666_v30 }
 0xa66   :  { %2277 = vpow2.f32 %v1579_v59  ;;  %v1591_v7 = vmul.f32 1.442695, %v1577_v3  ;;  %v1593_v8 = vmul.f32 1.442695, %v1578_v5  ;;  %v1653_v27 = vsel %vm1225_vm9, %v1635_v26, 0.0 }
 0xa67   :  { %2279 = vpow2.f32 %v1581_v60  ;;  %v1654_v28 = vsel %vm1225_vm9, %v1636_v50, 0.0  ;;  %v1668_v31 = vmul.f32 %v1667_v19, %v1667_v19  ;;  %v1557_v33 = vmul.f32 1.442695, %v1554_v52 }
 0xa68   :  { %2281 = vpow2.f32 %v1583_v61  ;;  %v1655_v29 = vadd.f32 %v1654_v28, %v1653_v27 }
 0xa69   :  { %2283 = vpow2.f32 %v1585_v63  ;;  %v1680_v63 = vld [vmem:[%s2982_s2 + $0x8] sm:$0xff] }
 0xa6a   :  { %2285 = vpow2.f32 %v1587_v4  ;;  %v1681_v3 = vsub.f32 %v2797_v10, %v1680_v63 }
 0xa6b   :  { %2287 = vpow2.f32 %v1589_v6 }
 0xa6c   :  { %2289 = vpow2.f32 %v1591_v7  ;;  %v1682_v7 = vmul.f32 %v1681_v3, %v1681_v3 }
 0xa6d   :  { %2291 = vpow2.f32 %v1593_v8 }
 0xa6e   :  { %2293 = vpow2.f32 %v1555_v32 }
 0xa6f   :  { %2295 = vpow2.f32 %v1557_v33 }
 0xa70   :  { %v2278_v44 = vpop.eup %2277 }
 0xa71   :  { %v2280_v9 = vpop.eup %2279 }
 0xa72   :  { %v2282_v12 = vpop.eup %2281  ;;  %v1595_v13 = vadd.f32 %v2280_v9, %v2278_v44 }
 0xa73   :  { %v2284_v14 = vpop.eup %2283 }
 0xa74   :  { %v2286_v15 = vpop.eup %2285  ;;  %v1596_v16 = vadd.f32 %v2282_v12, %v1595_v13 }
 0xa75   :  { %v2288_v17 = vpop.eup %2287 }
 0xa76   :  { %v1597_v18 = vadd.f32 %v2284_v14, %v1596_v16  ;;  %v1600_v20 = vadd.f32 %v2288_v17, %v2286_v15  ;;  %v2290_v21 = vpop.eup %2289 }
 0xa77   :  { %v2292_v24 = vpop.eup %2291 }
 0xa78   :  { %1598 = vadd.xlane.f32.xlu1 %v1597_v18  ;;  %v1601_v23 = vadd.f32 %v2290_v21, %v1600_v20  ;;  %v2294_v34 = vpop.eup %2293 }
 0xa79   :  { %v1559_v36 = vmul.f32 %v2294_v34, %v1551_v35  ;;  %v2296_v37 = vpop.eup %2295 }
 0xa7a   :  { %v1602_v25 = vadd.f32 %v2292_v24, %v1601_v23  ;;  %v1560_v41 = vmul.f32 %v2296_v37, %v1552_v39 }
 0xa7c   :  { %1603 = vadd.xlane.f32.xlu0 %v1602_v25  ;;  %1631 = vadd.xlane.f32.xlu1 %v1629_v47 }
 0xa80   :  { %1633 = vadd.xlane.f32.xlu1 %v1630_v48 }
 0xa84   :  { %1656 = vadd.xlane.f32.xlu1 %v1655_v29 }
 0xa88   :  { %1669 = vadd.xlane.f32.xlu1 %v1668_v31 }
 0xb05   :  { %v1599_v38 = vpop.xlane.xlu1 %1598 }
 0xb06   :  { %v1605_v0 = vadd.f32 %v1599_v38, %v1559_v36 }
 0xb08   :  { %1608 = vst.msk [vmem:[#allocation5] sm:$0xff] %vm1225_vm9, %v1605_v0 }
 0xb09   :  { %v1604_v45 = vpop.xlane.xlu0 %1603  ;;  %v1632_v52 = vpop.xlane.xlu1 %1631 }
 0xb0a   :  { %v1606_v53 = vadd.f32 %v1604_v45, %v1560_v41 }
 0xb0c   :  { %1609 = vst.msk [vmem:[#allocation5 + $0x8] sm:$0xff] %vm1225_vm9, %v1606_v53 }
 0xb0d   :  { %v1634_v60 = vpop.xlane.xlu1 %1633 }
 0xb0f   :  { %v1617_v40 = vld [vmem:[#allocation5] sm:$0xff] }
 0xb10   :  { %2297 = vlog2.f32 %v1617_v40 }
 0xb13   :  { %v1618_v43 = vld [vmem:[#allocation5 + $0x8] sm:$0xff] }
 0xb14   :  { %2299 = vlog2.f32 %v1618_v43 }
 0xb1a   :  { %v2298_v42 = vpop.eup %2297 }
 0xb1b   :  { %v1620_v46 = vmul.f32 0.6931472, %v2298_v42 }
 0xb1d   :  { %v1623_v54 = vadd.f32 %v1620_v46, %v1615_v49 }
 0xb1e   :  { %v2300_v55 = vpop.eup %2299 }
 0xb1f   :  { %v1637_v56 = vsub.f32 %v1623_v54, %v1632_v52  ;;  %v1622_v57 = vmul.f32 0.6931472, %v2300_v55 }
 0xb21   :  { %v1624_v59 = vadd.f32 %v1622_v57, %v1616_v58  ;;  %v1639_v61 = vmul.f32 %v1637_v56, %v1635_v26 }
 0xb23   :  { %v1638_v62 = vsub.f32 %v1624_v59, %v1634_v60  ;;  %v1641_v4 = vsel %vm1225_vm9, %v1639_v61, 0.0 }
 0xb25   :  { %v1640_v2 = vmul.f32 %v1638_v62, %v1636_v50 }
 0xb27   :  { %v1642_v5 = vsel %vm1225_vm9, %v1640_v2, 0.0 }
 0xb28   :  { %v1643_v6 = vadd.f32 %v1642_v5, %v1641_v4 }
 0xb2a   :  { %1644 = vadd.xlane.f32.xlu1 %v1643_v6 }
 0xb2e   :  { %1683 = vadd.xlane.f32.xlu1 %v1682_v7 }
 0xb2f   :  { %2466 = shalt.err (!%p2463_p4)
}
 0xb30   :  { %s2467_s19 = scalar_lea.hbm %s2991_s11, 256 }
 0xb31   :  { %p2468_p5 = scmp.ne.s32.totalorder %s2991_s11, %s2467_s19  ;;  %p2471_p6 = scmp.lt.u32.totalorder %s2467_s19, %s2991_s11 }
 0xb33   :  { %p2473_p7 = pnand %p2471_p6, %p2468_p5 }
 0xb35   :  { %2476 = shalt.err (!%p2473_p7)
}
 0xb36   :  { %1730 = dma.vmem_to_hbm [thread:$0]  %s1725_s15, 256, %s2991_s11, [#allocation20], %s2534_s13, %s2534_s13, %s2535_s14  }
 0xb37   :  { %s2477_s20 = scalar_lea.vmem %s1713_s17, 512  ;;  %p2482_p9 = scmp.lt.s32.totalorder %s1713_s17, %s1713_s17 }
 0xb38   :  { %p2478_p8 = scmp.ne.s32.totalorder %s1713_s17, %s2477_s20  ;;  %p2483_p10 = scmp.lt.s32.totalorder %s2477_s20, %s2477_s20 }
 0xb3a   :  { %p2484_p11 = por %p2483_p10, %p2482_p9 }
 0xb3c   :  { %p2485_p12 = pnand %p2484_p11, %p2478_p8 }
 0xb3e   :  { %2488 = shalt.err (!%p2485_p12)
}
 0xb3f   :  { %s2489_s26 = scalar_lea.hbm %s2990_s10, 512 }
 0xb40   :  { %p2490_p13 = scmp.ne.s32.totalorder %s2990_s10, %s2489_s26  ;;  %p2493_p0 = scmp.lt.u32.totalorder %s2489_s26, %s2990_s10 }
 0xb42   :  { %p2495_p1 = pnand %p2493_p0, %p2490_p13 }
 0xb44   :  { %2498 = shalt.err (!%p2495_p1)
}
 0xb45   :  { %1718 = dma.vmem_to_hbm [thread:$0]  %s1713_s17, 512, %s2990_s10, [#allocation8], %s2544_s7, %s2544_s7, %s2545_s22   ;;  %v1657_v10 = vpop.xlane.xlu1 %1656  ;;  %vm1695_vm10 = vcmp.eq.s32.totalorder %v2780_v51, 0  ;;  %vm1698_vm11 = vcmp.eq.s32.totalorder %v2780_v51, 1  ;;  %vm1702_vm12 = vcmp.eq.s32.totalorder %v2780_v51, 2 }
 0xb46   :  { %v1658_v44 = vrot.slane %v1657_v10, 4  ;;  %s2552_s30 = smov [#allocation21]  }
 0xb47   :  { %s1737_s3 = sshll.u32 %s2552_s30, 4  ;;  %s1738_s3 = int_to_ptr.vmem [resolvable:$true] %s1737_s3 }
 0xb48   :  { %v1659_v12 = vadd.f32 %v1658_v44, %v1657_v10  ;;  %s2499_s15 = scalar_lea.vmem %s1738_s3, 16  ;;  %s2503_s16 = scalar_lea.vmem %s1738_s3, 32 }
 0xb49   :  { %v1670_v8 = vpop.xlane.xlu1 %1669  ;;  %p2500_p2 = scmp.ne.s32.totalorder %s1738_s3, %s2499_s15  ;;  %p2504_p3 = scmp.lt.s32.totalorder %s1738_s3, %s1738_s3 }
 0xb4a   :  { %v1671_v9 = vrot.slane %v1670_v8, 4  ;;  %v1660_v14 = vrot.slane %v1659_v12, 2  ;;  %p2505_p4 = scmp.lt.s32.totalorder %s2503_s16, %s2499_s15 }
 0xb4c   :  { %v1672_v13 = vadd.f32 %v1671_v9, %v1670_v8  ;;  %v1661_v21 = vadd.f32 %v1660_v14, %v1659_v12  ;;  %p2506_p5 = por %p2505_p4, %p2504_p3 }
 0xb4e   :  { %v1673_v16 = vrot.slane %v1672_v13, 2  ;;  %v1662_v11 = vrot.slane %v1661_v21, 1  ;;  %p2507_p6 = pnand %p2506_p5, %p2500_p2 }
 0xb50   :  { %v1674_v24 = vadd.f32 %v1673_v16, %v1672_v13  ;;  %v1663_v29 = vadd.f32 %v1662_v11, %v1661_v21 }
 0xb52   :  { %v1675_v50 = vrot.slane %v1674_v24, 1 }
 0xb54   :  { %v1676_v1 = vadd.f32 %v1675_v50, %v1674_v24 }
 0xbb7   :  { %v1645_v15 = vpop.xlane.xlu1 %1644 }
 0xbb8   :  { %v1646_v17 = vrot.slane %v1645_v15, 4 }
 0xbba   :  { %v1647_v18 = vadd.f32 %v1646_v17, %v1645_v15 }
 0xbbb   :  { %v1684_v20 = vpop.xlane.xlu1 %1683 }
 0xbbc   :  { %v1648_v22 = vrot.slane %v1647_v18, 2  ;;  %v1685_v23 = vrot.slane %v1684_v20, 4 }
 0xbbe   :  { %v1686_v25 = vadd.f32 %v1685_v23, %v1684_v20  ;;  %v1649_v47 = vadd.f32 %v1648_v22, %v1647_v18 }
 0xbc0   :  { %v1687_v48 = vrot.slane %v1686_v25, 2  ;;  %v1650_v26 = vrot.slane %v1649_v47, 1 }
 0xbc2   :  { %v1688_v27 = vadd.f32 %v1687_v48, %v1686_v25  ;;  %v1651_v28 = vadd.f32 %v1650_v26, %v1649_v47 }
 0xbc4   :  { %2127 = vpush %v1651_v28  ;;  %v1689_v30 = vrot.slane %v1688_v27, 1 }
 0xbc5   :  { %2129 = vpush %v1663_v29 }
 0xbc6   :  { %2131 = vpush %v1676_v1  ;;  %v1690_v19 = vadd.f32 %v1689_v30, %v1688_v27 }
 0xbc8   :  { %2133 = vpush %v1690_v19 }
 0xbf5   :  { %s2128_s10 = spop %2127 }
 0xbf6   :  { %v1696_v31 = vstv %s2128_s10  ;;  %s2130_s14 = spop %2129 }
 0xbf7   :  { %v1699_v32 = vstv %s2130_s14  ;;  %s2132_s7 = spop %2131  ;;  %v1697_v33 = vsel %vm1695_vm10, %v1696_v31, 0.0 }
 0xbf8   :  { %v1700_v34 = vsel %vm1698_vm11, %v1699_v32, 0.0 }
 0xbf9   :  { %s2134_s22 = spop %2133  ;;  %v1701_v35 = vadd.f32 %v1700_v34, %v1697_v33 }
 0xbfa   :  { %s1692_s4 = sadd.f32 %s2134_s22, %s2132_s7 }
 0xbfc   :  { %v1703_v36 = vstv %s1692_s4 }
 0xbfd   :  { %v1704_v37 = vsel %vm1702_vm12, %v1703_v36, 0.0 }
 0xbfe   :  { %v1705_v38 = vadd.f32 %v1704_v37, %v1701_v35 }
 0xc00   :  { %1706 = vst [vmem:[#allocation21] sm:$0x1] %v1705_v38 }
 0xc01   :  { %2510 = shalt.err (!%p2507_p6)
}
 0xc02   :  { %s2511_s2 = scalar_lea.hbm %s2992_s12, 16 }
 0xc03   :  { %p2512_p7 = scmp.ne.s32.totalorder %s2992_s12, %s2511_s2  ;;  %p2515_p8 = scmp.lt.u32.totalorder %s2511_s2, %s2992_s12 }
 0xc05   :  { %p2517_p9 = pnand %p2515_p8, %p2512_p7 }
 0xc07   :  { %2520 = shalt.err (!%p2517_p9)
}
 0xc08   :  { %1740 = dma.vmem_to_hbm [thread:$0]  %s1738_s3, 16, %s2992_s12, [#allocation20]  }
 0xc09   :  { %2529 = dma.done.wait [#allocation8], 512  }
 0xc0a   :  { %2530 = vsyncadd [#allocation8], 4294966784 }
 0xc0b   :  { %2531 = dma.done.wait [#allocation20], 272  }
 0xc0c   :  { %2532 = vsyncadd [#allocation20], 4294967024 }
 0xc0d   :  { %1750 = vsyncpa [#allocation7], 1 }
 0xc0e   :  { %1751 = vsyncpa [#allocation10], 1 }
 0xc0f   :  { %1752 = vsyncpa [#allocation13], 1 }
 0xc10   :  { %1753 = vsyncpa [#allocation16], 1 }
 0xc11   :  { %1754 = vsyncpa [#allocation8], 1 }
 0xc12   :  { %1755 = vsyncpa [#allocation20], 1 }

// kernel: tpu_custom_call.1
= control target key start
LH: loop header
LB: loop body
LE: loop exit
PB: predicated region body
PF: predicated region fallthrough
CT: control target
= control target key end

     0   :  { %18 = vsyncpa [#allocation7], 0  ;;  %s2980_s0 = inlined_call_operand.hbm [shape: f32[32,128], index: 0, kind: input, shape index: {}]   ;;  %s2981_s1 = inlined_call_operand.vmem [shape: f32[2,1,16], index: 1, kind: input, shape index: {}]   ;;  %s2982_s2 = inlined_call_operand.vmem [shape: f32[16,128], index: 2, kind: input, shape index: {}]   ;;  %s2983_s3 = inlined_call_operand.hbm [shape: f32[16,128], index: 3, kind: input, shape index: {}]   ;;  %s2984_s4 = inlined_call_operand.vmem [shape: f32[16,1], index: 4, kind: input, shape index: {}]   ;;  %s2985_s5 = inlined_call_operand.hbm [shape: bf16[128,128], index: 5, kind: input, shape index: {}]   ;;  %s2986_s6 = inlined_call_operand.hbm [shape: bf16[128,128], index: 6, kind: input, shape index: {}]   ;;  %s2987_s7 = inlined_call_operand.hbm [shape: bf16[128,128], index: 7, kind: input, shape index: {}]   ;;  %s2988_s8 = inlined_call_operand.hbm [shape: bf16[128,128], index: 8, kind: input, shape index: {}]   ;;  %s2989_s9 = inlined_call_operand.hbm [shape: bf16[128,512], index: 9, kind: input, shape index: {}]   ;;  %s2990_s10 = inlined_call_operand.hbm [shape: bf16[16,512], index: 10, kind: output, shape index: {0}]   ;;  %s2991_s11 = inlined_call_operand.hbm [shape: f32[16,128], index: 11, kind: output, shape index: {1}]   ;;  %s2992_s12 = inlined_call_operand.hbm [shape: f32[1,1,128], index: 12, kind: output, shape index: {2}]  }
   0x1   :  { %19 = vsyncpa [#allocation10], 0 }
   0x2   :  { %20 = vsyncpa [#allocation13], 0 }
   0x3   :  { %21 = vsyncpa [#allocation16], 0 }
   0x4   :  { %22 = vsyncpa [#allocation8], 0 }
   0x5   :  { %23 = vsyncpa [#allocation20], 0  ;;  %s2533_s21 = smov [#allocation9]   ;;  %s2301_s25 = scalar_lea.hbm %s2983_s3, 256 }
   0x6   :  { %s45_s22 = sshll.u32 %s2533_s21, 4  ;;  %p2302_p0 = scmp.ne.s32.totalorder %s2983_s3, %s2301_s25  ;;  %s46_s22 = int_to_ptr.vmem [resolvable:$true] %s45_s22 }
   0x7   :  { %p2305_p1 = scmp.lt.u32.totalorder %s2301_s25, %s2983_s3 }
   0x9   :  { %p2307_p2 = pnand %p2305_p1, %p2302_p0 }
   0xb   :  { %2310 = shalt.err (!%p2307_p2)
}
   0xc   :  { %s2311_s30 = scalar_lea.vmem %s46_s22, 256  ;;  %p2316_p4 = scmp.lt.s32.totalorder %s46_s22, %s46_s22 }
   0xd   :  { %p2312_p3 = scmp.ne.s32.totalorder %s46_s22, %s2311_s30  ;;  %p2317_p5 = scmp.lt.s32.totalorder %s2311_s30, %s2311_s30 }
   0xf   :  { %p2318_p6 = por %p2317_p5, %p2316_p4 }
  0x11   :  { %p2319_p7 = pnand %p2318_p6, %p2312_p3 }
  0x13   :  { %2322 = shalt.err (!%p2319_p7)
}
  0x14   :  { %s2534_s13 = smov 128   ;;  %s2535_s14 = smov 8  }
  0x15   :  { %51 = dma.hbm_to_vmem [thread:$0]  %s2983_s3, 256, %s46_s22, [#allocation10], %s2534_s13, %s2534_s13, %s2535_s14  }
  0x16   :  { %s2536_s17 = smov [#allocation12]   ;;  %s2537_s19 = smov [#allocation15]  }
  0x17   :  { %s71_s18 = sshll.u32 %s2536_s17, 4  ;;  %s95_s20 = sshll.u32 %s2537_s19, 4  ;;  %s72_s18 = int_to_ptr.vmem [resolvable:$true] %s71_s18  ;;  %s96_s20 = int_to_ptr.vmem [resolvable:$true] %s95_s20 }
  0x18   :  { %s2323_s24 = scalar_lea.hbm %s2986_s6, 1024 }
  0x19   :  { %p2324_p8 = scmp.ne.s32.totalorder %s2986_s6, %s2323_s24  ;;  %p2327_p9 = scmp.lt.u32.totalorder %s2323_s24, %s2986_s6 }
  0x1b   :  { %p2329_p10 = pnand %p2327_p9, %p2324_p8 }
  0x1d   :  { %2332 = shalt.err (!%p2329_p10)
}
  0x1e   :  { %s2333_s3 = scalar_lea.vmem %s72_s18, 1024  ;;  %p2338_p12 = scmp.lt.s32.totalorder %s72_s18, %s72_s18 }
  0x1f   :  { %p2334_p11 = scmp.ne.s32.totalorder %s72_s18, %s2333_s3  ;;  %p2339_p13 = scmp.lt.s32.totalorder %s2333_s3, %s2333_s3 }
  0x21   :  { %p2340_p0 = por %p2339_p13, %p2338_p12 }
  0x23   :  { %p2341_p1 = pnand %p2340_p0, %p2334_p11 }
  0x25   :  { %2344 = shalt.err (!%p2341_p1)
}
  0x26   :  { %s2538_s22 = smov 64   ;;  %s2539_s29 = smov 4  }
  0x27   :  { %77 = dma.hbm_to_vmem [thread:$0]  %s2986_s6, 1024, %s72_s18, [#allocation13], %s2538_s22, %s2538_s22, %s2539_s29  }
  0x28   :  { %s2345_s19 = scalar_lea.hbm %s2988_s8, 1024 }
  0x29   :  { %p2346_p2 = scmp.ne.s32.totalorder %s2988_s8, %s2345_s19  ;;  %p2349_p3 = scmp.lt.u32.totalorder %s2345_s19, %s2988_s8 }
  0x2b   :  { %p2351_p4 = pnand %p2349_p3, %p2346_p2 }
  0x2d   :  { %2354 = shalt.err (!%p2351_p4)
}
  0x2e   :  { %s2355_s26 = scalar_lea.vmem %s96_s20, 1024  ;;  %p2360_p6 = scmp.lt.s32.totalorder %s96_s20, %s96_s20 }
  0x2f   :  { %p2356_p5 = scmp.ne.s32.totalorder %s96_s20, %s2355_s26  ;;  %p2361_p7 = scmp.lt.s32.totalorder %s2355_s26, %s2355_s26 }
  0x31   :  { %p2362_p8 = por %p2361_p7, %p2360_p6 }
  0x33   :  { %p2363_p9 = pnand %p2362_p8, %p2356_p5 }
  0x35   :  { %2366 = shalt.err (!%p2363_p9)
}
  0x36   :  { %101 = dma.hbm_to_vmem [thread:$0]  %s2988_s8, 1024, %s96_s20, [#allocation16], %s2538_s22, %s2538_s22, %s2539_s29  }
  0x37   :  { %s2540_s27 = smov [#allocation6]   ;;  %s2541_s3 = smov [#allocation11]  }
  0x38   :  { %s29_s28 = sshll.u32 %s2540_s27, 4  ;;  %s59_s30 = sshll.u32 %s2541_s3, 4  ;;  %s30_s28 = int_to_ptr.vmem [resolvable:$true] %s29_s28  ;;  %s60_s30 = int_to_ptr.vmem [resolvable:$true] %s59_s30 }
  0x39   :  { %s2367_s17 = scalar_lea.hbm %s2980_s0, 512 }
  0x3a   :  { %p2368_p10 = scmp.ne.s32.totalorder %s2980_s0, %s2367_s17  ;;  %p2371_p11 = scmp.lt.u32.totalorder %s2367_s17, %s2980_s0 }
  0x3c   :  { %p2373_p12 = pnand %p2371_p11, %p2368_p10 }
  0x3e   :  { %2376 = shalt.err (!%p2373_p12)
}
  0x3f   :  { %s2377_s8 = scalar_lea.vmem %s30_s28, 512  ;;  %p2382_p0 = scmp.lt.s32.totalorder %s30_s28, %s30_s28 }
  0x40   :  { %p2378_p13 = scmp.ne.s32.totalorder %s30_s28, %s2377_s8  ;;  %p2383_p1 = scmp.lt.s32.totalorder %s2377_s8, %s2377_s8 }
  0x42   :  { %p2384_p2 = por %p2383_p1, %p2382_p0 }
  0x44   :  { %p2385_p3 = pnand %p2384_p2, %p2378_p13 }
  0x46   :  { %2388 = shalt.err (!%p2385_p3)
}
  0x47   :  { %35 = dma.hbm_to_vmem [thread:$0]  %s2980_s0, 512, %s30_s28, [#allocation7], %s2534_s13, %s2534_s13, %s2535_s14  }
  0x48   :  { %s2389_s18 = scalar_lea.hbm %s2985_s5, 1024 }
  0x49   :  { %p2390_p4 = scmp.ne.s32.totalorder %s2985_s5, %s2389_s18  ;;  %p2393_p5 = scmp.lt.u32.totalorder %s2389_s18, %s2985_s5 }
  0x4b   :  { %p2395_p6 = pnand %p2393_p5, %p2390_p4 }
  0x4d   :  { %2398 = shalt.err (!%p2395_p6)
}
  0x4e   :  { %s2399_s17 = scalar_lea.vmem %s60_s30, 1024  ;;  %p2404_p8 = scmp.lt.s32.totalorder %s60_s30, %s60_s30 }
  0x4f   :  { %p2400_p7 = scmp.ne.s32.totalorder %s60_s30, %s2399_s17  ;;  %p2405_p9 = scmp.lt.s32.totalorder %s2399_s17, %s2399_s17 }
  0x51   :  { %p2406_p10 = por %p2405_p9, %p2404_p8 }
  0x53   :  { %p2407_p11 = pnand %p2406_p10, %p2400_p7 }
  0x55   :  { %2410 = shalt.err (!%p2407_p11)
}
  0x56   :  { %65 = dma.hbm_to_vmem [thread:$0]  %s2985_s5, 1024, %s60_s30, [#allocation10], %s2538_s22, %s2538_s22, %s2539_s29  }
  0x57   :  { %s2542_s19 = smov [#allocation14]   ;;  %s2543_s23 = smov [#allocation17]  }
  0x58   :  { %s83_s21 = sshll.u32 %s2542_s19, 4  ;;  %s107_s24 = sshll.u32 %s2543_s23, 4  ;;  %s84_s21 = int_to_ptr.vmem [resolvable:$true] %s83_s21  ;;  %s108_s24 = int_to_ptr.vmem [resolvable:$true] %s107_s24 }
  0x59   :  { %s2411_s25 = scalar_lea.hbm %s2987_s7, 1024 }
  0x5a   :  { %p2412_p12 = scmp.ne.s32.totalorder %s2987_s7, %s2411_s25  ;;  %p2415_p13 = scmp.lt.u32.totalorder %s2411_s25, %s2987_s7 }
  0x5c   :  { %p2417_p0 = pnand %p2415_p13, %p2412_p12 }
  0x5e   :  { %2420 = shalt.err (!%p2417_p0)
}
  0x5f   :  { %s2421_s5 = scalar_lea.vmem %s84_s21, 1024  ;;  %p2426_p2 = scmp.lt.s32.totalorder %s84_s21, %s84_s21 }
  0x60   :  { %p2422_p1 = scmp.ne.s32.totalorder %s84_s21, %s2421_s5  ;;  %p2427_p3 = scmp.lt.s32.totalorder %s2421_s5, %s2421_s5 }
  0x62   :  { %p2428_p4 = por %p2427_p3, %p2426_p2 }
  0x64   :  { %p2429_p5 = pnand %p2428_p4, %p2422_p1 }
  0x66   :  { %2432 = shalt.err (!%p2429_p5)
}
  0x67   :  { %89 = dma.hbm_to_vmem [thread:$0]  %s2987_s7, 1024, %s84_s21, [#allocation13], %s2538_s22, %s2538_s22, %s2539_s29  }
  0x68   :  { %s2433_s17 = scalar_lea.hbm %s2989_s9, 4096 }
  0x69   :  { %p2434_p6 = scmp.ne.s32.totalorder %s2989_s9, %s2433_s17  ;;  %p2437_p7 = scmp.lt.u32.totalorder %s2433_s17, %s2989_s9 }
  0x6b   :  { %p2439_p8 = pnand %p2437_p7, %p2434_p6 }
  0x6d   :  { %2442 = shalt.err (!%p2439_p8)
}
  0x6e   :  { %s2443_s8 = scalar_lea.vmem %s108_s24, 4096  ;;  %p2448_p10 = scmp.lt.s32.totalorder %s108_s24, %s108_s24 }
  0x6f   :  { %p2444_p9 = scmp.ne.s32.totalorder %s108_s24, %s2443_s8  ;;  %p2449_p11 = scmp.lt.s32.totalorder %s2443_s8, %s2443_s8 }
  0x71   :  { %p2450_p12 = por %p2449_p11, %p2448_p10 }
  0x73   :  { %p2451_p13 = pnand %p2450_p12, %p2444_p9 }
  0x75   :  { %2454 = shalt.err (!%p2451_p13)
}
  0x76   :  { %s2544_s7 = smov 256   ;;  %s2545_s22 = smov 16  }
  0x77   :  { %113 = dma.hbm_to_vmem [thread:$0]  %s2989_s9, 4096, %s108_s24, [#allocation16], %s2544_s7, %s2544_s7, %s2545_s22  }
  0x78   :  { %2521 = dma.done.wait [#allocation7], 512  }
  0x79   :  { %2522 = vsyncadd [#allocation7], 4294966784 }
  0x7a   :  { %2523 = dma.done.wait [#allocation10], 1280  }
  0x7b   :  { %2524 = vsyncadd [#allocation10], 4294966016 }
  0x7c   :  { %2525 = dma.done.wait [#allocation13], 2048  }
  0x7d   :  { %2526 = vsyncadd [#allocation13], 4294965248 }
  0x7e   :  { %2527 = dma.done.wait [#allocation16], 5120  }
  0x7f   :  { %2528 = vsyncadd [#allocation16], 4294962176  ;;  %v2546_v0 = vmov 0.0   ;;  %vm2547_vm0 = vmmov 0   ;;  %v2157_v1 = vld [vmem:[#allocation12] sm:$0xff]   ;;  %v2158_v2 = vld [vmem:[#allocation12 + $0x8] sm:$0xff]   ;;  %v140_v45 = vlaneseq }
  0x80   :  { %1943 = vmatprep.subr.bf16.mxu0 %v2546_v0  ;;  %1959 = vmatprep.mubr.msk.bf16.mxu0 %vm2547_vm0, %v2546_v0  ;;  %v2159_v3 = vld [vmem:[#allocation12 + $0x10] sm:$0xff]   ;;  %v2160_v4 = vld [vmem:[#allocation12 + $0x18] sm:$0xff]   ;;  %v2161_v5 = vld [vmem:[#allocation12 + $0x20] sm:$0xff]   ;;  %v2548_v44 = vmov 0   ;;  %vm517_vm5 = vcmask 130048   ;;  %vm1225_vm9 = vcmask 7168  }
  0x81   :  { %1963 = vmatprep.subr.bf16.mxu1 %v2546_v0  ;;  %1979 = vmatprep.mubr.msk.bf16.mxu1 %vm2547_vm0, %v2546_v0  ;;  %v2173_v6 = vld [vmem:[#allocation14] sm:$0xff]   ;;  %v2162_v7 = vld [vmem:[#allocation12 + $0x28] sm:$0xff]   ;;  %v2163_v9 = vld [vmem:[#allocation12 + $0x30] sm:$0xff]   ;;  %v2773_v47 = vshrl.u32 %v140_v45, 7  ;;  %v2780_v51 = vand.u32 127, %v140_v45  ;;  %1228 = vst.msk [vmem:[#allocation5] sm:$0xff] %vm1225_vm9, %v2546_v0 }
  0x82   :  { %1944 = vmatpush3.bf16.msra.mxu0 %v2157_v1  ;;  %1964 = vmatpush3.bf16.msra.mxu1 %v2173_v6  ;;  %v2174_v8 = vld [vmem:[#allocation14 + $0x8] sm:$0xff]   ;;  %v2175_v10 = vld [vmem:[#allocation14 + $0x10] sm:$0xff]   ;;  %v2164_v11 = vld [vmem:[#allocation12 + $0x38] sm:$0xff]   ;;  %1229 = vst.msk [vmem:[#allocation5 + $0x8] sm:$0xff] %vm1225_vm9, %v2546_v0  ;;  %s2550_s3 = smov [#allocation19]   ;;  %s2551_s16 = smov [#allocation18]  }
  0x83   :  { %1945 = vmatprep.subr.bf16.mxu0 %v2546_v0  ;;  %1965 = vmatprep.subr.bf16.mxu1 %v2546_v0  ;;  %v146_v12 = vld [vmem:[#allocation6] sm:$0xff]  ;;  %v2736_v13 = vld [vmem:[#allocation6 + $0x8] sm:$0xff]  ;;  %v2165_v15 = vld [vmem:[#allocation11] sm:$0xff]   ;;  %v512_v48 = vsub.s32 0, %v2773_v47  ;;  %v2778_v50 = vadd.s32 8, %v2773_v47  ;;  %s1724_s15 = sshll.u32 %s2550_s3, 4  ;;  %s1725_s15 = int_to_ptr.vmem [resolvable:$true] %s1724_s15 }
  0x84   :  { %v2176_v14 = vld [vmem:[#allocation14 + $0x18] sm:$0xff]   ;;  %v148_v16 = vpack.c.bf16 %v2736_v13, %v146_v12  ;;  %v2177_v17 = vld [vmem:[#allocation14 + $0x20] sm:$0xff]   ;;  %v2166_v18 = vld [vmem:[#allocation11 + $0x8] sm:$0xff]   ;;  %v359_v28 = vpack.c.bf16 %v2736_v13, %v2736_v13  ;;  %2155 = vset.pattern.permute.xlu0 %v2548_v44  ;;  %2156 = vset.pattern.permute.xlu1 %v2548_v44  ;;  %s1712_s17 = sshll.u32 %s2551_s16, 4  ;;  %s2455_s0 = scalar_lea.vmem %s1725_s15, 256  ;;  %s1713_s17 = int_to_ptr.vmem [resolvable:$true] %s1712_s17 }
  0x85   :  { %v2178_v19 = vld [vmem:[#allocation14 + $0x28] sm:$0xff]   ;;  %v2167_v20 = vld [vmem:[#allocation11 + $0x10] sm:$0xff]   ;;  %v2168_v22 = vld [vmem:[#allocation11 + $0x18] sm:$0xff]   ;;  %vm145_vm2 = vcmp.le.s32.totalorder %v2780_v51, %v2778_v50  ;;  %p2456_p0 = scmp.ne.s32.totalorder %s1725_s15, %s2455_s0  ;;  %p2460_p1 = scmp.lt.s32.totalorder %s1725_s15, %s1725_s15 }
  0x86   :  { %1946 = vmatpush3.bf16.msra.mxu0 %v2158_v2  ;;  %1966 = vmatpush3.bf16.msra.mxu1 %v2174_v8  ;;  %v2179_v21 = vld [vmem:[#allocation14 + $0x30] sm:$0xff]   ;;  %v2180_v23 = vld [vmem:[#allocation14 + $0x38] sm:$0xff]   ;;  %v2169_v24 = vld [vmem:[#allocation11 + $0x20] sm:$0xff]   ;;  %p2461_p2 = scmp.lt.s32.totalorder %s2455_s0, %s2455_s0 }
  0x87   :  { %1947 = vmatprep.subr.bf16.mxu0 %v2546_v0  ;;  %1967 = vmatprep.subr.bf16.mxu1 %v2546_v0  ;;  %v2170_v25 = vld [vmem:[#allocation11 + $0x28] sm:$0xff]   ;;  %v2171_v26 = vld [vmem:[#allocation11 + $0x30] sm:$0xff]   ;;  %v2172_v27 = vld [vmem:[#allocation11 + $0x38] sm:$0xff]  }
  0x88   :  { %v507_v46 = vld [vmem:[%s2981_s1] sm:$0x1]  ;;  %v2181_v60 = vld [vmem:[#allocation12] sm:$0xff]   ;;  %v2187_v8 = vld [vmem:[#allocation12 + $0x30] sm:$0xff]   ;;  %p2462_p3 = por %p2461_p2, %p2460_p1 }
  0x89   :  { %vm508_vm1 = vcmp.gt.f32.partialorder %v507_v46, 0.5  ;;  %v2182_v61 = vld [vmem:[#allocation12 + $0x8] sm:$0xff]   ;;  %v2185_v6 = vld [vmem:[#allocation12 + $0x20] sm:$0xff]  }
  0x8a   :  { %1948 = vmatpush3.bf16.msra.mxu0 %v2159_v3  ;;  %1968 = vmatpush3.bf16.msra.mxu1 %v2175_v10  ;;  %v509_v49 = vsel %vm508_vm1, 1, %v2548_v44  ;;  %v2797_v10 = vld [vmem:[#allocation6 + $0x10] sm:$0xff]  ;;  %v2214_v50 = vld [vmem:[#allocation15 + $0x8] sm:$0xff]   ;;  %p2463_p4 = pnand %p2462_p3, %p2456_p0 }
  0x8b   :  { %1949 = vmatprep.subr.bf16.mxu0 %v2546_v0  ;;  %1969 = vmatprep.subr.bf16.mxu1 %v2546_v0  ;;  %v513_v52 = vrot.slane %v509_v49, %v512_v48  ;;  %v2205_v46 = vld [vmem:[#allocation14] sm:$0xff]  }
  0x8d   :  { %vm514_vm3 = vcmp.eq.s32.totalorder %v513_v52, 1 }
  0x8e   :  { %1950 = vmatpush3.bf16.msra.mxu0 %v2160_v4  ;;  %1970 = vmatpush3.bf16.msra.mxu1 %v2176_v14  ;;  %vm515_vm4 = vmand %vm145_vm2, %vm514_vm3  ;;  %v2183_v4 = vld [vmem:[#allocation12 + $0x10] sm:$0xff]   ;;  %v2189_v14 = vld [vmem:[#allocation11] sm:$0xff]  }
  0x8f   :  { %1951 = vmatprep.subr.bf16.mxu0 %v2546_v0  ;;  %1971 = vmatprep.subr.bf16.mxu1 %v2546_v0 }
  0x92   :  { %1952 = vmatpush3.bf16.msra.mxu0 %v2161_v5  ;;  %1972 = vmatpush3.bf16.msra.mxu1 %v2177_v17  ;;  %v2184_v5 = vld [vmem:[#allocation12 + $0x18] sm:$0xff]  }
  0x93   :  { %1953 = vmatprep.subr.bf16.mxu0 %v2546_v0  ;;  %1973 = vmatprep.subr.bf16.mxu1 %v2546_v0  ;;  %v2192_v17 = vld [vmem:[#allocation11 + $0x18] sm:$0xff]  }
  0x96   :  { %1954 = vmatpush3.bf16.msra.mxu0 %v2162_v7  ;;  %1974 = vmatpush3.bf16.msra.mxu1 %v2178_v19  ;;  %v2186_v7 = vld [vmem:[#allocation12 + $0x28] sm:$0xff]  }
  0x97   :  { %1955 = vmatprep.subr.bf16.mxu0 %v2546_v0  ;;  %1975 = vmatprep.subr.bf16.mxu1 %v2546_v0  ;;  %v2194_v19 = vld [vmem:[#allocation11 + $0x28] sm:$0xff]  }
  0x9a   :  { %1956 = vmatpush3.bf16.msra.mxu0 %v2163_v9  ;;  %1976 = vmatpush3.bf16.msra.mxu1 %v2179_v21  ;;  %v2188_v9 = vld [vmem:[#allocation12 + $0x38] sm:$0xff]  }
  0x9b   :  { %1957 = vmatprep.subr.bf16.mxu0 %v2546_v0  ;;  %1977 = vmatprep.subr.bf16.mxu1 %v2546_v0  ;;  %v2196_v21 = vld [vmem:[#allocation11 + $0x38] sm:$0xff]  }
  0x9e   :  { %1958 = vmatpush3.bf16.msra.mxu0 %v2164_v11  ;;  %1978 = vmatpush3.bf16.msra.mxu1 %v2180_v23  ;;  %v2799_v11 = vld [vmem:[#allocation6 + $0x18] sm:$0xff] }
  0x9f   :  { %1983 = vmatprep.subr.bf16.mxu0 %v2546_v0  ;;  %2003 = vmatprep.subr.bf16.mxu1 %v2546_v0  ;;  %v2804_v12 = vpack.c.bf16 %v2799_v11, %v2797_v10 }
  0xa1   :  { %1960 = vmatmul.mubr.bf16.vlgmr.msra.gmra.mrb[0].mxu0 %v148_v16  ;;  %1980 = vmatmul.mubr.bf16.vlgmr.msra.gmra.mrb[0].mxu1 %v148_v16  ;;  %v2191_v16 = vld [vmem:[#allocation11 + $0x10] sm:$0xff]  }
  0xa2   :  { %1984 = vmatpush3.bf16.msra.mxu0 %v2165_v15  ;;  %1999 = vmatprep.mubr.msk.bf16.mxu0 %vm2547_vm0, %v2546_v0  ;;  %v2190_v15 = vld [vmem:[#allocation11 + $0x8] sm:$0xff]  }
  0xa3   :  { %1985 = vmatprep.subr.bf16.mxu0 %v2546_v0  ;;  %2005 = vmatprep.mubr.msk.bf16.mxu1 %vm2547_vm0, %v2546_v0 }
  0xa6   :  { %1986 = vmatpush3.bf16.msra.mxu0 %v2166_v18  ;;  %v2193_v18 = vld [vmem:[#allocation11 + $0x20] sm:$0xff]  }
  0xa7   :  { %1987 = vmatprep.subr.bf16.mxu0 %v2546_v0 }
  0xaa   :  { %1988 = vmatpush3.bf16.msra.mxu0 %v2167_v20  ;;  %v2195_v20 = vld [vmem:[#allocation11 + $0x30] sm:$0xff]  }
  0xab   :  { %1989 = vmatprep.subr.bf16.mxu0 %v2546_v0 }
  0xae   :  { %1990 = vmatpush3.bf16.msra.mxu0 %v2168_v22  ;;  %v897_v22 = vpack.c.bf16 %v2799_v11, %v2799_v11 }
  0xaf   :  { %1991 = vmatprep.subr.bf16.mxu0 %v2546_v0 }
  0xb2   :  { %1992 = vmatpush3.bf16.msra.mxu0 %v2169_v24 }
  0xb3   :  { %1993 = vmatprep.subr.bf16.mxu0 %v2546_v0 }
  0xb6   :  { %1994 = vmatpush3.bf16.msra.mxu0 %v2170_v25 }
  0xb7   :  { %1995 = vmatprep.subr.bf16.mxu0 %v2546_v0 }
  0xba   :  { %1996 = vmatpush3.bf16.msra.mxu0 %v2171_v26  ;;  %v2197_v26 = vld [vmem:[#allocation15] sm:$0xff]  }
  0xbb   :  { %1997 = vmatprep.subr.bf16.mxu0 %v2546_v0 }
  0xbe   :  { %1998 = vmatpush3.bf16.msra.mxu0 %v2172_v27 }
  0xbf   :  { %2035 = vmatprep.subr.bf16.mxu0 %v2546_v0 }
  0xc1   :  { %2000 = vmatmul.mubr.bf16.vlgmr.msra.gmra.mrb[4].mxu0 %v359_v28  ;;  %v2198_v28 = vld [vmem:[#allocation15 + $0x8] sm:$0xff]  }
  0xc2   :  { %2051 = vmatprep.mubr.msk.bf16.mxu0 %vm2547_vm0, %v2546_v0  ;;  %2036 = vmatpush3.bf16.msra.mxu0 %v2181_v60  ;;  %v2211_v60 = vld [vmem:[#allocation14 + $0x30] sm:$0xff]  }
  0xc3   :  { %2037 = vmatprep.subr.bf16.mxu0 %v2546_v0 }
  0xc6   :  { %2038 = vmatpush3.bf16.msra.mxu0 %v2182_v61  ;;  %v2212_v61 = vld [vmem:[#allocation14 + $0x38] sm:$0xff]  }
  0xc7   :  { %2039 = vmatprep.subr.bf16.mxu0 %v2546_v0 }
  0xca   :  { %2040 = vmatpush3.bf16.msra.mxu0 %v2183_v4 }
  0xcb   :  { %2041 = vmatprep.subr.bf16.mxu0 %v2546_v0 }
  0xce   :  { %2042 = vmatpush3.bf16.msra.mxu0 %v2184_v5 }
  0xcf   :  { %2043 = vmatprep.subr.bf16.mxu0 %v2546_v0 }
  0xd2   :  { %2044 = vmatpush3.bf16.msra.mxu0 %v2185_v6  ;;  %v1813_v6 = vld [vmem:[%s2981_s1 + $0x1] sm:$0x1] }
  0xd3   :  { %2045 = vmatprep.subr.bf16.mxu0 %v2546_v0  ;;  %vm1047_vm6 = vcmp.gt.f32.partialorder %v1813_v6, 0.5  ;;  %v2256_v6 = vld [vmem:[#allocation17 + $0xac] ss:$16 sps:$4 sm:$0xff]  }
  0xd6   :  { %2046 = vmatpush3.bf16.msra.mxu0 %v2186_v7 }
  0xd7   :  { %2047 = vmatprep.subr.bf16.mxu0 %v2546_v0 }
  0xda   :  { %2048 = vmatpush3.bf16.msra.mxu0 %v2187_v8 }
  0xdb   :  { %2049 = vmatprep.subr.bf16.mxu0 %v2546_v0 }
  0xde   :  { %2050 = vmatpush3.bf16.msra.mxu0 %v2188_v9 }
  0xdf   :  { %2075 = vmatprep.subr.bf16.mxu0 %v2546_v0 }
  0xe1   :  { %2052 = vmatmul.mubr.bf16.vlgmr.msra.gmra.mrb[8].mxu0 %v2804_v12 }
  0xe2   :  { %2076 = vmatpush3.bf16.msra.mxu0 %v2189_v14  ;;  %2091 = vmatprep.mubr.msk.bf16.mxu0 %vm2547_vm0, %v2546_v0  ;;  %v1048_v14 = vsel %vm1047_vm6, 1, %v2548_v44 }
  0xe3   :  { %2077 = vmatprep.subr.bf16.mxu0 %v2546_v0 }
  0xe6   :  { %2078 = vmatpush3.bf16.msra.mxu0 %v2190_v15  ;;  %v1052_v15 = vrot.slane %v1048_v14, %v512_v48  ;;  %v2265_v14 = vld [vmem:[#allocation17 + $0xe4] ss:$16 sps:$4 sm:$0xff]  }
  0xe7   :  { %2079 = vmatprep.subr.bf16.mxu0 %v2546_v0 }
  0xe8   :  { %vm1053_vm7 = vcmp.eq.s32.totalorder %v1052_v15, 1  ;;  %v2263_v15 = vld [vmem:[#allocation17 + $0xe0] ss:$16 sps:$4 sm:$0xff]  }
  0xe9   :  { %vm1054_vm8 = vmand %vm145_vm2, %vm1053_vm7 }
  0xea   :  { %2080 = vmatpush3.bf16.msra.mxu0 %v2191_v16 }
  0xeb   :  { %2081 = vmatprep.subr.bf16.mxu0 %v2546_v0 }
  0xee   :  { %2082 = vmatpush3.bf16.msra.mxu0 %v2192_v17 }
  0xef   :  { %2083 = vmatprep.subr.bf16.mxu0 %v2546_v0 }
  0xf2   :  { %2084 = vmatpush3.bf16.msra.mxu0 %v2193_v18 }
  0xf3   :  { %2085 = vmatprep.subr.bf16.mxu0 %v2546_v0 }
  0xf6   :  { %2086 = vmatpush3.bf16.msra.mxu0 %v2194_v19 }
  0xf7   :  { %2087 = vmatprep.subr.bf16.mxu0 %v2546_v0 }
  0xfa   :  { %2088 = vmatpush3.bf16.msra.mxu0 %v2195_v20 }
  0xfb   :  { %2089 = vmatprep.subr.bf16.mxu0 %v2546_v0 }
  0xfe   :  { %2090 = vmatpush3.bf16.msra.mxu0 %v2196_v21 }
  0xff   :  { %2107 = vmatprep.subr.bf16.mxu0 %v2546_v0 }
 0x101   :  { %2092 = vmatmul.mubr.bf16.vlgmr.msra.gmra.mrb[12].mxu0 %v897_v22 }
 0x102   :  { %2123 = vmatprep.mubr.msk.bf16.mxu0 %vm2547_vm0, %v2546_v0 }
 0x174   :  { %v247_v29 = vpop.f32.mrb[0].mxu0  ;;  %v352_v34 = vpop.f32.mrb[0].mxu1 }
 0x175   :  { %v1961_v30 = vpop.f32.mrb[1].mxu0  ;;  %v1981_v35 = vpop.f32.mrb[1].mxu1 }
 0x176   :  { %v250_v31 = vpop.f32.mrb[2].mxu0  ;;  %v355_v36 = vpop.f32.mrb[2].mxu1  ;;  %v2200_v30 = vld [vmem:[#allocation15 + $0x18] sm:$0xff]  }
 0x177   :  { %v465_v32 = vpack.c.bf16 %v250_v31, %v247_v29  ;;  %v1962_v33 = vpop.f32.mrb[3].mxu0  ;;  %v530_v37 = vpack.c.bf16 %v355_v36, %v352_v34  ;;  %v1982_v38 = vpop.f32.mrb[3].mxu1  ;;  %v2199_v29 = vld [vmem:[#allocation15 + $0x10] sm:$0xff]   ;;  %v2201_v31 = vld [vmem:[#allocation15 + $0x20] sm:$0xff]   ;;  %v2204_v34 = vld [vmem:[#allocation15 + $0x38] sm:$0xff]  }
 0x178   :  { %v2203_v33 = vld [vmem:[#allocation15 + $0x30] sm:$0xff]  }
 0x179   :  { %2004 = vmatpush3.bf16.xpose.msra.mxu1 %v465_v32  ;;  %v2202_v32 = vld [vmem:[#allocation15 + $0x28] sm:$0xff]  }
 0x17a   :  { %2009 = vmatprep.subr.bf16.mxu1 %v2546_v0 }
 0x194   :  { %v458_v39 = vpop.f32.mrb[4].mxu0 }
 0x195   :  { %v464_v40 = vpack.c.bf16 %v458_v39, %v458_v39  ;;  %v2001_v41 = vpop.f32.mrb[5].mxu0 }
 0x196   :  { %v461_v42 = vpop.f32.mrb[6].mxu0 }
 0x197   :  { %v2002_v43 = vpop.f32.mrb[7].mxu0  ;;  %2006 = vmatmul.mubr.bf16.vlgmr.msra.gmra.mrb[4].mxu1 %v464_v40 }
 0x198   :  { %2010 = vmatpush3.bf16.msra.mxu1 %v530_v37  ;;  %2011 = vmatprep.mubr.msk.bf16.mxu1 %vm2547_vm0, %v2546_v0 }
 0x199   :  { %2015 = vmatprep.subr.bf16.mxu1 %v2546_v0 }
 0x1b4   :  { %v785_v35 = vpop.f32.mrb[8].mxu0 }
 0x1b5   :  { %v2053_v36 = vpop.f32.mrb[9].mxu0 }
 0x1b6   :  { %v788_v37 = vpop.f32.mrb[10].mxu0  ;;  %v2220_v36 = vld [vmem:[#allocation15 + $0x38] sm:$0xff]  }
 0x1b7   :  { %v1003_v38 = vpack.c.bf16 %v788_v37, %v785_v35  ;;  %v2054_v39 = vpop.f32.mrb[11].mxu0  ;;  %v2221_v37 = vld [vmem:[#allocation17] ss:$16 sps:$4 sm:$0xff]  }
 0x1b8   :  { %v2226_v39 = vld [vmem:[#allocation17 + $0xc] ss:$16 sps:$4 sm:$0xff]  }
 0x1d4   :  { %v996_v40 = vpop.f32.mrb[12].mxu0 }
 0x1d5   :  { %v2093_v41 = vpop.f32.mrb[13].mxu0 }
 0x1d6   :  { %v999_v42 = vpop.f32.mrb[14].mxu0  ;;  %v2227_v41 = vld [vmem:[#allocation17 + $0x20] ss:$16 sps:$4 sm:$0xff]  }
 0x1d7   :  { %v2094_v43 = vpop.f32.mrb[15].mxu0  ;;  %v2235_v42 = vld [vmem:[#allocation17 + $0x44] ss:$16 sps:$4 sm:$0xff]  }
 0x1d8   :  { %v2233_v43 = vld [vmem:[#allocation17 + $0x40] ss:$16 sps:$4 sm:$0xff]  }
 0x26a   :  { %v500_v53 = vpop.f32.mrb[4].mxu1 }
 0x26b   :  { %v506_v54 = vmul.f32 0.088388346, %v500_v53  ;;  %v2007_v55 = vpop.f32.mrb[5].mxu1 }
 0x26c   :  { %v503_v56 = vpop.f32.mrb[6].mxu1  ;;  %v2206_v55 = vld [vmem:[#allocation14 + $0x8] sm:$0xff]  }
 0x26d   :  { %v2008_v57 = vpop.f32.mrb[7].mxu1  ;;  %v516_v58 = vsel %vm515_vm4, %v506_v54, -1e+30  ;;  %v2207_v56 = vld [vmem:[#allocation14 + $0x10] sm:$0xff]  }
 0x26e   :  { %v518_v59 = vsel %vm517_vm5, %v516_v58, -inf  ;;  %v2208_v57 = vld [vmem:[#allocation14 + $0x18] sm:$0xff]  }
 0x26f   :  { %519 = vmax.xlane.f32.xlu0 %v518_v59  ;;  %v2210_v59 = vld [vmem:[#allocation14 + $0x28] sm:$0xff]  }
 0x2fc   :  { %v520_v62 = vpop.xlane.xlu0 %519 }
 0x2fd   :  { %v521_v63 = vsub.f32 %v516_v58, %v520_v62  ;;  %v2209_v58 = vld [vmem:[#allocation14 + $0x20] sm:$0xff]   ;;  %v1002_v62 = vpack.c.bf16 %v996_v40, %v996_v40 }
 0x2fe   :  { %v2229_v40 = vld [vmem:[#allocation17 + $0x24] ss:$16 sps:$4 sm:$0xff]  }
 0x2ff   :  { %v522_v1 = vmul.f32 1.442695, %v521_v63 }
 0x301   :  { %2269 = vpow2.f32 %v522_v1 }
 0x30b   :  { %v2270_v2 = vpop.eup %2269 }
 0x30c   :  { %v524_v3 = vsel %vm517_vm5, %v2270_v2, 0.0 }
 0x30d   :  { %525 = vadd.xlane.f32.xlu0 %v524_v3 }
 0x39a   :  { %v526_v23 = vpop.xlane.xlu0 %525 }
 0x39b   :  { %2271 = vrcp.f32 %v526_v23 }
 0x3a5   :  { %v2272_v24 = vpop.eup %2271 }
 0x3a6   :  { %v528_v25 = vmul.f32 %v2272_v24, %v2270_v2 }
 0x3a8   :  { %v529_v27 = vpack.c.bf16 %v528_v25, %v528_v25 }
 0x3aa   :  { %2012 = vmatmul.mubr.msk.bf16.vlgmr.msra.gmra.mrb[8].mxu1 %vm517_vm5, %v529_v27  ;;  %v2215_v27 = vld [vmem:[#allocation15 + $0x10] sm:$0xff]  }
 0x3ab   :  { %2016 = vmatpush3.bf16.msra.mxu1 %v2197_v26  ;;  %2031 = vmatprep.mubr.msk.bf16.mxu1 %vm2547_vm0, %v2546_v0  ;;  %v2213_v26 = vld [vmem:[#allocation15] sm:$0xff]  }
 0x3ac   :  { %2017 = vmatprep.subr.bf16.mxu1 %v2546_v0  ;;  %2108 = vmatpush3.bf16.msra.mxu0 %v2213_v26 }
 0x3ad   :  { %2109 = vmatprep.subr.bf16.mxu0 %v2546_v0 }
 0x3af   :  { %2018 = vmatpush3.bf16.msra.mxu1 %v2198_v28  ;;  %v2216_v28 = vld [vmem:[#allocation15 + $0x18] sm:$0xff]  }
 0x3b0   :  { %2019 = vmatprep.subr.bf16.mxu1 %v2546_v0  ;;  %2110 = vmatpush3.bf16.msra.mxu0 %v2214_v50 }
 0x3b1   :  { %2111 = vmatprep.subr.bf16.mxu0 %v2546_v0 }
 0x3b3   :  { %2020 = vmatpush3.bf16.msra.mxu1 %v2199_v29  ;;  %v2217_v29 = vld [vmem:[#allocation15 + $0x20] sm:$0xff]  }
 0x3b4   :  { %2021 = vmatprep.subr.bf16.mxu1 %v2546_v0  ;;  %2112 = vmatpush3.bf16.msra.mxu0 %v2215_v27 }
 0x3b5   :  { %2113 = vmatprep.subr.bf16.mxu0 %v2546_v0 }
 0x3b7   :  { %2022 = vmatpush3.bf16.msra.mxu1 %v2200_v30  ;;  %v2218_v30 = vld [vmem:[#allocation15 + $0x28] sm:$0xff]  }
 0x3b8   :  { %2023 = vmatprep.subr.bf16.mxu1 %v2546_v0  ;;  %2114 = vmatpush3.bf16.msra.mxu0 %v2216_v28 }
 0x3b9   :  { %2115 = vmatprep.subr.bf16.mxu0 %v2546_v0 }
 0x3bb   :  { %2024 = vmatpush3.bf16.msra.mxu1 %v2201_v31  ;;  %v2219_v31 = vld [vmem:[#allocation15 + $0x30] sm:$0xff]  }
 0x3bc   :  { %2025 = vmatprep.subr.bf16.mxu1 %v2546_v0  ;;  %2116 = vmatpush3.bf16.msra.mxu0 %v2217_v29 }
 0x3bd   :  { %2117 = vmatprep.subr.bf16.mxu0 %v2546_v0 }
 0x3bf   :  { %2026 = vmatpush3.bf16.msra.mxu1 %v2202_v32 }
 0x3c0   :  { %2027 = vmatprep.subr.bf16.mxu1 %v2546_v0  ;;  %2118 = vmatpush3.bf16.msra.mxu0 %v2218_v30 }
 0x3c1   :  { %2119 = vmatprep.subr.bf16.mxu0 %v2546_v0 }
 0x3c3   :  { %2028 = vmatpush3.bf16.msra.mxu1 %v2203_v33 }
 0x3c4   :  { %2029 = vmatprep.subr.bf16.mxu1 %v2546_v0  ;;  %2120 = vmatpush3.bf16.msra.mxu0 %v2219_v31 }
 0x3c5   :  { %2121 = vmatprep.subr.bf16.mxu0 %v2546_v0 }
 0x3c7   :  { %2030 = vmatpush3.bf16.msra.mxu1 %v2204_v34 }
 0x3c8   :  { %2055 = vmatprep.subr.bf16.mxu1 %v2546_v0  ;;  %2122 = vmatpush3.bf16.msra.mxu0 %v2220_v36 }
 0x3c9   :  { %1466 = vmatprep.subr.bf16.mxu0 %v2226_v39 }
 0x47d   :  { %v568_v45 = vpop.f32.mrb[8].mxu1 }
 0x47e   :  { %v574_v49 = vpack.c.bf16 %v568_v45, %v568_v45  ;;  %v2013_v52 = vpop.f32.mrb[9].mxu1  ;;  %v2241_v45 = vld [vmem:[#allocation17 + $0x64] ss:$16 sps:$4 sm:$0xff]  }
 0x47f   :  { %v571_v53 = vpop.f32.mrb[10].mxu1  ;;  %v2245_v52 = vld [vmem:[#allocation17 + $0x80] ss:$16 sps:$4 sm:$0xff]  }
 0x480   :  { %v2014_v54 = vpop.f32.mrb[11].mxu1  ;;  %2032 = vmatmul.mubr.bf16.vlgmr.msra.gmra.mrb[12].mxu1 %v574_v49  ;;  %v2247_v49 = vld [vmem:[#allocation17 + $0x84] ss:$16 sps:$4 sm:$0xff]  }
 0x481   :  { %2056 = vmatpush3.bf16.msra.mxu1 %v2205_v46  ;;  %2071 = vmatprep.mubr.msk.bf16.mxu1 %vm2547_vm0, %v2546_v0  ;;  %v2239_v46 = vld [vmem:[#allocation17 + $0x60] ss:$16 sps:$4 sm:$0xff]   ;;  %v2224_v54 = vld [vmem:[#allocation17 + $0x8] ss:$16 sps:$4 sm:$0xff]  }
 0x482   :  { %2057 = vmatprep.subr.bf16.mxu1 %v2546_v0 }
 0x485   :  { %2058 = vmatpush3.bf16.msra.mxu1 %v2206_v55 }
 0x486   :  { %2059 = vmatprep.subr.bf16.mxu1 %v2546_v0 }
 0x489   :  { %2060 = vmatpush3.bf16.msra.mxu1 %v2207_v56 }
 0x48a   :  { %2061 = vmatprep.subr.bf16.mxu1 %v2546_v0 }
 0x48d   :  { %2062 = vmatpush3.bf16.msra.mxu1 %v2208_v57  ;;  %v2232_v57 = vld [vmem:[#allocation17 + $0x2c] ss:$16 sps:$4 sm:$0xff]  }
 0x48e   :  { %2063 = vmatprep.subr.bf16.mxu1 %v2546_v0 }
 0x491   :  { %2064 = vmatpush3.bf16.msra.mxu1 %v2209_v58 }
 0x492   :  { %2065 = vmatprep.subr.bf16.mxu1 %v2546_v0 }
 0x495   :  { %2066 = vmatpush3.bf16.msra.mxu1 %v2210_v59 }
 0x496   :  { %2067 = vmatprep.subr.bf16.mxu1 %v2546_v0 }
 0x499   :  { %2068 = vmatpush3.bf16.msra.mxu1 %v2211_v60  ;;  %v2230_v60 = vld [vmem:[#allocation17 + $0x28] ss:$16 sps:$4 sm:$0xff]  }
 0x49a   :  { %2069 = vmatprep.subr.bf16.mxu1 %v2546_v0 }
 0x49d   :  { %2070 = vmatpush3.bf16.msra.mxu1 %v2212_v61  ;;  %v2238_v61 = vld [vmem:[#allocation17 + $0x4c] ss:$16 sps:$4 sm:$0xff]  }
 0x49e   :  { %2095 = vmatprep.subr.bf16.mxu1 %v2546_v0 }
 0x4a0   :  { %2072 = vmatmul.mubr.bf16.vlgmr.msra.gmra.mrb[16].mxu1 %v2804_v12 }
 0x4a1   :  { %2097 = vmatprep.mubr.msk.bf16.mxu1 %vm2547_vm0, %v2546_v0 }
 0x4a6   :  { %2096 = vmatpush3.bf16.xpose.msra.mxu1 %v1003_v38  ;;  %v2223_v38 = vld [vmem:[#allocation17 + $0x4] ss:$16 sps:$4 sm:$0xff]  }
 0x4a7   :  { %2101 = vmatprep.subr.bf16.mxu1 %v2546_v0 }
 0x4ad   :  { %2098 = vmatmul.mubr.bf16.vlgmr.msra.gmra.mrb[20].mxu1 %v1002_v62  ;;  %v2236_v62 = vld [vmem:[#allocation17 + $0x48] ss:$16 sps:$4 sm:$0xff]  }
 0x4ae   :  { %2103 = vmatprep.mubr.msk.bf16.mxu1 %vm2547_vm0, %v2546_v0 }
 0x553   :  { %v673_v63 = vpop.f32.mrb[12].mxu1 }
 0x554   :  { %v2850_v1 = vadd.f32 %v673_v63, %v2736_v13  ;;  %v2033_v2 = vpop.f32.mrb[13].mxu1  ;;  %v2244_v63 = vld [vmem:[#allocation17 + $0x6c] ss:$16 sps:$4 sm:$0xff]  }
 0x555   :  { %v676_v3 = vpop.f32.mrb[14].mxu1  ;;  %v2242_v2 = vld [vmem:[#allocation17 + $0x68] ss:$16 sps:$4 sm:$0xff]  }
 0x556   :  { %v681_v4 = vpack.c.bf16 %v2850_v1, %v2850_v1  ;;  %683 = vst [vmem:[#allocation19] sm:$0xff] %v2850_v1  ;;  %v2034_v5 = vpop.f32.mrb[15].mxu1  ;;  %v2250_v3 = vld [vmem:[#allocation17 + $0x8c] ss:$16 sps:$4 sm:$0xff]  }
 0x557   :  { %v2253_v5 = vld [vmem:[#allocation17 + $0xa4] ss:$16 sps:$4 sm:$0xff]  }
 0x558   :  { %682 = vst [vmem:[#allocation3] sm:$0xf] %v681_v4  ;;  %v2248_v4 = vld [vmem:[#allocation17 + $0x88] ss:$16 sps:$4 sm:$0xff]  }
 0x573   :  { %v890_v7 = vpop.f32.mrb[16].mxu1 }
 0x574   :  { %v2073_v8 = vpop.f32.mrb[17].mxu1 }
 0x575   :  { %v893_v9 = vpop.f32.mrb[18].mxu1  ;;  %v2254_v8 = vld [vmem:[#allocation17 + $0xa8] ss:$16 sps:$4 sm:$0xff]  }
 0x576   :  { %v1068_v12 = vpack.c.bf16 %v893_v9, %v890_v7  ;;  %v2074_v13 = vpop.f32.mrb[19].mxu1  ;;  %v2251_v7 = vld [vmem:[#allocation17 + $0xa0] ss:$16 sps:$4 sm:$0xff]   ;;  %v2262_v9 = vld [vmem:[#allocation17 + $0xcc] ss:$16 sps:$4 sm:$0xff]  }
 0x577   :  { %v2260_v13 = vld [vmem:[#allocation17 + $0xc8] ss:$16 sps:$4 sm:$0xff]  }
 0x578   :  { %2102 = vmatpush3.bf16.msra.mxu1 %v1068_v12  ;;  %v2257_v12 = vld [vmem:[#allocation17 + $0xc0] ss:$16 sps:$4 sm:$0xff]  }
 0x579   :  { %1423 = vmatprep.subr.bf16.mxu1 %v2223_v38 }
 0x580   :  { %v1038_v16 = vpop.f32.mrb[20].mxu1 }
 0x581   :  { %v1044_v17 = vmul.f32 0.088388346, %v1038_v16  ;;  %v2099_v18 = vpop.f32.mrb[21].mxu1  ;;  %v2266_v16 = vld [vmem:[#allocation17 + $0xe8] ss:$16 sps:$4 sm:$0xff]  }
 0x582   :  { %v1041_v19 = vpop.f32.mrb[22].mxu1 }
 0x583   :  { %v2100_v20 = vpop.f32.mrb[23].mxu1  ;;  %v1055_v21 = vsel %vm1054_vm8, %v1044_v17, -1e+30  ;;  %v2268_v17 = vld [vmem:[#allocation17 + $0xec] ss:$16 sps:$4 sm:$0xff]  }
 0x584   :  { %v1056_v22 = vsel %vm517_vm5, %v1055_v21, -inf }
 0x585   :  { %1057 = vmax.xlane.f32.xlu1 %v1056_v22 }
 0x612   :  { %v1058_v23 = vpop.xlane.xlu1 %1057 }
 0x613   :  { %v1059_v24 = vsub.f32 %v1055_v21, %v1058_v23 }
 0x615   :  { %v1060_v25 = vmul.f32 1.442695, %v1059_v24 }
 0x617   :  { %2273 = vpow2.f32 %v1060_v25 }
 0x621   :  { %v2274_v47 = vpop.eup %2273 }
 0x622   :  { %v1062_v48 = vsel %vm517_vm5, %v2274_v47, 0.0 }
 0x623   :  { %1063 = vadd.xlane.f32.xlu1 %v1062_v48 }
 0x6b0   :  { %v1064_v32 = vpop.xlane.xlu1 %1063 }
 0x6b1   :  { %2275 = vrcp.f32 %v1064_v32 }
 0x6bb   :  { %v2276_v33 = vpop.eup %2275 }
 0x6bc   :  { %v1066_v34 = vmul.f32 %v2276_v33, %v2274_v47  ;;  %v2549_v47 = vmov -1e+30  }
 0x6bd   :  { %1226 = vst.msk [vmem:[#allocation4] sm:$0xff] %vm1225_vm9, %v2549_v47  ;;  %1227 = vst.msk [vmem:[#allocation4 + $0x8] sm:$0xff] %vm1225_vm9, %v2549_v47 }
 0x6be   :  { %v1067_v35 = vpack.c.bf16 %v1066_v34, %v1066_v34 }
 0x6c0   :  { %2104 = vmatmul.mubr.msk.bf16.vlgmr.msra.gmra.mrb[24].mxu1 %vm517_vm5, %v1067_v35 }
 0x6c1   :  { %1455 = vmatprep.mubr.bf16.mxu1 %v2548_v44  ;;  %1424 = vmatpush1.bf16.msra.mxu1 %v2221_v37 }
 0x6c2   :  { %1425 = vmatprep.subr.bf16.mxu1 %v2229_v40 }
 0x6c4   :  { %v2888_v40 = vld [vmem:[#allocation4] sm:$0xff] }
 0x6c5   :  { %1426 = vmatpush1.bf16.msra.mxu1 %v2227_v41 }
 0x6c6   :  { %1427 = vmatprep.subr.bf16.mxu1 %v2235_v42  ;;  %v2890_v42 = vld [vmem:[#allocation4 + $0x8] sm:$0xff] }
 0x6c9   :  { %1428 = vmatpush1.bf16.msra.mxu1 %v2233_v43 }
 0x6ca   :  { %1429 = vmatprep.subr.bf16.mxu1 %v2241_v45 }
 0x6cd   :  { %1430 = vmatpush1.bf16.msra.mxu1 %v2239_v46 }
 0x6ce   :  { %1431 = vmatprep.subr.bf16.mxu1 %v2247_v49 }
 0x6d1   :  { %1432 = vmatpush1.bf16.msra.mxu1 %v2245_v52 }
 0x6d2   :  { %1433 = vmatprep.subr.bf16.mxu1 %v2253_v5 }
 0x6d5   :  { %1434 = vmatpush1.bf16.msra.mxu1 %v2251_v7 }
 0x793   :  { %v1106_v53 = vpop.f32.mrb[24].mxu1 }
 0x794   :  { %v1112_v55 = vpack.c.bf16 %v1106_v53, %v1106_v53  ;;  %v2105_v56 = vpop.f32.mrb[25].mxu1 }
 0x795   :  { %v1109_v58 = vpop.f32.mrb[26].mxu1 }
 0x796   :  { %v2106_v59 = vpop.f32.mrb[27].mxu1  ;;  %2124 = vmatmul.mubr.bf16.vlgmr.msra.gmra.mrb[16].mxu0 %v1112_v55 }
 0x797   :  { %1467 = vmatpush1.bf16.msra.mxu0 %v2224_v54  ;;  %1498 = vmatprep.mubr.bf16.mxu0 %v2548_v44  ;;  %v2259_v44 = vld [vmem:[#allocation17 + $0xc4] ss:$16 sps:$4 sm:$0xff]  }
 0x798   :  { %1468 = vmatprep.subr.bf16.mxu0 %v2232_v57  ;;  %1435 = vmatprep.subr.bf16.mxu1 %v2259_v44 }
 0x799   :  { %1436 = vmatpush1.bf16.msra.mxu1 %v2257_v12 }
 0x79a   :  { %1437 = vmatprep.subr.bf16.mxu1 %v2265_v14 }
 0x79b   :  { %1469 = vmatpush1.bf16.msra.mxu0 %v2230_v60 }
 0x79c   :  { %1470 = vmatprep.subr.bf16.mxu0 %v2238_v61 }
 0x79d   :  { %1438 = vmatpush1.bf16.msra.mxu1 %v2263_v15 }
 0x79f   :  { %1471 = vmatpush1.bf16.msra.mxu0 %v2236_v62 }
 0x7a0   :  { %1472 = vmatprep.subr.bf16.mxu0 %v2244_v63 }
 0x7a3   :  { %1473 = vmatpush1.bf16.msra.mxu0 %v2242_v2 }
 0x7a4   :  { %1474 = vmatprep.subr.bf16.mxu0 %v2250_v3 }
 0x7a7   :  { %1475 = vmatpush1.bf16.msra.mxu0 %v2248_v4 }
 0x7a8   :  { %1476 = vmatprep.subr.bf16.mxu0 %v2256_v6 }
 0x7ab   :  { %1477 = vmatpush1.bf16.msra.mxu0 %v2254_v8 }
 0x7ac   :  { %1478 = vmatprep.subr.bf16.mxu0 %v2262_v9 }
 0x7af   :  { %1479 = vmatpush1.bf16.msra.mxu0 %v2260_v13 }
 0x7b0   :  { %1480 = vmatprep.subr.bf16.mxu0 %v2268_v17 }
 0x7b3   :  { %1481 = vmatpush1.bf16.msra.mxu0 %v2266_v16 }
 0x869   :  { %v1211_v18 = vpop.f32.mrb[16].mxu0 }
 0x86a   :  { %v2877_v19 = vadd.f32 %v1211_v18, %v2799_v11  ;;  %v2125_v20 = vpop.f32.mrb[17].mxu0 }
 0x86b   :  { %v1214_v21 = vpop.f32.mrb[18].mxu0 }
 0x86c   :  { %v1219_v22 = vpack.c.bf16 %v2877_v19, %v2877_v19  ;;  %1224 = vst [vmem:[#allocation19 + $0x8] sm:$0xff] %v2877_v19  ;;  %v2126_v23 = vpop.f32.mrb[19].mxu0 }
 0x86e   :  { %v1221_v24 = vrot.slane %v1219_v22, 4  ;;  %v1627_v22 = vld [vmem:[#allocation9] sm:$0xff] }
 0x86f   :  { %v1629_v47 = vmul.f32 %v1627_v22, %v2850_v1  ;;  %v1665_v1 = vld [vmem:[#allocation6] sm:$0xff] }
 0x870   :  { %1223 = vst [vmem:[#allocation3] sm:$0xf0] %v1221_v24 }
 0x877   :  { %v1230_v25 = vld [vmem:[#allocation3] sm:$0xff] }
 0x878   :  { %1456 = vmatmul.mubr.bf16.vlgmr.msra.gmra.mrb[28].mxu1 %v1230_v25  ;;  %1499 = vmatmul.mubr.bf16.vlgmr.msra.gmra.mrb[20].mxu0 %v1230_v25 }
 0x94b   :  { %v1457_v11 = vpop.f32.mrb[28].mxu1  ;;  %v1500_v48 = vpop.f32.mrb[20].mxu0 }
 0x94c   :  { %v1459_v26 = vpop.f32.mrb[29].mxu1  ;;  %v1502_v50 = vpop.f32.mrb[21].mxu0  ;;  %v1539_v27 = vmax.f32 %v1457_v11, %v1500_v48 }
 0x94d   :  { %v1859_v28 = vpack.c.bf16 %v1459_v26, %v1457_v11  ;;  %v1860_v29 = vpack.c.bf16 %v1502_v50, %v1500_v48  ;;  %v1461_v30 = vpop.f32.mrb[30].mxu1  ;;  %v1504_v31 = vpop.f32.mrb[22].mxu0  ;;  %v1540_v32 = vmax.f32 %v1459_v26, %v1502_v50 }
 0x94e   :  { %v1463_v33 = vpop.f32.mrb[31].mxu1  ;;  %v1506_v34 = vpop.f32.mrb[23].mxu0  ;;  %v1544_v35 = vmax.f32 %v1461_v30, %v1504_v31 }
 0x94f   :  { %1533 = vst [vmem:[#allocation18] sm:$0xff] %v1859_v28  ;;  %1534 = vst [vmem:[#allocation18 + $0x8] sm:$0xff] %v1860_v29  ;;  %v1861_v36 = vpack.c.bf16 %v1463_v33, %v1461_v30  ;;  %v1862_v37 = vpack.c.bf16 %v1506_v34, %v1504_v31  ;;  %v1545_v38 = vmax.f32 %v1463_v33, %v1506_v34 }
 0x950   :  { %v1541_v39 = vmax.f32 %v1539_v27, %v1540_v32 }
 0x951   :  { %1535 = vst [vmem:[#allocation18 + $0x10] sm:$0xff] %v1861_v36  ;;  %1536 = vst [vmem:[#allocation18 + $0x18] sm:$0xff] %v1862_v37  ;;  %v1546_v0 = vmax.f32 %v1544_v35, %v1545_v38  ;;  %v1551_v35 = vld [vmem:[#allocation5] sm:$0xff] }
 0x952   :  { %1542 = vmax.xlane.f32.xlu0 %v1541_v39  ;;  %v1552_v39 = vld [vmem:[#allocation5 + $0x8] sm:$0xff] }
 0x953   :  { %1547 = vmax.xlane.f32.xlu1 %v1546_v0 }
 0x9df   :  { %v1543_v41 = vpop.xlane.xlu0 %1542 }
 0x9e0   :  { %v2893_v43 = vmax.f32 %v2888_v40, %v1543_v41  ;;  %v1548_v45 = vpop.xlane.xlu1 %1547 }
 0x9e1   :  { %v2900_v49 = vmax.f32 %v2890_v42, %v1548_v45 }
 0x9e2   :  { %v1553_v46 = vsub.f32 %v2888_v40, %v2893_v43  ;;  %1610 = vst.msk [vmem:[#allocation4] sm:$0xff] %vm1225_vm9, %v2893_v43  ;;  %1563 = vperm.xlu0 %2155, %v2893_v43  }
 0x9e3   :  { %v1554_v52 = vsub.f32 %v2890_v42, %v2900_v49  ;;  %1611 = vst.msk [vmem:[#allocation4 + $0x8] sm:$0xff] %vm1225_vm9, %v2900_v49  ;;  %1568 = vperm.xlu1 %2156, %v2900_v49  }
 0x9e4   :  { %v1555_v32 = vmul.f32 1.442695, %v1553_v46 }
 0x9e9   :  { %v1615_v49 = vld [vmem:[#allocation4] sm:$0xff] }
 0xa61   :  { %v1564_v53 = vpop.permute.xlu0 %1563 }
 0xa62   :  { %v1571_v54 = vsub.f32 %v1457_v11, %v1564_v53  ;;  %v1572_v55 = vsub.f32 %v1459_v26, %v1564_v53  ;;  %v1573_v56 = vsub.f32 %v1500_v48, %v1564_v53  ;;  %v1574_v57 = vsub.f32 %v1502_v50, %v1564_v53  ;;  %v1569_v58 = vpop.permute.xlu1 %1568  ;;  %v1628_v11 = vld [vmem:[#allocation9 + $0x8] sm:$0xff]  ;;  %v1635_v26 = vld [vmem:[%s2984_s4] sm:$0xff]  ;;  %v1636_v50 = vld [vmem:[%s2984_s4 + $0x8] sm:$0xff] }
 0xa63   :  { %v1575_v62 = vsub.f32 %v1461_v30, %v1569_v58  ;;  %v1576_v2 = vsub.f32 %v1463_v33, %v1569_v58  ;;  %v1577_v3 = vsub.f32 %v1504_v31, %v1569_v58  ;;  %v1578_v5 = vsub.f32 %v1506_v34, %v1569_v58  ;;  %v1666_v30 = vld [vmem:[%s2982_s2] sm:$0xff]  ;;  %v1616_v58 = vld [vmem:[#allocation4 + $0x8] sm:$0xff] }
 0xa64   :  { %v1579_v59 = vmul.f32 1.442695, %v1571_v54  ;;  %v1581_v60 = vmul.f32 1.442695, %v1572_v55  ;;  %v1583_v61 = vmul.f32 1.442695, %v1573_v56  ;;  %v1630_v48 = vmul.f32 %v1628_v11, %v2877_v19 }
 0xa65   :  { %v1585_v63 = vmul.f32 1.442695, %v1574_v57  ;;  %v1587_v4 = vmul.f32 1.442695, %v1575_v62  ;;  %v1589_v6 = vmul.f32 1.442695, %v1576_v2  ;;  %v1667_v19 = vsub.f32 %v1665_v1, %v1666_v30 }
 0xa66   :  { %2277 = vpow2.f32 %v1579_v59  ;;  %v1591_v7 = vmul.f32 1.442695, %v1577_v3  ;;  %v1593_v8 = vmul.f32 1.442695, %v1578_v5  ;;  %v1653_v27 = vsel %vm1225_vm9, %v1635_v26, 0.0 }
 0xa67   :  { %2279 = vpow2.f32 %v1581_v60  ;;  %v1654_v28 = vsel %vm1225_vm9, %v1636_v50, 0.0  ;;  %v1668_v31 = vmul.f32 %v1667_v19, %v1667_v19  ;;  %v1557_v33 = vmul.f32 1.442695, %v1554_v52 }
 0xa68   :  { %2281 = vpow2.f32 %v1583_v61  ;;  %v1655_v29 = vadd.f32 %v1654_v28, %v1653_v27 }
 0xa69   :  { %2283 = vpow2.f32 %v1585_v63  ;;  %v1680_v63 = vld [vmem:[%s2982_s2 + $0x8] sm:$0xff] }
 0xa6a   :  { %2285 = vpow2.f32 %v1587_v4  ;;  %v1681_v3 = vsub.f32 %v2797_v10, %v1680_v63 }
 0xa6b   :  { %2287 = vpow2.f32 %v1589_v6 }
 0xa6c   :  { %2289 = vpow2.f32 %v1591_v7  ;;  %v1682_v7 = vmul.f32 %v1681_v3, %v1681_v3 }
 0xa6d   :  { %2291 = vpow2.f32 %v1593_v8 }
 0xa6e   :  { %2293 = vpow2.f32 %v1555_v32 }
 0xa6f   :  { %2295 = vpow2.f32 %v1557_v33 }
 0xa70   :  { %v2278_v44 = vpop.eup %2277 }
 0xa71   :  { %v2280_v9 = vpop.eup %2279 }
 0xa72   :  { %v2282_v12 = vpop.eup %2281  ;;  %v1595_v13 = vadd.f32 %v2280_v9, %v2278_v44 }
 0xa73   :  { %v2284_v14 = vpop.eup %2283 }
 0xa74   :  { %v2286_v15 = vpop.eup %2285  ;;  %v1596_v16 = vadd.f32 %v2282_v12, %v1595_v13 }
 0xa75   :  { %v2288_v17 = vpop.eup %2287 }
 0xa76   :  { %v1597_v18 = vadd.f32 %v2284_v14, %v1596_v16  ;;  %v1600_v20 = vadd.f32 %v2288_v17, %v2286_v15  ;;  %v2290_v21 = vpop.eup %2289 }
 0xa77   :  { %v2292_v24 = vpop.eup %2291 }
 0xa78   :  { %1598 = vadd.xlane.f32.xlu1 %v1597_v18  ;;  %v1601_v23 = vadd.f32 %v2290_v21, %v1600_v20  ;;  %v2294_v34 = vpop.eup %2293 }
 0xa79   :  { %v1559_v36 = vmul.f32 %v2294_v34, %v1551_v35  ;;  %v2296_v37 = vpop.eup %2295 }
 0xa7a   :  { %v1602_v25 = vadd.f32 %v2292_v24, %v1601_v23  ;;  %v1560_v41 = vmul.f32 %v2296_v37, %v1552_v39 }
 0xa7c   :  { %1603 = vadd.xlane.f32.xlu0 %v1602_v25  ;;  %1631 = vadd.xlane.f32.xlu1 %v1629_v47 }
 0xa80   :  { %1633 = vadd.xlane.f32.xlu1 %v1630_v48 }
 0xa84   :  { %1656 = vadd.xlane.f32.xlu1 %v1655_v29 }
 0xa88   :  { %1669 = vadd.xlane.f32.xlu1 %v1668_v31 }
 0xb05   :  { %v1599_v38 = vpop.xlane.xlu1 %1598 }
 0xb06   :  { %v1605_v0 = vadd.f32 %v1599_v38, %v1559_v36 }
 0xb08   :  { %1608 = vst.msk [vmem:[#allocation5] sm:$0xff] %vm1225_vm9, %v1605_v0 }
 0xb09   :  { %v1604_v45 = vpop.xlane.xlu0 %1603  ;;  %v1632_v52 = vpop.xlane.xlu1 %1631 }
 0xb0a   :  { %v1606_v53 = vadd.f32 %v1604_v45, %v1560_v41 }
 0xb0c   :  { %1609 = vst.msk [vmem:[#allocation5 + $0x8] sm:$0xff] %vm1225_vm9, %v1606_v53 }
 0xb0d   :  { %v1634_v60 = vpop.xlane.xlu1 %1633 }
 0xb0f   :  { %v1617_v40 = vld [vmem:[#allocation5] sm:$0xff] }
 0xb10   :  { %2297 = vlog2.f32 %v1617_v40 }
 0xb13   :  { %v1618_v43 = vld [vmem:[#allocation5 + $0x8] sm:$0xff] }
 0xb14   :  { %2299 = vlog2.f32 %v1618_v43 }
 0xb1a   :  { %v2298_v42 = vpop.eup %2297 }
 0xb1b   :  { %v1620_v46 = vmul.f32 0.6931472, %v2298_v42 }
 0xb1d   :  { %v1623_v54 = vadd.f32 %v1620_v46, %v1615_v49 }
 0xb1e   :  { %v2300_v55 = vpop.eup %2299 }
 0xb1f   :  { %v1637_v56 = vsub.f32 %v1623_v54, %v1632_v52  ;;  %v1622_v57 = vmul.f32 0.6931472, %v2300_v55 }
 0xb21   :  { %v1624_v59 = vadd.f32 %v1622_v57, %v1616_v58  ;;  %v1639_v61 = vmul.f32 %v1637_v56, %v1635_v26 }
 0xb23   :  { %v1638_v62 = vsub.f32 %v1624_v59, %v1634_v60  ;;  %v1641_v4 = vsel %vm1225_vm9, %v1639_v61, 0.0 }
 0xb25   :  { %v1640_v2 = vmul.f32 %v1638_v62, %v1636_v50 }
 0xb27   :  { %v1642_v5 = vsel %vm1225_vm9, %v1640_v2, 0.0 }
 0xb28   :  { %v1643_v6 = vadd.f32 %v1642_v5, %v1641_v4 }
 0xb2a   :  { %1644 = vadd.xlane.f32.xlu1 %v1643_v6 }
 0xb2e   :  { %1683 = vadd.xlane.f32.xlu1 %v1682_v7 }
 0xb2f   :  { %2466 = shalt.err (!%p2463_p4)
}
 0xb30   :  { %s2467_s19 = scalar_lea.hbm %s2991_s11, 256 }
 0xb31   :  { %p2468_p5 = scmp.ne.s32.totalorder %s2991_s11, %s2467_s19  ;;  %p2471_p6 = scmp.lt.u32.totalorder %s2467_s19, %s2991_s11 }
 0xb33   :  { %p2473_p7 = pnand %p2471_p6, %p2468_p5 }
 0xb35   :  { %2476 = shalt.err (!%p2473_p7)
}
 0xb36   :  { %1730 = dma.vmem_to_hbm [thread:$0]  %s1725_s15, 256, %s2991_s11, [#allocation20], %s2534_s13, %s2534_s13, %s2535_s14  }
 0xb37   :  { %s2477_s20 = scalar_lea.vmem %s1713_s17, 512  ;;  %p2482_p9 = scmp.lt.s32.totalorder %s1713_s17, %s1713_s17 }
 0xb38   :  { %p2478_p8 = scmp.ne.s32.totalorder %s1713_s17, %s2477_s20  ;;  %p2483_p10 = scmp.lt.s32.totalorder %s2477_s20, %s2477_s20 }
 0xb3a   :  { %p2484_p11 = por %p2483_p10, %p2482_p9 }
 0xb3c   :  { %p2485_p12 = pnand %p2484_p11, %p2478_p8 }
 0xb3e   :  { %2488 = shalt.err (!%p2485_p12)
}
 0xb3f   :  { %s2489_s26 = scalar_lea.hbm %s2990_s10, 512 }
 0xb40   :  { %p2490_p13 = scmp.ne.s32.totalorder %s2990_s10, %s2489_s26  ;;  %p2493_p0 = scmp.lt.u32.totalorder %s2489_s26, %s2990_s10 }
 0xb42   :  { %p2495_p1 = pnand %p2493_p0, %p2490_p13 }
 0xb44   :  { %2498 = shalt.err (!%p2495_p1)
}
 0xb45   :  { %1718 = dma.vmem_to_hbm [thread:$0]  %s1713_s17, 512, %s2990_s10, [#allocation8], %s2544_s7, %s2544_s7, %s2545_s22   ;;  %v1657_v10 = vpop.xlane.xlu1 %1656  ;;  %vm1695_vm10 = vcmp.eq.s32.totalorder %v2780_v51, 0  ;;  %vm1698_vm11 = vcmp.eq.s32.totalorder %v2780_v51, 1  ;;  %vm1702_vm12 = vcmp.eq.s32.totalorder %v2780_v51, 2 }
 0xb46   :  { %v1658_v44 = vrot.slane %v1657_v10, 4  ;;  %s2552_s30 = smov [#allocation21]  }
 0xb47   :  { %s1737_s3 = sshll.u32 %s2552_s30, 4  ;;  %s1738_s3 = int_to_ptr.vmem [resolvable:$true] %s1737_s3 }
 0xb48   :  { %v1659_v12 = vadd.f32 %v1658_v44, %v1657_v10  ;;  %s2499_s15 = scalar_lea.vmem %s1738_s3, 16  ;;  %s2503_s16 = scalar_lea.vmem %s1738_s3, 32 }
 0xb49   :  { %v1670_v8 = vpop.xlane.xlu1 %1669  ;;  %p2500_p2 = scmp.ne.s32.totalorder %s1738_s3, %s2499_s15  ;;  %p2504_p3 = scmp.lt.s32.totalorder %s1738_s3, %s1738_s3 }
 0xb4a   :  { %v1671_v9 = vrot.slane %v1670_v8, 4  ;;  %v1660_v14 = vrot.slane %v1659_v12, 2  ;;  %p2505_p4 = scmp.lt.s32.totalorder %s2503_s16, %s2499_s15 }
 0xb4c   :  { %v1672_v13 = vadd.f32 %v1671_v9, %v1670_v8  ;;  %v1661_v21 = vadd.f32 %v1660_v14, %v1659_v12  ;;  %p2506_p5 = por %p2505_p4, %p2504_p3 }
 0xb4e   :  { %v1673_v16 = vrot.slane %v1672_v13, 2  ;;  %v1662_v11 = vrot.slane %v1661_v21, 1  ;;  %p2507_p6 = pnand %p2506_p5, %p2500_p2 }
 0xb50   :  { %v1674_v24 = vadd.f32 %v1673_v16, %v1672_v13  ;;  %v1663_v29 = vadd.f32 %v1662_v11, %v1661_v21 }
 0xb52   :  { %v1675_v50 = vrot.slane %v1674_v24, 1 }
 0xb54   :  { %v1676_v1 = vadd.f32 %v1675_v50, %v1674_v24 }
 0xbb7   :  { %v1645_v15 = vpop.xlane.xlu1 %1644 }
 0xbb8   :  { %v1646_v17 = vrot.slane %v1645_v15, 4 }
 0xbba   :  { %v1647_v18 = vadd.f32 %v1646_v17, %v1645_v15 }
 0xbbb   :  { %v1684_v20 = vpop.xlane.xlu1 %1683 }
 0xbbc   :  { %v1648_v22 = vrot.slane %v1647_v18, 2  ;;  %v1685_v23 = vrot.slane %v1684_v20, 4 }
 0xbbe   :  { %v1686_v25 = vadd.f32 %v1685_v23, %v1684_v20  ;;  %v1649_v47 = vadd.f32 %v1648_v22, %v1647_v18 }
 0xbc0   :  { %v1687_v48 = vrot.slane %v1686_v25, 2  ;;  %v1650_v26 = vrot.slane %v1649_v47, 1 }
 0xbc2   :  { %v1688_v27 = vadd.f32 %v1687_v48, %v1686_v25  ;;  %v1651_v28 = vadd.f32 %v1650_v26, %v1649_v47 }
 0xbc4   :  { %2127 = vpush %v1651_v28  ;;  %v1689_v30 = vrot.slane %v1688_v27, 1 }
 0xbc5   :  { %2129 = vpush %v1663_v29 }
 0xbc6   :  { %2131 = vpush %v1676_v1  ;;  %v1690_v19 = vadd.f32 %v1689_v30, %v1688_v27 }
 0xbc8   :  { %2133 = vpush %v1690_v19 }
 0xbf5   :  { %s2128_s10 = spop %2127 }
 0xbf6   :  { %v1696_v31 = vstv %s2128_s10  ;;  %s2130_s14 = spop %2129 }
 0xbf7   :  { %v1699_v32 = vstv %s2130_s14  ;;  %s2132_s7 = spop %2131  ;;  %v1697_v33 = vsel %vm1695_vm10, %v1696_v31, 0.0 }
 0xbf8   :  { %v1700_v34 = vsel %vm1698_vm11, %v1699_v32, 0.0 }
 0xbf9   :  { %s2134_s22 = spop %2133  ;;  %v1701_v35 = vadd.f32 %v1700_v34, %v1697_v33 }
 0xbfa   :  { %s1692_s4 = sadd.f32 %s2134_s22, %s2132_s7 }
 0xbfc   :  { %v1703_v36 = vstv %s1692_s4 }
 0xbfd   :  { %v1704_v37 = vsel %vm1702_vm12, %v1703_v36, 0.0 }
 0xbfe   :  { %v1705_v38 = vadd.f32 %v1704_v37, %v1701_v35 }
 0xc00   :  { %1706 = vst [vmem:[#allocation21] sm:$0x1] %v1705_v38 }
 0xc01   :  { %2510 = shalt.err (!%p2507_p6)
}
 0xc02   :  { %s2511_s2 = scalar_lea.hbm %s2992_s12, 16 }
 0xc03   :  { %p2512_p7 = scmp.ne.s32.totalorder %s2992_s12, %s2511_s2  ;;  %p2515_p8 = scmp.lt.u32.totalorder %s2511_s2, %s2992_s12 }
 0xc05   :  { %p2517_p9 = pnand %p2515_p8, %p2512_p7 }
 0xc07   :  { %2520 = shalt.err (!%p2517_p9)
}
 0xc08   :  { %1740 = dma.vmem_to_hbm [thread:$0]  %s1738_s3, 16, %s2992_s12, [#allocation20]  }
 0xc09   :  { %2529 = dma.done.wait [#allocation8], 512  }
 0xc0a   :  { %2530 = vsyncadd [#allocation8], 4294966784 }
 0xc0b   :  { %2531 = dma.done.wait [#allocation20], 272  }
 0xc0c   :  { %2532 = vsyncadd [#allocation20], 4294967024 }
 0xc0d   :  { %1750 = vsyncpa [#allocation7], 1 }
 0xc0e   :  { %1751 = vsyncpa [#allocation10], 1 }
 0xc0f   :  { %1752 = vsyncpa [#allocation13], 1 }
 0xc10   :  { %1753 = vsyncpa [#allocation16], 1 }
 0xc11   :  { %1754 = vsyncpa [#allocation8], 1 }
 0xc12   :  { %1755 = vsyncpa [#allocation20], 1 }

</bundles_post_ra>
